<compile_context>
chip_gen: v7x
topology: tpu7x:2x2x1
jax: 0.10.0
libtpu: 0.0.40
codegen_flags: <defaults>
</compile_context>

<pallas_src>
import functools

import jax
import jax.numpy as jnp
from jax.experimental import pallas as pl
from jax.experimental.pallas import tpu as pltpu

EPS = 1e-5
OUT_PAD = 128      # lane-dense padded output width (real logits = 5)
NARROW = 64        # lane width of the narrow weight slab (STN / early convs)
WIDE = 256         # lane width of the wide weight slab (head fcs)
VCOLS = 256        # lane width of the row-vector slab (BN gamma/beta, biases)
ROW_ALIGN = 16     # bf16 sublane packing: keep every weight's row offset aligned


# --------------------------------------------------------------------------- #
# Parameter packing: two bf16 weight slabs (64-lane / 256-lane) + one f32
# row-vector slab + static (python) metadata with offsets.
# --------------------------------------------------------------------------- #
def pack_params(p):
    split = p['cw3'].shape[1]          # pooled-feature width of the 320-wide fc
    fw2 = jnp.pad(p['fw2'], ((0, 0), (0, OUT_PAD - p['fw2'].shape[1])))
    fb2 = jnp.pad(p['fb2'], ((0, 0), (0, OUT_PAD - p['fb2'].shape[1])))

    # Weights actually used by the kernel.  convs3 (cw2/cw3 + their BN params)
    # and the pooled-feature half of the head fc (fw0[:split]) are omitted on
    # purpose: that branch contributes only a per-column constant that cancels
    # exactly in the head's training-mode BatchNorm (see kernel comment).
    # Conv/fc biases that feed straight into a BN are omitted too.
    weights = [
        ('stn_cw0', p['stn_cw0']), ('stn_cw1', p['stn_cw1']),
        ('stn_fw0', p['stn_fw0']), ('stn_fw1', p['stn_fw1']),
        ('stn_pw', p['stn_pw']),
        ('cw0', p['cw0']), ('cw1', p['cw1']),
        ('fw0b', p['fw0'][split:]),    # inp2 part of the 320-wide head fc
        ('fw1', p['fw1']), ('fw2', fw2),
    ]
    wmeta = {}
    rows = {0: [], 1: []}              # 0: narrow (64-lane), 1: wide (256-lane)
    offs = {0: 0, 1: 0}
    width = {0: NARROW, 1: WIDE}
    for name, w in weights:
        ci, co = w.shape
        sid = 0 if co <= NARROW else 1
        rpad = (-ci) % ROW_ALIGN
        wmeta[name] = (sid, offs[sid], ci, co)
        rows[sid].append(jnp.pad(w, ((0, rpad), (0, width[sid] - co))))
        offs[sid] += ci + rpad
    wnarrow = jnp.concatenate(rows[0], axis=0).astype(jnp.bfloat16)
    wwide = jnp.concatenate(rows[1], axis=0).astype(jnp.bfloat16)

    # Row vectors used by the kernel (kept in f32: 16x256, negligible DMA).
    vectors = [
        ('stn_cg0', p['stn_cg0']), ('stn_cbe0', p['stn_cbe0']),
        ('stn_cg1', p['stn_cg1']), ('stn_cbe1', p['stn_cbe1']),
        ('stn_fb0', p['stn_fb0']), ('stn_fb1', p['stn_fb1']),
        ('stn_pb', p['stn_pb']),
        ('cg0', p['cg0']), ('cbe0', p['cbe0']),
        ('cg1', p['cg1']), ('cbe1', p['cbe1']),
        ('fg0', p['fg0']), ('fbe0', p['fbe0']),
        ('fg1', p['fg1']), ('fbe1', p['fbe1']),
        ('fb2', fb2),
    ]
    vmeta, vrows = {}, []
    for r, (name, v) in enumerate(vectors):
        vmeta[name] = (r, v.shape[1])
        vrows.append(jnp.pad(v, ((0, 0), (0, VCOLS - v.shape[1]))))
    vslab = jnp.concatenate(vrows, axis=0)          # (16, 256) f32
    return wnarrow, wwide, vslab, wmeta, vmeta


# --------------------------------------------------------------------------- #
# Fused kernel.  Point features live as a (B*N, C) channels-last slab; every
# conv1d(k=1) / linear is a 2-D bf16 MXU matmul with f32 accumulation.
# --------------------------------------------------------------------------- #
def _pointnet_kernel(x_ref, wn_ref, ww_ref, vslab_ref, out_ref, *,
                     batch, npts, nfeat, nfeat_stn, wmeta, vmeta):
    f32, bf16 = jnp.float32, jnp.bfloat16

    def W(name):
        sid, off, ci, co = wmeta[name]
        ref = wn_ref if sid == 0 else ww_ref
        return ref[off:off + ci, :co]               # bf16 tile

    def V(name):
        r, co = vmeta[name]
        return vslab_ref[r:r + 1, :co]              # f32 row vector

    def mm(a, b):
        # bf16 x bf16 MXU matmul, f32 accumulate.
        return jnp.dot(a.astype(bf16), b, preferred_element_type=f32)

    def bn_relu(h, gamma, beta):
        # Training-mode BatchNorm1d over rows.  Per-column mean / E[x^2] are
        # computed on the MXU via ones-row f32 matmuls (the MXU is otherwise
        # idle at these K), freeing the saturated VPU/XLU reduction slots.
        m = h.shape[0]
        ones = jnp.full((1, m), 1.0 / m, f32)
        mu = jnp.dot(ones, h, preferred_element_type=f32)
        m2 = jnp.dot(ones, h * h, preferred_element_type=f32)
        scale = jax.lax.rsqrt(m2 - mu * mu + EPS) * gamma
        shift = beta - mu * scale
        return jnp.maximum(h * scale + shift, 0.0)

    x = x_ref[...]                                  # (B*N, nfeat) f32

    # ------------------------------ STNkD ------------------------------ #
    h = mm(x[:, :nfeat_stn], W('stn_cw0'))          # conv bias cancels in BN
    h = bn_relu(h, V('stn_cg0'), V('stn_cbe0'))
    h = mm(h, W('stn_cw1'))
    h = bn_relu(h, V('stn_cg1'), V('stn_cbe1'))     # (B*N, 32)
    # Per-batch max-pool via static 2-D sublane slices (no 3-D reshape).
    pooled = jnp.concatenate(
        [jnp.max(h[b * npts:(b + 1) * npts], axis=0, keepdims=True)
         for b in range(batch)], axis=0)            # (B, 32)
    f = jnp.maximum(mm(pooled, W('stn_fw0')) + V('stn_fb0'), 0.0)
    f = jnp.maximum(mm(f, W('stn_fw1')) + V('stn_fb1'), 0.0)
    t = mm(f, W('stn_pw')) + V('stn_pb')            # (B, 4); T = I + t.view(2,2)

    # ------------- conv1 with the STN xy-transform folded in ------------- #
    # cat([xy @ T, rest]) @ cw0 == x @ cw0 + d0 * cw0[0] + d1 * cw0[1]
    wc0 = W('cw0')                                  # (nfeat, 64)
    # Static sublane broadcast of t per batch (batch is static): no iota /
    # compare / one-hot selector matmul.
    tmap = jnp.concatenate(
        [jnp.broadcast_to(t[b:b + 1, :], (npts, 4)) for b in range(batch)],
        axis=0)                                     # (B*N, 4)
    x0, x1 = x[:, 0:1], x[:, 1:2]
    d0 = x0 * tmap[:, 0:1] + x1 * tmap[:, 2:3]      # delta of xy channel 0
    d1 = x0 * tmap[:, 1:2] + x1 * tmap[:, 3:4]      # delta of xy channel 1
    h = mm(x, wc0) + d0 * wc0[0:1, :] + d1 * wc0[1:2, :]
    h = bn_relu(h, V('cg0'), V('cbe0'))             # (B*N, 64)
    inp2 = bn_relu(mm(h, W('cw1')), V('cg1'), V('cbe1'))        # (B*N, 64)

    # ------------------------- head (batch 0 only) ----------------------- #
    # NOTE: the global-feature branch (convs3 -> max-pool -> @ fw0[:256] + fc
    # bias) adds the SAME row vector to every point's pre-BN activation and
    # cancels exactly in the training-mode BatchNorm below -> dead compute,
    # removed entirely (training-mode BN only).
    z = mm(inp2[:npts], W('fw0b'))                  # (N, 256)
    z = bn_relu(z, V('fg0'), V('fbe0'))
    z = bn_relu(mm(z, W('fw1')), V('fg1'), V('fbe1'))           # (N, 128)
    out_ref[...] = mm(z, W('fw2')) + V('fb2')       # (N, 128) lane-dense


def make_forward(wmeta, vmeta, *, batch, npts, nfeat, nfeat_stn, slab_bytes):
    kernel = functools.partial(
        _pointnet_kernel, batch=batch, npts=npts, nfeat=nfeat,
        nfeat_stn=nfeat_stn, wmeta=wmeta, vmeta=vmeta)

    # Advisory cost estimate (layer matmuls + BN-stat matmuls).
    rows_of = {'stn_cw0': batch * npts, 'stn_cw1': batch * npts,
               'stn_fw0': batch, 'stn_fw1': batch, 'stn_pw': batch,
               'cw0': batch * npts, 'cw1': batch * npts,
               'fw0b': npts, 'fw1': npts, 'fw2': npts}
    flops = sum(2 * r * wmeta[k][2] * wmeta[k][3] for k, r in rows_of.items())
    bn_cols_full = 16 + 32 + 64 + 64               # BN layers over B*N rows
    bn_cols_head = 256 + 128                       # BN layers over npts rows
    flops += 4 * batch * npts * bn_cols_full + 4 * npts * bn_cols_head
    xbytes = batch * npts * nfeat * 4
    obytes = npts * OUT_PAD * 4
    cost = pl.CostEstimate(flops=flops,
                           transcendentals=bn_cols_full + bn_cols_head,
                           bytes_accessed=xbytes + slab_bytes + obytes)

    vmem = pl.BlockSpec(memory_space=pltpu.MemorySpace.VMEM)
    call = pl.pallas_call(
        kernel,
        out_shape=jax.ShapeDtypeStruct((npts, OUT_PAD), jnp.float32),
        in_specs=[vmem, vmem, vmem, vmem],
        out_specs=vmem,
        compiler_params=pltpu.CompilerParams(vmem_limit_bytes=32 * 1024 * 1024),
        cost_estimate=cost,
    )

    @jax.jit
    def forward(x, wnarrow, wwide, vslab):
        # PyTorch NCW (B, C, N) -> channels-last slab (B*N, C)
        x2d = jnp.transpose(x, (0, 2, 1)).reshape(batch * npts, nfeat)
        out = call(x2d, wnarrow, wwide, vslab)
        return out[:, :5]

    return forward


# --------------------------------------------------------------------------- #
# Parameters (deterministic, synthetic). Weights stored as (C_in, C_out).
# --------------------------------------------------------------------------- #
def init_params(key, nfeat, nf_conv, nf_conv_stn, nf_fc_stn, K=2):
    ks = iter(jax.random.split(key, 64))

    def w(ci, co, s=0.1):
        return s * jax.random.normal(next(ks), (ci, co), jnp.float32)

    def b(co, s=0.1):
        return s * jax.random.normal(next(ks), (1, co), jnp.float32)

    def g(co):
        return 1.0 + 0.1 * jax.random.normal(next(ks), (1, co), jnp.float32)

    p = {}
    # STN: convs with BN, fcs without BN (BN=False), proj zero-initialised.
    ci = nfeat
    for i, co in enumerate(nf_conv_stn):
        p[f'stn_cw{i}'], p[f'stn_cb{i}'] = w(ci, co), b(co)
        p[f'stn_cg{i}'], p[f'stn_cbe{i}'] = g(co), b(co)
        ci = co
    fi = nf_conv_stn[-1]
    for i, co in enumerate(nf_fc_stn):
        p[f'stn_fw{i}'], p[f'stn_fb{i}'] = w(fi, co), b(co)
        fi = co
    p['stn_pw'] = jnp.zeros((fi, K * K), jnp.float32)   # nn.init.constant(w, 0)
    p['stn_pb'] = jnp.zeros((1, K * K), jnp.float32)    # nn.init.constant(b, 0)

    # main convs (convs2 = layers 0,1 ; convs3 = layers 2,3)
    ci = nfeat
    for i, co in enumerate(nf_conv):
        p[f'cw{i}'], p[f'cb{i}'] = w(ci, co), b(co)
        p[f'cg{i}'], p[f'cbe{i}'] = g(co), b(co)
        ci = co

    # fcs head: 320 -> 256 -> 128 -> 5 (BN on the first two)
    for i, (ci_, co) in enumerate([(320, 256), (256, 128), (128, 5)]):
        p[f'fw{i}'], p[f'fb{i}'] = w(ci_, co), b(co)
        if i < 2:
            p[f'fg{i}'], p[f'fbe{i}'] = g(co), b(co)
    return p


# --------------------------------------------------------------------------- #
# Pure-JAX reference (mirrors the PyTorch module structure exactly, f32).
# --------------------------------------------------------------------------- #
def reference_forward(x, p, *, nfeat_stn, batch, npts, nfeat):
    relu = lambda v: jnp.maximum(v, 0.0)

    def bn(h, gamma, beta, axes):
        mu = jnp.mean(h, axis=axes, keepdims=True)
        var = jnp.mean((h - mu) ** 2, axis=axes, keepdims=True)
        return (h - mu) / jnp.sqrt(var + EPS) * gamma + beta

    xp = jnp.transpose(x, (0, 2, 1))                                # (B, N, C)
    h = xp[:, :, :nfeat_stn]
    for i in range(2):
        h = relu(bn(jnp.einsum('bnc,cd->bnd', h, p[f'stn_cw{i}']) + p[f'stn_cb{i}'],
                    p[f'stn_cg{i}'], p[f'stn_cbe{i}'], (0, 1)))
    f = jnp.max(h, axis=1)
    for i in range(2):
        f = relu(jnp.dot(f, p[f'stn_fw{i}']) + p[f'stn_fb{i}'])
    t = jnp.dot(f, p['stn_pw']) + p['stn_pb']
    T = t.reshape(batch, 2, 2) + jnp.eye(2, dtype=jnp.float32)

    xy = jnp.einsum('bnc,bcd->bnd', xp[:, :, :2], T)
    h = jnp.concatenate([xy, xp[:, :, 2:]], axis=-1)
    for i in range(2):
        h = relu(bn(jnp.einsum('bnc,cd->bnd', h, p[f'cw{i}']) + p[f'cb{i}'],
                    p[f'cg{i}'], p[f'cbe{i}'], (0, 1)))
    inp2 = h
    for i in range(2, 4):
        h = relu(bn(jnp.einsum('bnc,cd->bnd', h, p[f'cw{i}']) + p[f'cb{i}'],
                    p[f'cg{i}'], p[f'cbe{i}'], (0, 1)))
    pooled = jnp.max(h, axis=1)                                     # (B, 256)
    seg = jnp.concatenate(
        [jnp.broadcast_to(pooled[:, None, :], (batch, npts, pooled.shape[-1])), inp2],
        axis=-1)
    z = seg[0]                                                      # (N, 320)
    for i in range(2):
        z = relu(bn(jnp.dot(z, p[f'fw{i}']) + p[f'fb{i}'],
                    p[f'fg{i}'], p[f'fbe{i}'], 0))
    return jnp.dot(z, p['fw2']) + p['fb2']


if __name__ == "__main__":
    # Linear(320, 256) in the head forces nf_conv[-1] + nf_conv[1] == 320.
    B, NFEAT, N = 2, 4, 128
    NFEAT_STN = 4                      # forward only well-defined when == NFEAT
    NF_CONV = [64, 64, 128, 256]
    NF_CONV_STN = [16, 32]
    NF_FC_STN = [16, 16]

    key = jax.random.PRNGKey(0)
    k_param, k_x, k_pw, k_pb = jax.random.split(key, 4)
    params = init_params(k_param, NFEAT, NF_CONV, NF_CONV_STN, NF_FC_STN)
    x = jax.random.normal(k_x, (B, NFEAT, N), jnp.float32)          # NCW, like PyTorch

    wn, ww, vs, wmeta, vmeta = pack_params(params)
    forward = make_forward(wmeta, vmeta, batch=B, npts=N, nfeat=NFEAT,
                           nfeat_stn=NFEAT_STN,
                           slab_bytes=int(wn.nbytes + ww.nbytes + vs.nbytes))

    def check(p, tag):
        wn_, ww_, vs_, _, _ = pack_params(p)
        out = jax.block_until_ready(forward(x, wn_, ww_, vs_))
        assert out.shape == (N, 5) and out.dtype == jnp.float32
        assert bool(jnp.all(jnp.isfinite(out)))
        ref = jax.block_until_ready(
            reference_forward(x, p, nfeat_stn=NFEAT_STN, batch=B, npts=N, nfeat=NFEAT))
        err = float(jnp.max(jnp.abs(out - ref)))
        # 3e-2: bf16 MXU matmuls vs the f32 reference (each layer re-normalised
        # by training-mode BN, so the drift stays ~1e-2).
        assert jnp.allclose(out, ref, rtol=3e-2, atol=3e-2), \
            f"{tag}: max abs err {err}"

    # 1) module-faithful init: proj zero-initialised -> STN transform is identity
    check(params, "zero-proj")
    # 2) non-zero proj to exercise the folded STN-transform path end to end
    p2 = dict(params)
    p2['stn_pw'] = 0.1 * jax.random.normal(k_pw, params['stn_pw'].shape, jnp.float32)
    p2['stn_pb'] = 0.1 * jax.random.normal(k_pb, params['stn_pb'].shape, jnp.float32)
    check(p2, "nonzero-proj")

    print("KERNEL_OK")
</pallas_src>

<mosaic_0001>
module attributes {stable_mosaic.version = 11 : i64} {
  func.func @_pointnet_kernel(%arg0: memref<256x4xf32, #tpu.memory_space<vmem>>, %arg1: memref<176x64xbf16, #tpu.memory_space<vmem>>, %arg2: memref<448x256xbf16, #tpu.memory_space<vmem>>, %arg3: memref<16x256xf32, #tpu.memory_space<vmem>>, %arg4: memref<128x128xf32, #tpu.memory_space<vmem>>) attributes {dimension_semantics = [], scalar_prefetch = 0 : i64, scratch_operands = 0 : i64, tpu.core_type = #tpu.core_type<tc>} {
    %c0 = arith.constant 0 : index
    %c0_0 = arith.constant 0 : index
    %0 = vector.load %arg0[%c0, %c0_0] : memref<256x4xf32, #tpu.memory_space<vmem>>, vector<256x4xf32>
    %c0_1 = arith.constant 0 : index
    %c0_2 = arith.constant 0 : index
    %1 = vector.load %arg1[%c0_1, %c0_2] : memref<176x64xbf16, #tpu.memory_space<vmem>>, vector<4x16xbf16>
    %2 = arith.truncf %0 : vector<256x4xf32> to vector<256x4xbf16>
    %cst = arith.constant dense<0.000000e+00> : vector<256x16xf32>
    %3 = tpu.matmul %2, %1, %cst {dimension_numbers = #tpu.dot_dimension_numbers<[1], [0], [0], [1], [0, 0, 1, 1], [], []>} : vector<256x4xbf16>, vector<4x16xbf16>, vector<256x16xf32> -> vector<256x16xf32>
    %c0_3 = arith.constant 0 : index
    %c0_4 = arith.constant 0 : index
    %4 = vector.load %arg3[%c0_3, %c0_4] : memref<16x256xf32, #tpu.memory_space<vmem>>, vector<1x16xf32>
    %c1 = arith.constant 1 : index
    %c0_5 = arith.constant 0 : index
    %5 = vector.load %arg3[%c1, %c0_5] : memref<16x256xf32, #tpu.memory_space<vmem>>, vector<1x16xf32>
    %cst_6 = arith.constant 3.906250e-03 : f32
    %6 = vector.broadcast %cst_6 : f32 to vector<1x256xf32>
    %cst_7 = arith.constant dense<0.000000e+00> : vector<1x16xf32>
    %7 = tpu.matmul %6, %3, %cst_7 {dimension_numbers = #tpu.dot_dimension_numbers<[1], [0], [0], [1], [0, 0, 1, 1], [], []>} : vector<1x256xf32>, vector<256x16xf32>, vector<1x16xf32> -> vector<1x16xf32>
    %8 = arith.mulf %3, %3 : vector<256x16xf32>
    %cst_8 = arith.constant dense<0.000000e+00> : vector<1x16xf32>
    %9 = tpu.matmul %6, %8, %cst_8 {dimension_numbers = #tpu.dot_dimension_numbers<[1], [0], [0], [1], [0, 0, 1, 1], [], []>} : vector<1x256xf32>, vector<256x16xf32>, vector<1x16xf32> -> vector<1x16xf32>
    %10 = arith.mulf %7, %7 : vector<1x16xf32>
    %11 = arith.subf %9, %10 : vector<1x16xf32>
    %cst_9 = arith.constant 9.99999974E-6 : f32
    %12 = vector.broadcast %cst_9 : f32 to vector<1x16xf32>
    %13 = arith.addf %11, %12 : vector<1x16xf32>
    %14 = math.rsqrt %13 : vector<1x16xf32>
    %15 = arith.mulf %14, %4 : vector<1x16xf32>
    %16 = arith.mulf %7, %15 : vector<1x16xf32>
    %17 = arith.subf %5, %16 : vector<1x16xf32>
    %18 = vector.broadcast %15 : vector<1x16xf32> to vector<256x16xf32>
    %19 = arith.mulf %3, %18 : vector<256x16xf32>
    %20 = vector.broadcast %17 : vector<1x16xf32> to vector<256x16xf32>
    %21 = arith.addf %19, %20 : vector<256x16xf32>
    %cst_10 = arith.constant 0.000000e+00 : f32
    %22 = vector.broadcast %cst_10 : f32 to vector<256x16xf32>
    %23 = arith.maximumf %21, %22 : vector<256x16xf32>
    %c16 = arith.constant 16 : index
    %c0_11 = arith.constant 0 : index
    %24 = vector.load %arg1[%c16, %c0_11] : memref<176x64xbf16, #tpu.memory_space<vmem>>, vector<16x32xbf16>
    %25 = arith.truncf %23 : vector<256x16xf32> to vector<256x16xbf16>
    %cst_12 = arith.constant dense<0.000000e+00> : vector<256x32xf32>
    %26 = tpu.matmul %25, %24, %cst_12 {dimension_numbers = #tpu.dot_dimension_numbers<[1], [0], [0], [1], [0, 0, 1, 1], [], []>} : vector<256x16xbf16>, vector<16x32xbf16>, vector<256x32xf32> -> vector<256x32xf32>
    %c2 = arith.constant 2 : index
    %c0_13 = arith.constant 0 : index
    %27 = vector.load %arg3[%c2, %c0_13] : memref<16x256xf32, #tpu.memory_space<vmem>>, vector<1x32xf32>
    %c3 = arith.constant 3 : index
    %c0_14 = arith.constant 0 : index
    %28 = vector.load %arg3[%c3, %c0_14] : memref<16x256xf32, #tpu.memory_space<vmem>>, vector<1x32xf32>
    %cst_15 = arith.constant 3.906250e-03 : f32
    %29 = vector.broadcast %cst_15 : f32 to vector<1x256xf32>
    %cst_16 = arith.constant dense<0.000000e+00> : vector<1x32xf32>
    %30 = tpu.matmul %29, %26, %cst_16 {dimension_numbers = #tpu.dot_dimension_numbers<[1], [0], [0], [1], [0, 0, 1, 1], [], []>} : vector<1x256xf32>, vector<256x32xf32>, vector<1x32xf32> -> vector<1x32xf32>
    %31 = arith.mulf %26, %26 : vector<256x32xf32>
    %cst_17 = arith.constant dense<0.000000e+00> : vector<1x32xf32>
    %32 = tpu.matmul %29, %31, %cst_17 {dimension_numbers = #tpu.dot_dimension_numbers<[1], [0], [0], [1], [0, 0, 1, 1], [], []>} : vector<1x256xf32>, vector<256x32xf32>, vector<1x32xf32> -> vector<1x32xf32>
    %33 = arith.mulf %30, %30 : vector<1x32xf32>
    %34 = arith.subf %32, %33 : vector<1x32xf32>
    %cst_18 = arith.constant 9.99999974E-6 : f32
    %35 = vector.broadcast %cst_18 : f32 to vector<1x32xf32>
    %36 = arith.addf %34, %35 : vector<1x32xf32>
    %37 = math.rsqrt %36 : vector<1x32xf32>
    %38 = arith.mulf %37, %27 : vector<1x32xf32>
    %39 = arith.mulf %30, %38 : vector<1x32xf32>
    %40 = arith.subf %28, %39 : vector<1x32xf32>
    %41 = vector.broadcast %38 : vector<1x32xf32> to vector<256x32xf32>
    %42 = arith.mulf %26, %41 : vector<256x32xf32>
    %43 = vector.broadcast %40 : vector<1x32xf32> to vector<256x32xf32>
    %44 = arith.addf %42, %43 : vector<256x32xf32>
    %cst_19 = arith.constant 0.000000e+00 : f32
    %45 = vector.broadcast %cst_19 : f32 to vector<256x32xf32>
    %46 = arith.maximumf %44, %45 : vector<256x32xf32>
    %47 = vector.extract_strided_slice %46 {offsets = [0, 0], sizes = [128, 32], strides = [1, 1]} : vector<256x32xf32> to vector<128x32xf32>
    %cst_20 = arith.constant dense<0xFF800000> : vector<32xf32>
    %48 = vector.multi_reduction <maximumf>, %47, %cst_20 [0] : vector<128x32xf32> to vector<32xf32>
    %49 = vector.shape_cast %48 : vector<32xf32> to vector<1x32xf32>
    %50 = vector.extract_strided_slice %46 {offsets = [128, 0], sizes = [128, 32], strides = [1, 1]} : vector<256x32xf32> to vector<128x32xf32>
    %cst_21 = arith.constant dense<0xFF800000> : vector<32xf32>
    %51 = vector.multi_reduction <maximumf>, %50, %cst_21 [0] : vector<128x32xf32> to vector<32xf32>
    %52 = vector.shape_cast %51 : vector<32xf32> to vector<1x32xf32>
    %53 = tpu.concatenate %49, %52 in 0 : vector<1x32xf32>, vector<1x32xf32> -> vector<2x32xf32>
    %c32 = arith.constant 32 : index
    %c0_22 = arith.constant 0 : index
    %54 = vector.load %arg1[%c32, %c0_22] : memref<176x64xbf16, #tpu.memory_space<vmem>>, vector<32x16xbf16>
    %55 = arith.truncf %53 : vector<2x32xf32> to vector<2x32xbf16>
    %cst_23 = arith.constant dense<0.000000e+00> : vector<2x16xf32>
    %56 = tpu.matmul %55, %54, %cst_23 {dimension_numbers = #tpu.dot_dimension_numbers<[1], [0], [0], [1], [0, 0, 1, 1], [], []>} : vector<2x32xbf16>, vector<32x16xbf16>, vector<2x16xf32> -> vector<2x16xf32>
    %c4 = arith.constant 4 : index
    %c0_24 = arith.constant 0 : index
    %57 = vector.load %arg3[%c4, %c0_24] : memref<16x256xf32, #tpu.memory_space<vmem>>, vector<1x16xf32>
    %58 = vector.broadcast %57 : vector<1x16xf32> to vector<2x16xf32>
    %59 = arith.addf %56, %58 : vector<2x16xf32>
    %cst_25 = arith.constant 0.000000e+00 : f32
    %60 = vector.broadcast %cst_25 : f32 to vector<2x16xf32>
    %61 = arith.maximumf %59, %60 : vector<2x16xf32>
    %c64 = arith.constant 64 : index
    %c0_26 = arith.constant 0 : index
    %62 = vector.load %arg1[%c64, %c0_26] : memref<176x64xbf16, #tpu.memory_space<vmem>>, vector<16x16xbf16>
    %63 = arith.truncf %61 : vector<2x16xf32> to vector<2x16xbf16>
    %cst_27 = arith.constant dense<0.000000e+00> : vector<2x16xf32>
    %64 = tpu.matmul %63, %62, %cst_27 {dimension_numbers = #tpu.dot_dimension_numbers<[1], [0], [0], [1], [0, 0, 1, 1], [], []>} : vector<2x16xbf16>, vector<16x16xbf16>, vector<2x16xf32> -> vector<2x16xf32>
    %c5 = arith.constant 5 : index
    %c0_28 = arith.constant 0 : index
    %65 = vector.load %arg3[%c5, %c0_28] : memref<16x256xf32, #tpu.memory_space<vmem>>, vector<1x16xf32>
    %66 = vector.broadcast %65 : vector<1x16xf32> to vector<2x16xf32>
    %67 = arith.addf %64, %66 : vector<2x16xf32>
    %cst_29 = arith.constant 0.000000e+00 : f32
    %68 = vector.broadcast %cst_29 : f32 to vector<2x16xf32>
    %69 = arith.maximumf %67, %68 : vector<2x16xf32>
    %c80 = arith.constant 80 : index
    %c0_30 = arith.constant 0 : index
    %70 = vector.load %arg1[%c80, %c0_30] : memref<176x64xbf16, #tpu.memory_space<vmem>>, vector<16x4xbf16>
    %71 = arith.truncf %69 : vector<2x16xf32> to vector<2x16xbf16>
    %cst_31 = arith.constant dense<0.000000e+00> : vector<2x4xf32>
    %72 = tpu.matmul %71, %70, %cst_31 {dimension_numbers = #tpu.dot_dimension_numbers<[1], [0], [0], [1], [0, 0, 1, 1], [], []>} : vector<2x16xbf16>, vector<16x4xbf16>, vector<2x4xf32> -> vector<2x4xf32>
    %c6 = arith.constant 6 : index
    %c0_32 = arith.constant 0 : index
    %73 = vector.load %arg3[%c6, %c0_32] : memref<16x256xf32, #tpu.memory_space<vmem>>, vector<1x4xf32>
    %74 = vector.broadcast %73 : vector<1x4xf32> to vector<2x4xf32>
    %75 = arith.addf %72, %74 : vector<2x4xf32>
    %c96 = arith.constant 96 : index
    %c0_33 = arith.constant 0 : index
    %76 = vector.load %arg1[%c96, %c0_33] : memref<176x64xbf16, #tpu.memory_space<vmem>>, vector<4x64xbf16>
    %77 = vector.extract_strided_slice %75 {offsets = [0, 0], sizes = [1, 4], strides = [1, 1]} : vector<2x4xf32> to vector<1x4xf32>
    %78 = vector.shape_cast %77 : vector<1x4xf32> to vector<1x4xf32>
    %79 = vector.broadcast %78 : vector<1x4xf32> to vector<128x4xf32>
    %80 = vector.extract_strided_slice %75 {offsets = [1, 0], sizes = [1, 4], strides = [1, 1]} : vector<2x4xf32> to vector<1x4xf32>
    %81 = vector.shape_cast %80 : vector<1x4xf32> to vector<1x4xf32>
    %82 = vector.broadcast %81 : vector<1x4xf32> to vector<128x4xf32>
    %83 = tpu.concatenate %79, %82 in 0 : vector<128x4xf32>, vector<128x4xf32> -> vector<256x4xf32>
    %84 = vector.extract_strided_slice %0 {offsets = [0, 0], sizes = [256, 1], strides = [1, 1]} : vector<256x4xf32> to vector<256x1xf32>
    %85 = vector.extract_strided_slice %0 {offsets = [0, 1], sizes = [256, 1], strides = [1, 1]} : vector<256x4xf32> to vector<256x1xf32>
    %86 = vector.extract_strided_slice %83 {offsets = [0, 0], sizes = [256, 1], strides = [1, 1]} : vector<256x4xf32> to vector<256x1xf32>
    %87 = arith.mulf %84, %86 : vector<256x1xf32>
    %88 = vector.extract_strided_slice %83 {offsets = [0, 2], sizes = [256, 1], strides = [1, 1]} : vector<256x4xf32> to vector<256x1xf32>
    %89 = arith.mulf %85, %88 : vector<256x1xf32>
    %90 = arith.addf %87, %89 : vector<256x1xf32>
    %91 = vector.extract_strided_slice %83 {offsets = [0, 1], sizes = [256, 1], strides = [1, 1]} : vector<256x4xf32> to vector<256x1xf32>
    %92 = arith.mulf %84, %91 : vector<256x1xf32>
    %93 = vector.extract_strided_slice %83 {offsets = [0, 3], sizes = [256, 1], strides = [1, 1]} : vector<256x4xf32> to vector<256x1xf32>
    %94 = arith.mulf %85, %93 : vector<256x1xf32>
    %95 = arith.addf %92, %94 : vector<256x1xf32>
    %96 = arith.truncf %0 : vector<256x4xf32> to vector<256x4xbf16>
    %cst_34 = arith.constant dense<0.000000e+00> : vector<256x64xf32>
    %97 = tpu.matmul %96, %76, %cst_34 {dimension_numbers = #tpu.dot_dimension_numbers<[1], [0], [0], [1], [0, 0, 1, 1], [], []>} : vector<256x4xbf16>, vector<4x64xbf16>, vector<256x64xf32> -> vector<256x64xf32>
    %98 = vector.extract_strided_slice %76 {offsets = [0, 0], sizes = [1, 64], strides = [1, 1]} : vector<4x64xbf16> to vector<1x64xbf16>
    %99 = arith.extf %98 : vector<1x64xbf16> to vector<1x64xf32>
    %100 = vector.broadcast %90 : vector<256x1xf32> to vector<256x64xf32>
    %101 = vector.broadcast %99 : vector<1x64xf32> to vector<256x64xf32>
    %102 = arith.mulf %100, %101 : vector<256x64xf32>
    %103 = arith.addf %97, %102 : vector<256x64xf32>
    %104 = vector.extract_strided_slice %76 {offsets = [1, 0], sizes = [1, 64], strides = [1, 1]} : vector<4x64xbf16> to vector<1x64xbf16>
    %105 = arith.extf %104 : vector<1x64xbf16> to vector<1x64xf32>
    %106 = vector.broadcast %95 : vector<256x1xf32> to vector<256x64xf32>
    %107 = vector.broadcast %105 : vector<1x64xf32> to vector<256x64xf32>
    %108 = arith.mulf %106, %107 : vector<256x64xf32>
    %109 = arith.addf %103, %108 : vector<256x64xf32>
    %c7 = arith.constant 7 : index
    %c0_35 = arith.constant 0 : index
    %110 = vector.load %arg3[%c7, %c0_35] : memref<16x256xf32, #tpu.memory_space<vmem>>, vector<1x64xf32>
    %c8 = arith.constant 8 : index
    %c0_36 = arith.constant 0 : index
    %111 = vector.load %arg3[%c8, %c0_36] : memref<16x256xf32, #tpu.memory_space<vmem>>, vector<1x64xf32>
    %cst_37 = arith.constant 3.906250e-03 : f32
    %112 = vector.broadcast %cst_37 : f32 to vector<1x256xf32>
    %cst_38 = arith.constant dense<0.000000e+00> : vector<1x64xf32>
    %113 = tpu.matmul %112, %109, %cst_38 {dimension_numbers = #tpu.dot_dimension_numbers<[1], [0], [0], [1], [0, 0, 1, 1], [], []>} : vector<1x256xf32>, vector<256x64xf32>, vector<1x64xf32> -> vector<1x64xf32>
    %114 = arith.mulf %109, %109 : vector<256x64xf32>
    %cst_39 = arith.constant dense<0.000000e+00> : vector<1x64xf32>
    %115 = tpu.matmul %112, %114, %cst_39 {dimension_numbers = #tpu.dot_dimension_numbers<[1], [0], [0], [1], [0, 0, 1, 1], [], []>} : vector<1x256xf32>, vector<256x64xf32>, vector<1x64xf32> -> vector<1x64xf32>
    %116 = arith.mulf %113, %113 : vector<1x64xf32>
    %117 = arith.subf %115, %116 : vector<1x64xf32>
    %cst_40 = arith.constant 9.99999974E-6 : f32
    %118 = vector.broadcast %cst_40 : f32 to vector<1x64xf32>
    %119 = arith.addf %117, %118 : vector<1x64xf32>
    %120 = math.rsqrt %119 : vector<1x64xf32>
    %121 = arith.mulf %120, %110 : vector<1x64xf32>
    %122 = arith.mulf %113, %121 : vector<1x64xf32>
    %123 = arith.subf %111, %122 : vector<1x64xf32>
    %124 = vector.broadcast %121 : vector<1x64xf32> to vector<256x64xf32>
    %125 = arith.mulf %109, %124 : vector<256x64xf32>
    %126 = vector.broadcast %123 : vector<1x64xf32> to vector<256x64xf32>
    %127 = arith.addf %125, %126 : vector<256x64xf32>
    %cst_41 = arith.constant 0.000000e+00 : f32
    %128 = vector.broadcast %cst_41 : f32 to vector<256x64xf32>
    %129 = arith.maximumf %127, %128 : vector<256x64xf32>
    %c112 = arith.constant 112 : index
    %c0_42 = arith.constant 0 : index
    %130 = vector.load %arg1[%c112, %c0_42] : memref<176x64xbf16, #tpu.memory_space<vmem>>, vector<64x64xbf16>
    %131 = arith.truncf %129 : vector<256x64xf32> to vector<256x64xbf16>
    %cst_43 = arith.constant dense<0.000000e+00> : vector<256x64xf32>
    %132 = tpu.matmul %131, %130, %cst_43 {dimension_numbers = #tpu.dot_dimension_numbers<[1], [0], [0], [1], [0, 0, 1, 1], [], []>} : vector<256x64xbf16>, vector<64x64xbf16>, vector<256x64xf32> -> vector<256x64xf32>
    %c9 = arith.constant 9 : index
    %c0_44 = arith.constant 0 : index
    %133 = vector.load %arg3[%c9, %c0_44] : memref<16x256xf32, #tpu.memory_space<vmem>>, vector<1x64xf32>
    %c10 = arith.constant 10 : index
    %c0_45 = arith.constant 0 : index
    %134 = vector.load %arg3[%c10, %c0_45] : memref<16x256xf32, #tpu.memory_space<vmem>>, vector<1x64xf32>
    %cst_46 = arith.constant 3.906250e-03 : f32
    %135 = vector.broadcast %cst_46 : f32 to vector<1x256xf32>
    %cst_47 = arith.constant dense<0.000000e+00> : vector<1x64xf32>
    %136 = tpu.matmul %135, %132, %cst_47 {dimension_numbers = #tpu.dot_dimension_numbers<[1], [0], [0], [1], [0, 0, 1, 1], [], []>} : vector<1x256xf32>, vector<256x64xf32>, vector<1x64xf32> -> vector<1x64xf32>
    %137 = arith.mulf %132, %132 : vector<256x64xf32>
    %cst_48 = arith.constant dense<0.000000e+00> : vector<1x64xf32>
    %138 = tpu.matmul %135, %137, %cst_48 {dimension_numbers = #tpu.dot_dimension_numbers<[1], [0], [0], [1], [0, 0, 1, 1], [], []>} : vector<1x256xf32>, vector<256x64xf32>, vector<1x64xf32> -> vector<1x64xf32>
    %139 = arith.mulf %136, %136 : vector<1x64xf32>
    %140 = arith.subf %138, %139 : vector<1x64xf32>
    %cst_49 = arith.constant 9.99999974E-6 : f32
    %141 = vector.broadcast %cst_49 : f32 to vector<1x64xf32>
    %142 = arith.addf %140, %141 : vector<1x64xf32>
    %143 = math.rsqrt %142 : vector<1x64xf32>
    %144 = arith.mulf %143, %133 : vector<1x64xf32>
    %145 = arith.mulf %136, %144 : vector<1x64xf32>
    %146 = arith.subf %134, %145 : vector<1x64xf32>
    %147 = vector.broadcast %144 : vector<1x64xf32> to vector<256x64xf32>
    %148 = arith.mulf %132, %147 : vector<256x64xf32>
    %149 = vector.broadcast %146 : vector<1x64xf32> to vector<256x64xf32>
    %150 = arith.addf %148, %149 : vector<256x64xf32>
    %cst_50 = arith.constant 0.000000e+00 : f32
    %151 = vector.broadcast %cst_50 : f32 to vector<256x64xf32>
    %152 = arith.maximumf %150, %151 : vector<256x64xf32>
    %153 = vector.extract_strided_slice %152 {offsets = [0, 0], sizes = [128, 64], strides = [1, 1]} : vector<256x64xf32> to vector<128x64xf32>
    %c0_51 = arith.constant 0 : index
    %c0_52 = arith.constant 0 : index
    %154 = vector.load %arg2[%c0_51, %c0_52] : memref<448x256xbf16, #tpu.memory_space<vmem>>, vector<64x256xbf16>
    %155 = arith.truncf %153 : vector<128x64xf32> to vector<128x64xbf16>
    %cst_53 = arith.constant dense<0.000000e+00> : vector<128x256xf32>
    %156 = tpu.matmul %155, %154, %cst_53 {dimension_numbers = #tpu.dot_dimension_numbers<[1], [0], [0], [1], [0, 0, 1, 1], [], []>} : vector<128x64xbf16>, vector<64x256xbf16>, vector<128x256xf32> -> vector<128x256xf32>
    %c11 = arith.constant 11 : index
    %c0_54 = arith.constant 0 : index
    %157 = vector.load %arg3[%c11, %c0_54] : memref<16x256xf32, #tpu.memory_space<vmem>>, vector<1x256xf32>
    %c12 = arith.constant 12 : index
    %c0_55 = arith.constant 0 : index
    %158 = vector.load %arg3[%c12, %c0_55] : memref<16x256xf32, #tpu.memory_space<vmem>>, vector<1x256xf32>
    %cst_56 = arith.constant 7.812500e-03 : f32
    %159 = vector.broadcast %cst_56 : f32 to vector<1x128xf32>
    %cst_57 = arith.constant dense<0.000000e+00> : vector<1x256xf32>
    %160 = tpu.matmul %159, %156, %cst_57 {dimension_numbers = #tpu.dot_dimension_numbers<[1], [0], [0], [1], [0, 0, 1, 1], [], []>} : vector<1x128xf32>, vector<128x256xf32>, vector<1x256xf32> -> vector<1x256xf32>
    %161 = arith.mulf %156, %156 : vector<128x256xf32>
    %cst_58 = arith.constant dense<0.000000e+00> : vector<1x256xf32>
    %162 = tpu.matmul %159, %161, %cst_58 {dimension_numbers = #tpu.dot_dimension_numbers<[1], [0], [0], [1], [0, 0, 1, 1], [], []>} : vector<1x128xf32>, vector<128x256xf32>, vector<1x256xf32> -> vector<1x256xf32>
    %163 = arith.mulf %160, %160 : vector<1x256xf32>
    %164 = arith.subf %162, %163 : vector<1x256xf32>
    %cst_59 = arith.constant 9.99999974E-6 : f32
    %165 = vector.broadcast %cst_59 : f32 to vector<1x256xf32>
    %166 = arith.addf %164, %165 : vector<1x256xf32>
    %167 = math.rsqrt %166 : vector<1x256xf32>
    %168 = arith.mulf %167, %157 : vector<1x256xf32>
    %169 = arith.mulf %160, %168 : vector<1x256xf32>
    %170 = arith.subf %158, %169 : vector<1x256xf32>
    %171 = vector.broadcast %168 : vector<1x256xf32> to vector<128x256xf32>
    %172 = arith.mulf %156, %171 : vector<128x256xf32>
    %173 = vector.broadcast %170 : vector<1x256xf32> to vector<128x256xf32>
    %174 = arith.addf %172, %173 : vector<128x256xf32>
    %cst_60 = arith.constant 0.000000e+00 : f32
    %175 = vector.broadcast %cst_60 : f32 to vector<128x256xf32>
    %176 = arith.maximumf %174, %175 : vector<128x256xf32>
    %c64_61 = arith.constant 64 : index
    %c0_62 = arith.constant 0 : index
    %177 = vector.load %arg2[%c64_61, %c0_62] : memref<448x256xbf16, #tpu.memory_space<vmem>>, vector<256x128xbf16>
    %178 = arith.truncf %176 : vector<128x256xf32> to vector<128x256xbf16>
    %cst_63 = arith.constant dense<0.000000e+00> : vector<128x128xf32>
    %179 = tpu.matmul %178, %177, %cst_63 {dimension_numbers = #tpu.dot_dimension_numbers<[1], [0], [0], [1], [0, 0, 1, 1], [], []>} : vector<128x256xbf16>, vector<256x128xbf16>, vector<128x128xf32> -> vector<128x128xf32>
    %c13 = arith.constant 13 : index
    %c0_64 = arith.constant 0 : index
    %180 = vector.load %arg3[%c13, %c0_64] : memref<16x256xf32, #tpu.memory_space<vmem>>, vector<1x128xf32>
    %c14 = arith.constant 14 : index
    %c0_65 = arith.constant 0 : index
    %181 = vector.load %arg3[%c14, %c0_65] : memref<16x256xf32, #tpu.memory_space<vmem>>, vector<1x128xf32>
    %cst_66 = arith.constant 7.812500e-03 : f32
    %182 = vector.broadcast %cst_66 : f32 to vector<1x128xf32>
    %cst_67 = arith.constant dense<0.000000e+00> : vector<1x128xf32>
    %183 = tpu.matmul %182, %179, %cst_67 {dimension_numbers = #tpu.dot_dimension_numbers<[1], [0], [0], [1], [0, 0, 1, 1], [], []>} : vector<1x128xf32>, vector<128x128xf32>, vector<1x128xf32> -> vector<1x128xf32>
    %184 = arith.mulf %179, %179 : vector<128x128xf32>
    %cst_68 = arith.constant dense<0.000000e+00> : vector<1x128xf32>
    %185 = tpu.matmul %182, %184, %cst_68 {dimension_numbers = #tpu.dot_dimension_numbers<[1], [0], [0], [1], [0, 0, 1, 1], [], []>} : vector<1x128xf32>, vector<128x128xf32>, vector<1x128xf32> -> vector<1x128xf32>
    %186 = arith.mulf %183, %183 : vector<1x128xf32>
    %187 = arith.subf %185, %186 : vector<1x128xf32>
    %cst_69 = arith.constant 9.99999974E-6 : f32
    %188 = vector.broadcast %cst_69 : f32 to vector<1x128xf32>
    %189 = arith.addf %187, %188 : vector<1x128xf32>
    %190 = math.rsqrt %189 : vector<1x128xf32>
    %191 = arith.mulf %190, %180 : vector<1x128xf32>
    %192 = arith.mulf %183, %191 : vector<1x128xf32>
    %193 = arith.subf %181, %192 : vector<1x128xf32>
    %194 = vector.broadcast %191 : vector<1x128xf32> to vector<128x128xf32>
    %195 = arith.mulf %179, %194 : vector<128x128xf32>
    %196 = vector.broadcast %193 : vector<1x128xf32> to vector<128x128xf32>
    %197 = arith.addf %195, %196 : vector<128x128xf32>
    %cst_70 = arith.constant 0.000000e+00 : f32
    %198 = vector.broadcast %cst_70 : f32 to vector<128x128xf32>
    %199 = arith.maximumf %197, %198 : vector<128x128xf32>
    %c320 = arith.constant 320 : index
    %c0_71 = arith.constant 0 : index
    %200 = vector.load %arg2[%c320, %c0_71] : memref<448x256xbf16, #tpu.memory_space<vmem>>, vector<128x128xbf16>
    %201 = arith.truncf %199 : vector<128x128xf32> to vector<128x128xbf16>
    %cst_72 = arith.constant dense<0.000000e+00> : vector<128x128xf32>
    %202 = tpu.matmul %201, %200, %cst_72 {dimension_numbers = #tpu.dot_dimension_numbers<[1], [0], [0], [1], [0, 0, 1, 1], [], []>} : vector<128x128xbf16>, vector<128x128xbf16>, vector<128x128xf32> -> vector<128x128xf32>
    %c15 = arith.constant 15 : index
    %c0_73 = arith.constant 0 : index
    %203 = vector.load %arg3[%c15, %c0_73] : memref<16x256xf32, #tpu.memory_space<vmem>>, vector<1x128xf32>
    %204 = vector.broadcast %203 : vector<1x128xf32> to vector<128x128xf32>
    %205 = arith.addf %202, %204 : vector<128x128xf32>
    %c0_74 = arith.constant 0 : index
    %c0_75 = arith.constant 0 : index
    %206 = vector.load %arg4[%c0_74, %c0_75] : memref<128x128xf32, #tpu.memory_space<vmem>>, vector<128x128xf32>
    tpu.vector_store %arg4[%c0_74, %c0_75], %205 {strides = array<i32>} : memref<128x128xf32, #tpu.memory_space<vmem>>, vector<128x128xf32>,
    return
  }
}

</mosaic_0001>

<bundles_post_ra>
// kernel: forward.1
= control target key start
LH: loop header
LB: loop body
LE: loop exit
PB: predicated region body
PF: predicated region fallthrough
CT: control target
= control target key end

     0   :  { %9 = vsyncpa [#allocation3], 0  ;;  %s5692_s15 = smov [#allocation2]   ;;  %s8305_s0 = inlined_call_operand.vmem [shape: f32[256,4], index: 0, kind: input, shape index: {}]   ;;  %s8306_s1 = inlined_call_operand.vmem [shape: bf16[176,64], index: 1, kind: input, shape index: {}]   ;;  %s8307_s2 = inlined_call_operand.hbm [shape: bf16[448,256], index: 2, kind: input, shape index: {}]   ;;  %s8308_s3 = inlined_call_operand.vmem [shape: f32[16,256], index: 3, kind: input, shape index: {}]   ;;  %s8309_s4 = inlined_call_operand.vmem [shape: f32[128,128], index: 4, kind: output, shape index: {}]  }
   0x1   :  { %s19_s16 = sshll.u32 %s5692_s15, 4  ;;  %s5668_s19 = scalar_lea.hbm %s8307_s2, 7168  ;;  %s20_s16 = int_to_ptr.vmem [resolvable:$true] %s19_s16 }
   0x2   :  { %p5669_p0 = scmp.ne.s32.totalorder %s8307_s2, %s5668_s19  ;;  %p5672_p1 = scmp.lt.u32.totalorder %s5668_s19, %s8307_s2 }
   0x4   :  { %p5674_p2 = pnand %p5672_p1, %p5669_p0 }
   0x6   :  { %5677 = shalt.err (!%p5674_p2)
}
   0x7   :  { %s5678_s24 = scalar_lea.vmem %s20_s16, 7168  ;;  %p5683_p4 = scmp.lt.s32.totalorder %s20_s16, %s20_s16 }
   0x8   :  { %p5679_p3 = scmp.ne.s32.totalorder %s20_s16, %s5678_s24  ;;  %p5684_p5 = scmp.lt.s32.totalorder %s5678_s24, %s5678_s24 }
   0xa   :  { %p5685_p6 = por %p5684_p5, %p5683_p4 }
   0xc   :  { %p5686_p7 = pnand %p5685_p6, %p5679_p3 }
   0xe   :  { %5689 = shalt.err (!%p5686_p7)
}
   0xf   :  { %s5693_s25 = smov 128   ;;  %s5694_s26 = smov 8  }
  0x10   :  { %25 = dma.hbm_to_vmem [thread:$0]  %s8307_s2, 7168, %s20_s16, [#allocation3], %s5693_s25, %s5693_s25, %s5694_s26  }
  0x11   :  { %5690 = dma.done.wait [#allocation3], 7168  }
  0x12   :  { %5691 = vsyncadd [#allocation3], 4294960128  ;;  %vm130_vm0 = vcmask 1041408   ;;  %v64_v0 = vld [vmem:[%s8306_s1] sm:$0x3]  ;;  %v33_v2 = vld [vmem:[%s8305_s0 + $0x8] sm:$0xff] }
  0x13   :  { %v32_v1 = vld [vmem:[%s8305_s0] sm:$0xff]  ;;  %vm81_vm1 = vcmask 31744   ;;  %5560 = vmatprep.subr.msk.bf16.mxu0 %vm130_vm0, %v64_v0  ;;  %5561 = vmatprep.subr.msk.bf16.mxu1 %vm130_vm0, %v64_v0  ;;  %v132_v3 = vsel %vm130_vm0, %v64_v0, 0  ;;  %v49_v6 = vld [vmem:[%s8305_s0 + $0x88] sm:$0xff]  ;;  %v34_v7 = vld [vmem:[%s8305_s0 + $0x10] sm:$0xff]  ;;  %v8310_v50 = vmov 0.00390625  }
  0x14   :  { %v5753_v4 = vpack.c.bf16 %v33_v2, %v32_v1  ;;  %v48_v5 = vld [vmem:[%s8305_s0 + $0x80] sm:$0xff]  ;;  %4925 = vmatpush3.bf16.msra.mxu0 %v132_v3  ;;  %5557 = vmatpush3.bf16.msra.mxu1 %v132_v3  ;;  %v35_v9 = vld [vmem:[%s8305_s0 + $0x18] sm:$0xff]  ;;  %v50_v10 = vld [vmem:[%s8305_s0 + $0x90] sm:$0xff]  ;;  %vm604_vm2 = vcmask 130048   ;;  %vm5697_vm3 = vmmov 0   ;;  %vm1099_vm4 = vcmask 261120  }
  0x15   :  { %v5764_v8 = vpack.c.bf16 %v49_v6, %v48_v5  ;;  %v51_v11 = vld [vmem:[%s8305_s0 + $0x98] sm:$0xff]  ;;  %v5777_v12 = vpack.c.bf16 %v35_v9, %v34_v7  ;;  %v36_v14 = vld [vmem:[%s8305_s0 + $0x20] sm:$0xff]  ;;  %v37_v15 = vld [vmem:[%s8305_s0 + $0x28] sm:$0xff]  ;;  %vm1174_vm5 = vcmask 1040384   ;;  %s5698_s13 = smov 126   ;;  %s5699_s14 = smov 127  }
  0x16   :  { %4926 = vmatprep.mubr.msk.bf16.mxu0 %vm81_vm1, %v5753_v4  ;;  %v5779_v13 = vpack.c.bf16 %v51_v11, %v50_v10  ;;  %v52_v16 = vld [vmem:[%s8305_s0 + $0xa0] sm:$0xff]  ;;  %v5792_v17 = vpack.c.bf16 %v37_v15, %v36_v14  ;;  %v53_v18 = vld [vmem:[%s8305_s0 + $0xa8] sm:$0xff]  ;;  %v38_v20 = vld [vmem:[%s8305_s0 + $0x30] sm:$0xff]  ;;  %vm2706_vm6 = vcmask 523264  }
  0x17   :  { %4942 = vmatprep.mubr.msk.bf16.mxu1 %vm81_vm1, %v5764_v8  ;;  %4927 = vmatmul.mubr.msk.bf16.vlgmr.msra.gmra.mrb[0].mxu0 %vm81_vm1, %v5777_v12  ;;  %v5801_v19 = vpack.c.bf16 %v53_v18, %v52_v16  ;;  %v39_v21 = vld [vmem:[%s8305_s0 + $0x38] sm:$0xff]  ;;  %v54_v22 = vld [vmem:[%s8305_s0 + $0xb0] sm:$0xff]  ;;  %v40_v24 = vld [vmem:[%s8305_s0 + $0x40] sm:$0xff] }
  0x18   :  { %8355 = vst [vmem:[#allocation5_spill] sm:$0xff] %v5779_v13  ;;  %4943 = vmatmul.mubr.msk.bf16.vlgmr.msra.gmra.mrb[0].mxu1 %vm81_vm1, %v5779_v13  ;;  %4930 = vmatprep.mubr.msk.bf16.mxu0 %vm81_vm1, %v5792_v17  ;;  %v55_v23 = vld [vmem:[%s8305_s0 + $0xb8] sm:$0xff]  ;;  %v41_v25 = vld [vmem:[%s8305_s0 + $0x48] sm:$0xff]  ;;  %v56_v26 = vld [vmem:[%s8305_s0 + $0xc0] sm:$0xff]  ;;  %v5831_v28 = vpack.c.bf16 %v39_v21, %v38_v20 }
  0x19   :  { %8356 = vst [vmem:[#allocation6_spill] sm:$0xff] %v5801_v19  ;;  %4946 = vmatprep.mubr.msk.bf16.mxu1 %vm81_vm1, %v5801_v19  ;;  %v57_v27 = vld [vmem:[%s8305_s0 + $0xc8] sm:$0xff]  ;;  %v5833_v29 = vpack.c.bf16 %v55_v23, %v54_v22  ;;  %v5835_v30 = vpack.c.bf16 %v41_v25, %v40_v24  ;;  %v42_v32 = vld [vmem:[%s8305_s0 + $0x50] sm:$0xff]  ;;  %v43_v33 = vld [vmem:[%s8305_s0 + $0x58] sm:$0xff] }
  0x1a   :  { %v5837_v31 = vpack.c.bf16 %v57_v27, %v56_v26  ;;  %v58_v34 = vld [vmem:[%s8305_s0 + $0xd0] sm:$0xff]  ;;  %v59_v35 = vld [vmem:[%s8305_s0 + $0xd8] sm:$0xff]  ;;  %v44_v36 = vld [vmem:[%s8305_s0 + $0x60] sm:$0xff]  ;;  %v5871_v40 = vpack.c.bf16 %v43_v33, %v42_v32 }
  0x1b   :  { %8357 = vst [vmem:[#allocation7_spill] sm:$0xff] %v5833_v29  ;;  %v45_v37 = vld [vmem:[%s8305_s0 + $0x68] sm:$0xff]  ;;  %v60_v38 = vld [vmem:[%s8305_s0 + $0xe0] sm:$0xff]  ;;  %v5873_v41 = vpack.c.bf16 %v59_v35, %v58_v34  ;;  %v46_v44 = vld [vmem:[%s8305_s0 + $0x70] sm:$0xff] }
  0x1c   :  { %8358 = vst [vmem:[#allocation8_spill] sm:$0xff] %v5837_v31  ;;  %v61_v39 = vld [vmem:[%s8305_s0 + $0xe8] sm:$0xff]  ;;  %v5875_v42 = vpack.c.bf16 %v45_v37, %v44_v36  ;;  %v47_v45 = vld [vmem:[%s8305_s0 + $0x78] sm:$0xff]  ;;  %v62_v46 = vld [vmem:[%s8305_s0 + $0xf0] sm:$0xff] }
  0x1d   :  { %8359 = vst [vmem:[#allocation9_spill] sm:$0xff] %v5873_v41  ;;  %v5877_v43 = vpack.c.bf16 %v61_v39, %v60_v38  ;;  %v63_v47 = vld [vmem:[%s8305_s0 + $0xf8] sm:$0xff]  ;;  %v5899_v48 = vpack.c.bf16 %v47_v45, %v46_v44 }
  0x1e   :  { %v5901_v49 = vpack.c.bf16 %v63_v47, %v62_v46 }
  0x1f   :  { %4931 = vmatmul.mubr.msk.bf16.gmra.mrb[4].mxu0 %vm81_vm1, %v5831_v28  ;;  %8360 = vst [vmem:[#allocation10_spill] sm:$0xff] %v5877_v43 }
  0x20   :  { %4947 = vmatmul.mubr.msk.bf16.gmra.mrb[4].mxu1 %vm81_vm1, %v5833_v29  ;;  %4934 = vmatprep.mubr.msk.bf16.mxu0 %vm81_vm1, %v5835_v30  ;;  %8361 = vst [vmem:[#allocation11_spill] sm:$0xff] %v5901_v49 }
  0x21   :  { %4950 = vmatprep.mubr.msk.bf16.mxu1 %vm81_vm1, %v5837_v31 }
  0x27   :  { %4935 = vmatmul.mubr.msk.bf16.gmra.mrb[8].mxu0 %vm81_vm1, %v5871_v40 }
  0x28   :  { %4951 = vmatmul.mubr.msk.bf16.gmra.mrb[8].mxu1 %vm81_vm1, %v5873_v41  ;;  %4938 = vmatprep.mubr.msk.bf16.mxu0 %vm81_vm1, %v5875_v42 }
  0x29   :  { %4954 = vmatprep.mubr.msk.bf16.mxu1 %vm81_vm1, %v5877_v43 }
  0x2f   :  { %4939 = vmatmul.mubr.msk.bf16.gmra.mrb[12].mxu0 %vm81_vm1, %v5899_v48 }
  0x30   :  { %4955 = vmatmul.mubr.msk.bf16.gmra.mrb[12].mxu1 %vm81_vm1, %v5901_v49  ;;  %361 = vmatprep.mubr.f32.mxu0 %v8310_v50 }
  0x31   :  { %463 = vmatprep.mubr.f32.mxu1 %v8310_v50 }
  0xea   :  { %v5909_v51 = vpop.f32.mrb[0].mxu0 }
  0xeb   :  { %v5911_v52 = vpop.f32.mrb[0].mxu1  ;;  %v369_v53 = vmul.f32 %v5909_v51, %v5909_v51  ;;  %v5915_v54 = vpop.f32.mrb[1].mxu0 }
  0xec   :  { %v5917_v55 = vpop.f32.mrb[1].mxu1  ;;  %v385_v56 = vmul.f32 %v5911_v52, %v5911_v52  ;;  %v367_v57 = vmul.f32 %v5915_v54, %v5915_v54  ;;  %v5925_v59 = vpop.f32.mrb[2].mxu0 }
  0xed   :  { %v383_v58 = vmul.f32 %v5917_v55, %v5917_v55  ;;  %v5927_v60 = vpop.f32.mrb[2].mxu1  ;;  %v5194_v61 = vpack.c.bf16 %v5925_v59, %v5909_v51  ;;  %v370_v62 = vmul.f32 %v5925_v59, %v5925_v59  ;;  %v5937_v1 = vpop.f32.mrb[3].mxu0 }
  0xee   :  { %v5192_v63 = vpack.c.bf16 %v5927_v60, %v5911_v52  ;;  %v386_v0 = vmul.f32 %v5927_v60, %v5927_v60  ;;  %v5939_v2 = vpop.f32.mrb[3].mxu1  ;;  %v5190_v3 = vpack.c.bf16 %v5937_v1, %v5915_v54  ;;  %v368_v5 = vmul.f32 %v5937_v1, %v5937_v1 }
  0xef   :  { %v5188_v6 = vpack.c.bf16 %v5939_v2, %v5917_v55  ;;  %v384_v7 = vmul.f32 %v5939_v2, %v5939_v2  ;;  %v5226_v9 = vpack.c.bf16 %v370_v62, %v369_v53 }
  0xf0   :  { %v5224_v10 = vpack.c.bf16 %v386_v0, %v385_v56  ;;  %v5222_v11 = vpack.c.bf16 %v368_v5, %v367_v57 }
  0xf1   :  { %5189 = vmatprep.subr.bf16.mxu0 %v5188_v6  ;;  %v5220_v14 = vpack.c.bf16 %v384_v7, %v383_v58 }
  0xf2   :  { %5191 = vmatpush3.bf16.msra.mxu0 %v5190_v3  ;;  %v5949_v15 = vpop.f32.mrb[4].mxu0 }
  0xf3   :  { %v5951_v16 = vpop.f32.mrb[4].mxu1  ;;  %5193 = vmatprep.subr.bf16.mxu0 %v5192_v63  ;;  %5221 = vmatprep.subr.bf16.mxu1 %v5220_v14  ;;  %v373_v18 = vmul.f32 %v5949_v15, %v5949_v15  ;;  %v5955_v20 = vpop.f32.mrb[5].mxu0 }
  0xf4   :  { %v5957_v21 = vpop.f32.mrb[5].mxu1  ;;  %5223 = vmatpush3.bf16.msra.mxu1 %v5222_v11  ;;  %v389_v22 = vmul.f32 %v5951_v16, %v5951_v16  ;;  %v371_v23 = vmul.f32 %v5955_v20, %v5955_v20  ;;  %v5965_v25 = vpop.f32.mrb[6].mxu0 }
  0xf5   :  { %v387_v24 = vmul.f32 %v5957_v21, %v5957_v21  ;;  %v5967_v26 = vpop.f32.mrb[6].mxu1  ;;  %5225 = vmatprep.subr.bf16.mxu1 %v5224_v10  ;;  %v5202_v27 = vpack.c.bf16 %v5965_v25, %v5949_v15  ;;  %v374_v32 = vmul.f32 %v5965_v25, %v5965_v25  ;;  %v5977_v35 = vpop.f32.mrb[7].mxu0 }
  0xf6   :  { %v5200_v33 = vpack.c.bf16 %v5967_v26, %v5951_v16  ;;  %v390_v34 = vmul.f32 %v5967_v26, %v5967_v26  ;;  %v5979_v36 = vpop.f32.mrb[7].mxu1  ;;  %5195 = vmatpush3.bf16.msra.mxu0 %v5194_v61  ;;  %v5198_v37 = vpack.c.bf16 %v5977_v35, %v5955_v20  ;;  %v372_v38 = vmul.f32 %v5977_v35, %v5977_v35 }
  0xf7   :  { %v5196_v39 = vpack.c.bf16 %v5979_v36, %v5957_v21  ;;  %v388_v44 = vmul.f32 %v5979_v36, %v5979_v36  ;;  %v5234_v45 = vpack.c.bf16 %v374_v32, %v373_v18 }
  0xf8   :  { %5227 = vmatpush3.bf16.msra.mxu1 %v5226_v9  ;;  %v5232_v46 = vpack.c.bf16 %v390_v34, %v389_v22  ;;  %v5230_v47 = vpack.c.bf16 %v372_v38, %v371_v23 }
  0xf9   :  { %5197 = vmatprep.subr.bf16.mxu0 %v5196_v39  ;;  %v5228_v53 = vpack.c.bf16 %v388_v44, %v387_v24 }
  0xfa   :  { %5199 = vmatpush3.bf16.msra.mxu0 %v5198_v37  ;;  %v5989_v56 = vpop.f32.mrb[8].mxu0 }
  0xfb   :  { %v5991_v57 = vpop.f32.mrb[8].mxu1  ;;  %5201 = vmatprep.subr.bf16.mxu0 %v5200_v33  ;;  %5229 = vmatprep.subr.bf16.mxu1 %v5228_v53  ;;  %v377_v58 = vmul.f32 %v5989_v56, %v5989_v56  ;;  %v5995_v61 = vpop.f32.mrb[9].mxu0 }
  0xfc   :  { %v5997_v62 = vpop.f32.mrb[9].mxu1  ;;  %5231 = vmatpush3.bf16.msra.mxu1 %v5230_v47  ;;  %v393_v63 = vmul.f32 %v5991_v57, %v5991_v57  ;;  %v375_v0 = vmul.f32 %v5995_v61, %v5995_v61  ;;  %v6005_v5 = vpop.f32.mrb[10].mxu0 }
  0xfd   :  { %v391_v3 = vmul.f32 %v5997_v62, %v5997_v62  ;;  %v6007_v6 = vpop.f32.mrb[10].mxu1  ;;  %5233 = vmatprep.subr.bf16.mxu1 %v5232_v46  ;;  %v5210_v7 = vpack.c.bf16 %v6005_v5, %v5989_v56  ;;  %v378_v9 = vmul.f32 %v6005_v5, %v6005_v5  ;;  %v6017_v14 = vpop.f32.mrb[11].mxu0 }
  0xfe   :  { %v5208_v10 = vpack.c.bf16 %v6007_v6, %v5991_v57  ;;  %v394_v11 = vmul.f32 %v6007_v6, %v6007_v6  ;;  %v6019_v18 = vpop.f32.mrb[11].mxu1  ;;  %5203 = vmatpush3.bf16.msra.mxu0 %v5202_v27  ;;  %v5206_v22 = vpack.c.bf16 %v6017_v14, %v5995_v61  ;;  %v376_v23 = vmul.f32 %v6017_v14, %v6017_v14 }
  0xff   :  { %v5204_v24 = vpack.c.bf16 %v6019_v18, %v5997_v62  ;;  %v392_v32 = vmul.f32 %v6019_v18, %v6019_v18  ;;  %v5242_v33 = vpack.c.bf16 %v378_v9, %v377_v58 }
 0x100   :  { %5235 = vmatpush3.bf16.msra.mxu1 %v5234_v45  ;;  %v5240_v34 = vpack.c.bf16 %v394_v11, %v393_v63  ;;  %v5238_v37 = vpack.c.bf16 %v376_v23, %v375_v0 }
 0x101   :  { %5205 = vmatprep.subr.bf16.mxu0 %v5204_v24  ;;  %v5236_v38 = vpack.c.bf16 %v392_v32, %v391_v3 }
 0x102   :  { %5207 = vmatpush3.bf16.msra.mxu0 %v5206_v22  ;;  %v6029_v27 = vpop.f32.mrb[12].mxu0 }
 0x103   :  { %v6031_v39 = vpop.f32.mrb[12].mxu1  ;;  %5209 = vmatprep.subr.bf16.mxu0 %v5208_v10  ;;  %5237 = vmatprep.subr.bf16.mxu1 %v5236_v38  ;;  %v381_v44 = vmul.f32 %v6029_v27, %v6029_v27  ;;  %v6035_v46 = vpop.f32.mrb[13].mxu0 }
 0x104   :  { %v6037_v47 = vpop.f32.mrb[13].mxu1  ;;  %5239 = vmatpush3.bf16.msra.mxu1 %v5238_v37  ;;  %v397_v45 = vmul.f32 %v6031_v39, %v6031_v39  ;;  %v379_v53 = vmul.f32 %v6035_v46, %v6035_v46  ;;  %v6045_v63 = vpop.f32.mrb[14].mxu0 }
 0x105   :  { %v395_v58 = vmul.f32 %v6037_v47, %v6037_v47  ;;  %v6047_v0 = vpop.f32.mrb[14].mxu1  ;;  %5241 = vmatprep.subr.bf16.mxu1 %v5240_v34  ;;  %v5218_v3 = vpack.c.bf16 %v6045_v63, %v6029_v27  ;;  %v382_v9 = vmul.f32 %v6045_v63, %v6045_v63  ;;  %v219_v22 = vpop.f32.mrb[15].mxu0 }
 0x106   :  { %v5216_v10 = vpack.c.bf16 %v6047_v0, %v6031_v39  ;;  %v398_v11 = vmul.f32 %v6047_v0, %v6047_v0  ;;  %v6057_v23 = vpop.f32.mrb[15].mxu1  ;;  %5211 = vmatpush3.bf16.msra.mxu0 %v5210_v7  ;;  %v5214_v24 = vpack.c.bf16 %v219_v22, %v6035_v46  ;;  %v380_v32 = vmul.f32 %v219_v22, %v219_v22 }
 0x107   :  { %v5212_v34 = vpack.c.bf16 %v6057_v23, %v6037_v47  ;;  %v396_v37 = vmul.f32 %v6057_v23, %v6057_v23  ;;  %v5250_v38 = vpack.c.bf16 %v382_v9, %v381_v44  ;;  %v8362_v7 = vmov 0.00390625   ;;  %v5577_v44 = vld [vmem:[%s8306_s1 + $0x8] sm:$0xff]  }
 0x108   :  { %5243 = vmatpush3.bf16.msra.mxu1 %v5242_v33  ;;  %v5248_v50 = vpack.c.bf16 %v398_v11, %v397_v45  ;;  %v5246_v49 = vpack.c.bf16 %v380_v32, %v379_v53 }
 0x109   :  { %5213 = vmatprep.subr.bf16.mxu0 %v5212_v34  ;;  %v5244_v43 = vpack.c.bf16 %v396_v37, %v395_v58 }
 0x10a   :  { %5215 = vmatpush3.bf16.msra.mxu0 %v5214_v24  ;;  %v295_v24 = vld [vmem:[%s8308_s3] ss:$0 sm:$0xff] }
 0x10b   :  { %5217 = vmatprep.subr.bf16.mxu0 %v5216_v10  ;;  %5245 = vmatprep.subr.bf16.mxu1 %v5244_v43  ;;  %v476_v10 = vlaneseq }
 0x10c   :  { %5247 = vmatpush3.bf16.msra.mxu1 %v5246_v49 }
 0x10d   :  { %5249 = vmatprep.subr.bf16.mxu1 %v5248_v50  ;;  %v6069_v11 = vshrl.u32 %v476_v10, 7 }
 0x10e   :  { %5219 = vmatpush3.bf16.msra.mxu0 %v5218_v3 }
 0x10f   :  { %4958 = vmatprep.subr.bf16.mxu0 %v5577_v44  ;;  %8363 = vst [vmem:[#allocation12_spill] sm:$0xff] %v6069_v11  ;;  %v6075_v32 = vsub.s32 0, %v6069_v11 }
 0x110   :  { %5251 = vmatpush3.bf16.msra.mxu1 %v5250_v38  ;;  %v296_v38 = vld [vmem:[%s8308_s3 + $0x1] ss:$0 sm:$0xff] }
 0x111   :  { %362 = vmatmul.mubr.f32.vlgmr.msra.gmra.mrb[16].mxu0 %v8362_v7  ;;  %5558 = vmatprep.subr.bf16.mxu1 %v5577_v44  ;;  %8364 = vst [vmem:[#allocation13_spill] sm:$0xff] %v6075_v32 }
 0x112   :  { %4959 = vmatpush3.bf16.msra.mxu0 %v5577_v44 }
 0x113   :  { %464 = vmatmul.mubr.f32.vlgmr.msra.gmra.mrb[16].mxu1 %v8362_v7 }
 0x114   :  { %5559 = vmatpush3.bf16.msra.mxu1 %v5577_v44 }
 0x1e4   :  { %v4501_v33 = vpop.f32.mrb[16].mxu0 }
 0x1e5   :  { %v4502_v45 = vpop.f32.mrb[17].mxu0 }
 0x1e6   :  { %v4503_v53 = vadd.f32 %v4502_v45, %v4501_v33  ;;  %v4536_v43 = vpop.f32.mrb[16].mxu1 }
 0x1e7   :  { %v4537_v49 = vpop.f32.mrb[17].mxu1 }
 0x1e8   :  { %v469_v50 = vmul.f32 %v4503_v53, %v4503_v53  ;;  %v4538_v58 = vadd.f32 %v4537_v49, %v4536_v43 }
 0x1ea   :  { %v470_v3 = vsub.f32 %v4538_v58, %v469_v50 }
 0x1ec   :  { %v471_v9 = vadd.f32 1e-05, %v470_v3 }
 0x1ee   :  { %5622 = vrsqrt.f32 %v471_v9 }
 0x1f8   :  { %v5623_v34 = vpop.eup %5622 }
 0x1f9   :  { %v473_v37 = vmul.f32 %v5623_v34, %v295_v24 }
 0x1fb   :  { %v474_v44 = vmul.f32 %v4503_v53, %v473_v37  ;;  %v479_v33 = vrot.slane %v473_v37, %v6075_v32 }
 0x1fd   :  { %v475_v45 = vsub.f32 %v296_v38, %v474_v44  ;;  %v480_v43 = vmul.f32 %v479_v33, %v5915_v54  ;;  %v481_v49 = vmul.f32 %v479_v33, %v5937_v1  ;;  %v482_v50 = vmul.f32 %v5909_v51, %v479_v33 }
 0x1fe   :  { %v483_v58 = vmul.f32 %v5925_v59, %v479_v33  ;;  %v484_v3 = vmul.f32 %v479_v33, %v5955_v20  ;;  %v485_v9 = vmul.f32 %v479_v33, %v5977_v35  ;;  %v486_v10 = vmul.f32 %v5949_v15, %v479_v33 }
 0x1ff   :  { %v515_v24 = vrot.slane %v475_v45, %v6075_v32  ;;  %v487_v53 = vmul.f32 %v5965_v25, %v479_v33  ;;  %v488_v34 = vmul.f32 %v479_v33, %v5995_v61  ;;  %v489_v54 = vmul.f32 %v479_v33, %v6017_v14 }
 0x200   :  { %v490_v1 = vmul.f32 %v5989_v56, %v479_v33  ;;  %v491_v51 = vmul.f32 %v6005_v5, %v479_v33  ;;  %v492_v59 = vmul.f32 %v479_v33, %v6035_v46  ;;  %v493_v37 = vmul.f32 %v479_v33, %v219_v22 }
 0x201   :  { %v494_v20 = vmul.f32 %v6029_v27, %v479_v33  ;;  %v495_v35 = vmul.f32 %v6045_v63, %v479_v33  ;;  %v496_v15 = vmul.f32 %v479_v33, %v5917_v55  ;;  %v497_v38 = vmul.f32 %v479_v33, %v5939_v2 }
 0x202   :  { %v498_v25 = vmul.f32 %v5911_v52, %v479_v33  ;;  %v499_v61 = vmul.f32 %v5927_v60, %v479_v33  ;;  %v500_v14 = vmul.f32 %v479_v33, %v5957_v21  ;;  %v501_v56 = vmul.f32 %v479_v33, %v5979_v36 }
 0x203   :  { %v502_v5 = vmul.f32 %v5951_v16, %v479_v33  ;;  %v503_v46 = vmul.f32 %v5967_v26, %v479_v33  ;;  %v504_v27 = vmul.f32 %v479_v33, %v5997_v62  ;;  %v505_v63 = vmul.f32 %v479_v33, %v6019_v18 }
 0x204   :  { %v506_v55 = vmul.f32 %v5991_v57, %v479_v33  ;;  %v507_v2 = vmul.f32 %v6007_v6, %v479_v33  ;;  %v508_v52 = vmul.f32 %v479_v33, %v6037_v47  ;;  %v509_v60 = vmul.f32 %v479_v33, %v6057_v23 }
 0x205   :  { %v510_v21 = vmul.f32 %v6031_v39, %v479_v33  ;;  %v511_v36 = vmul.f32 %v6047_v0, %v479_v33  ;;  %v6113_v22 = vadd.f32 %v515_v24, %v480_v43  ;;  %v6115_v16 = vadd.f32 %v515_v24, %v481_v49 }
 0x206   :  { %v6117_v26 = vadd.f32 %v515_v24, %v482_v50  ;;  %v6119_v62 = vadd.f32 %v515_v24, %v483_v58  ;;  %v6121_v18 = vadd.f32 %v515_v24, %v484_v3  ;;  %v6123_v57 = vadd.f32 %v515_v24, %v485_v9 }
 0x207   :  { %v6125_v6 = vadd.f32 %v515_v24, %v486_v10  ;;  %v6127_v47 = vadd.f32 %v515_v24, %v487_v53  ;;  %v6129_v23 = vadd.f32 %v515_v24, %v488_v34  ;;  %v6131_v39 = vadd.f32 %v515_v24, %v489_v54 }
 0x208   :  { %v6133_v0 = vadd.f32 %v515_v24, %v490_v1  ;;  %v6135_v44 = vadd.f32 %v515_v24, %v491_v51  ;;  %v6137_v33 = vadd.f32 %v515_v24, %v492_v59  ;;  %v6139_v45 = vadd.f32 %v515_v24, %v493_v37 }
 0x209   :  { %v6141_v43 = vadd.f32 %v515_v24, %v494_v20  ;;  %v6143_v49 = vadd.f32 %v515_v24, %v495_v35  ;;  %v532_v50 = vadd.f32 %v515_v24, %v496_v15  ;;  %v533_v58 = vadd.f32 %v515_v24, %v497_v38 }
 0x20a   :  { %v534_v3 = vadd.f32 %v515_v24, %v498_v25  ;;  %v535_v9 = vadd.f32 %v515_v24, %v499_v61  ;;  %v536_v10 = vadd.f32 %v515_v24, %v500_v14  ;;  %v537_v53 = vadd.f32 %v515_v24, %v501_v56 }
 0x20b   :  { %v538_v34 = vadd.f32 %v515_v24, %v502_v5  ;;  %v539_v54 = vadd.f32 %v515_v24, %v503_v46  ;;  %v540_v1 = vadd.f32 %v515_v24, %v504_v27  ;;  %v541_v41 = vadd.f32 %v515_v24, %v505_v63 }
 0x20c   :  { %v542_v51 = vadd.f32 %v515_v24, %v506_v55  ;;  %v543_v31 = vadd.f32 %v515_v24, %v507_v2  ;;  %v544_v59 = vadd.f32 %v515_v24, %v508_v52  ;;  %v545_v29 = vadd.f32 %v515_v24, %v509_v60 }
 0x20d   :  { %v546_v37 = vadd.f32 %v515_v24, %v510_v21  ;;  %v547_v19 = vadd.f32 %v515_v24, %v511_v36  ;;  %v548_v20 = vmax.f32 %v6113_v22, 0.0  ;;  %v549_v35 = vmax.f32 %v6115_v16, 0.0 }
 0x20e   :  { %v550_v15 = vmax.f32 %v6117_v26, 0.0  ;;  %v551_v38 = vmax.f32 %v6119_v62, 0.0  ;;  %v552_v25 = vmax.f32 %v6121_v18, 0.0  ;;  %v553_v61 = vmax.f32 %v6123_v57, 0.0 }
 0x20f   :  { %v554_v14 = vmax.f32 %v6125_v6, 0.0  ;;  %v555_v56 = vmax.f32 %v6127_v47, 0.0  ;;  %v556_v5 = vmax.f32 %v6129_v23, 0.0  ;;  %v557_v24 = vmax.f32 %v6131_v39, 0.0 }
 0x210   :  { %v558_v46 = vmax.f32 %v6133_v0, 0.0  ;;  %v559_v27 = vmax.f32 %v6135_v44, 0.0  ;;  %v560_v63 = vmax.f32 %v6137_v33, 0.0  ;;  %v561_v55 = vmax.f32 %v6139_v45, 0.0 }
 0x211   :  { %v562_v2 = vmax.f32 %v6141_v43, 0.0  ;;  %v563_v52 = vmax.f32 %v6143_v49, 0.0  ;;  %v564_v60 = vmax.f32 %v532_v50, 0.0  ;;  %v565_v21 = vmax.f32 %v533_v58, 0.0 }
 0x212   :  { %v566_v36 = vmax.f32 %v534_v3, 0.0  ;;  %v567_v22 = vmax.f32 %v535_v9, 0.0  ;;  %v568_v16 = vmax.f32 %v536_v10, 0.0  ;;  %v569_v26 = vmax.f32 %v537_v53, 0.0 }
 0x213   :  { %v570_v62 = vmax.f32 %v538_v34, 0.0  ;;  %v571_v18 = vmax.f32 %v539_v54, 0.0  ;;  %v572_v57 = vmax.f32 %v540_v1, 0.0  ;;  %v573_v6 = vmax.f32 %v541_v41, 0.0 }
 0x214   :  { %v574_v47 = vmax.f32 %v542_v51, 0.0  ;;  %v575_v23 = vmax.f32 %v543_v31, 0.0  ;;  %v576_v39 = vmax.f32 %v544_v59, 0.0  ;;  %v577_v0 = vmax.f32 %v545_v29, 0.0 }
 0x215   :  { %v578_v44 = vmax.f32 %v546_v37, 0.0  ;;  %v579_v33 = vmax.f32 %v547_v19, 0.0  ;;  %v583_v45 = vpack.c.bf16 %v551_v38, %v550_v15  ;;  %v591_v43 = vpack.c.bf16 %v567_v22, %v566_v36 }
 0x216   :  { %v582_v13 = vpack.c.bf16 %v549_v35, %v548_v20  ;;  %v590_v49 = vpack.c.bf16 %v565_v21, %v564_v60  ;;  %v584_v50 = vpack.c.bf16 %v553_v61, %v552_v25  ;;  %v592_v58 = vpack.c.bf16 %v569_v26, %v568_v16 }
 0x217   :  { %v585_v3 = vpack.c.bf16 %v555_v56, %v554_v14  ;;  %v593_v9 = vpack.c.bf16 %v571_v18, %v570_v62  ;;  %v586_v10 = vpack.c.bf16 %v557_v24, %v556_v5  ;;  %v594_v53 = vpack.c.bf16 %v573_v6, %v572_v57 }
 0x218   :  { %4960 = vmatprep.mubr.msk.bf16.mxu0 %vm604_vm2, %v582_v13  ;;  %4976 = vmatprep.mubr.msk.bf16.mxu1 %vm604_vm2, %v590_v49  ;;  %v587_v41 = vpack.c.bf16 %v559_v27, %v558_v46  ;;  %v595_v31 = vpack.c.bf16 %v575_v23, %v574_v47  ;;  %v588_v34 = vpack.c.bf16 %v561_v55, %v560_v63 }
 0x219   :  { %4961 = vmatmul.mubr.msk.bf16.vlgmr.msra.gmra.mrb[20].mxu0 %vm604_vm2, %v583_v45  ;;  %4977 = vmatmul.mubr.msk.bf16.vlgmr.msra.gmra.mrb[20].mxu1 %vm604_vm2, %v591_v43  ;;  %v596_v19 = vpack.c.bf16 %v577_v0, %v576_v39  ;;  %v589_v29 = vpack.c.bf16 %v563_v52, %v562_v2  ;;  %v597_v54 = vpack.c.bf16 %v579_v33, %v578_v44 }
 0x21a   :  { %4964 = vmatprep.mubr.msk.bf16.mxu0 %vm604_vm2, %v584_v50  ;;  %4980 = vmatprep.mubr.msk.bf16.mxu1 %vm604_vm2, %v592_v58 }
 0x221   :  { %4965 = vmatmul.mubr.msk.bf16.gmra.mrb[24].mxu0 %vm604_vm2, %v585_v3  ;;  %4981 = vmatmul.mubr.msk.bf16.gmra.mrb[24].mxu1 %vm604_vm2, %v593_v9 }
 0x222   :  { %4968 = vmatprep.mubr.msk.bf16.mxu0 %vm604_vm2, %v586_v10  ;;  %4984 = vmatprep.mubr.msk.bf16.mxu1 %vm604_vm2, %v594_v53 }
 0x229   :  { %4969 = vmatmul.mubr.msk.bf16.gmra.mrb[28].mxu0 %vm604_vm2, %v587_v41  ;;  %4985 = vmatmul.mubr.msk.bf16.gmra.mrb[28].mxu1 %vm604_vm2, %v595_v31 }
 0x22a   :  { %4972 = vmatprep.mubr.msk.bf16.mxu0 %vm604_vm2, %v588_v34  ;;  %4988 = vmatprep.mubr.msk.bf16.mxu1 %vm604_vm2, %v596_v19 }
 0x231   :  { %4973 = vmatmul.mubr.msk.bf16.gmra.mrb[32].mxu0 %vm604_vm2, %v589_v29  ;;  %4989 = vmatmul.mubr.msk.bf16.gmra.mrb[32].mxu1 %vm604_vm2, %v597_v54 }
 0x232   :  { %880 = vmatprep.mubr.f32.mxu0 %v8362_v7  ;;  %982 = vmatprep.mubr.f32.mxu1 %v8362_v7 }
 0x2ec   :  { %v6179_v13 = vpop.f32.mrb[20].mxu0  ;;  %v6181_v1 = vpop.f32.mrb[20].mxu1 }
 0x2ed   :  { %v6183_v51 = vpop.f32.mrb[21].mxu0  ;;  %v6185_v59 = vpop.f32.mrb[21].mxu1  ;;  %v888_v37 = vmul.f32 %v6179_v13, %v6179_v13  ;;  %v904_v20 = vmul.f32 %v6181_v1, %v6181_v1 }
 0x2ee   :  { %v886_v35 = vmul.f32 %v6183_v51, %v6183_v51  ;;  %v902_v15 = vmul.f32 %v6185_v59, %v6185_v59  ;;  %v6195_v38 = vpop.f32.mrb[22].mxu0  ;;  %v6197_v25 = vpop.f32.mrb[22].mxu1 }
 0x2ef   :  { %v5258_v61 = vpack.c.bf16 %v6195_v38, %v6179_v13  ;;  %v889_v14 = vmul.f32 %v6195_v38, %v6195_v38  ;;  %v5256_v56 = vpack.c.bf16 %v6197_v25, %v6181_v1  ;;  %v905_v5 = vmul.f32 %v6197_v25, %v6197_v25  ;;  %v6207_v24 = vpop.f32.mrb[23].mxu0  ;;  %v6209_v46 = vpop.f32.mrb[23].mxu1 }
 0x2f0   :  { %v5254_v27 = vpack.c.bf16 %v6207_v24, %v6183_v51  ;;  %v887_v63 = vmul.f32 %v6207_v24, %v6207_v24  ;;  %v5252_v55 = vpack.c.bf16 %v6209_v46, %v6185_v59  ;;  %v903_v2 = vmul.f32 %v6209_v46, %v6209_v46 }
 0x2f1   :  { %v5290_v52 = vpack.c.bf16 %v889_v14, %v888_v37  ;;  %v5288_v60 = vpack.c.bf16 %v905_v5, %v904_v20 }
 0x2f2   :  { %v5286_v21 = vpack.c.bf16 %v887_v63, %v886_v35  ;;  %5253 = vmatprep.subr.bf16.mxu0 %v5252_v55  ;;  %v5284_v36 = vpack.c.bf16 %v903_v2, %v902_v15 }
 0x2f3   :  { %5255 = vmatpush3.bf16.msra.mxu0 %v5254_v27 }
 0x2f4   :  { %v6219_v22 = vpop.f32.mrb[24].mxu0  ;;  %v6221_v16 = vpop.f32.mrb[24].mxu1  ;;  %5257 = vmatprep.subr.bf16.mxu0 %v5256_v56  ;;  %5285 = vmatprep.subr.bf16.mxu1 %v5284_v36 }
 0x2f5   :  { %v6223_v26 = vpop.f32.mrb[25].mxu0  ;;  %v6225_v62 = vpop.f32.mrb[25].mxu1  ;;  %5287 = vmatpush3.bf16.msra.mxu1 %v5286_v21  ;;  %v892_v18 = vmul.f32 %v6219_v22, %v6219_v22  ;;  %v908_v57 = vmul.f32 %v6221_v16, %v6221_v16 }
 0x2f6   :  { %v890_v6 = vmul.f32 %v6223_v26, %v6223_v26  ;;  %v906_v47 = vmul.f32 %v6225_v62, %v6225_v62  ;;  %v6235_v23 = vpop.f32.mrb[26].mxu0  ;;  %v6237_v39 = vpop.f32.mrb[26].mxu1  ;;  %5289 = vmatprep.subr.bf16.mxu1 %v5288_v60 }
 0x2f7   :  { %v5266_v0 = vpack.c.bf16 %v6235_v23, %v6219_v22  ;;  %v893_v44 = vmul.f32 %v6235_v23, %v6235_v23  ;;  %v5264_v33 = vpack.c.bf16 %v6237_v39, %v6221_v16  ;;  %v909_v45 = vmul.f32 %v6237_v39, %v6237_v39  ;;  %v6247_v43 = vpop.f32.mrb[27].mxu0  ;;  %v6249_v49 = vpop.f32.mrb[27].mxu1  ;;  %5259 = vmatpush3.bf16.msra.mxu0 %v5258_v61 }
 0x2f8   :  { %v5262_v50 = vpack.c.bf16 %v6247_v43, %v6223_v26  ;;  %v891_v58 = vmul.f32 %v6247_v43, %v6247_v43  ;;  %v5260_v3 = vpack.c.bf16 %v6249_v49, %v6225_v62  ;;  %v907_v9 = vmul.f32 %v6249_v49, %v6249_v49 }
 0x2f9   :  { %v5298_v10 = vpack.c.bf16 %v893_v44, %v892_v18  ;;  %5291 = vmatpush3.bf16.msra.mxu1 %v5290_v52  ;;  %v5296_v53 = vpack.c.bf16 %v909_v45, %v908_v57 }
 0x2fa   :  { %v5294_v41 = vpack.c.bf16 %v891_v58, %v890_v6  ;;  %5261 = vmatprep.subr.bf16.mxu0 %v5260_v3  ;;  %v5292_v31 = vpack.c.bf16 %v907_v9, %v906_v47 }
 0x2fb   :  { %5263 = vmatpush3.bf16.msra.mxu0 %v5262_v50 }
 0x2fc   :  { %v6259_v34 = vpop.f32.mrb[28].mxu0  ;;  %v6261_v19 = vpop.f32.mrb[28].mxu1  ;;  %5265 = vmatprep.subr.bf16.mxu0 %v5264_v33  ;;  %5293 = vmatprep.subr.bf16.mxu1 %v5292_v31 }
 0x2fd   :  { %v6263_v29 = vpop.f32.mrb[29].mxu0  ;;  %v6265_v54 = vpop.f32.mrb[29].mxu1  ;;  %5295 = vmatpush3.bf16.msra.mxu1 %v5294_v41  ;;  %v896_v37 = vmul.f32 %v6259_v34, %v6259_v34  ;;  %v912_v20 = vmul.f32 %v6261_v19, %v6261_v19 }
 0x2fe   :  { %v894_v35 = vmul.f32 %v6263_v29, %v6263_v29  ;;  %v910_v15 = vmul.f32 %v6265_v54, %v6265_v54  ;;  %v6275_v61 = vpop.f32.mrb[30].mxu0  ;;  %v6277_v14 = vpop.f32.mrb[30].mxu1  ;;  %5297 = vmatprep.subr.bf16.mxu1 %v5296_v53 }
 0x2ff   :  { %v5274_v56 = vpack.c.bf16 %v6275_v61, %v6259_v34  ;;  %v897_v5 = vmul.f32 %v6275_v61, %v6275_v61  ;;  %v5272_v27 = vpack.c.bf16 %v6277_v14, %v6261_v19  ;;  %v913_v63 = vmul.f32 %v6277_v14, %v6277_v14  ;;  %v6287_v55 = vpop.f32.mrb[31].mxu0  ;;  %v6289_v2 = vpop.f32.mrb[31].mxu1  ;;  %5267 = vmatpush3.bf16.msra.mxu0 %v5266_v0 }
 0x300   :  { %v5270_v52 = vpack.c.bf16 %v6287_v55, %v6263_v29  ;;  %v895_v60 = vmul.f32 %v6287_v55, %v6287_v55  ;;  %v5268_v21 = vpack.c.bf16 %v6289_v2, %v6265_v54  ;;  %v911_v36 = vmul.f32 %v6289_v2, %v6289_v2 }
 0x301   :  { %v5306_v18 = vpack.c.bf16 %v897_v5, %v896_v37  ;;  %5299 = vmatpush3.bf16.msra.mxu1 %v5298_v10  ;;  %v5304_v57 = vpack.c.bf16 %v913_v63, %v912_v20 }
 0x302   :  { %v5302_v6 = vpack.c.bf16 %v895_v60, %v894_v35  ;;  %5269 = vmatprep.subr.bf16.mxu0 %v5268_v21  ;;  %v5300_v47 = vpack.c.bf16 %v911_v36, %v910_v15 }
 0x303   :  { %5271 = vmatpush3.bf16.msra.mxu0 %v5270_v52 }
 0x304   :  { %v6299_v0 = vpop.f32.mrb[32].mxu0  ;;  %v6301_v44 = vpop.f32.mrb[32].mxu1  ;;  %5273 = vmatprep.subr.bf16.mxu0 %v5272_v27  ;;  %5301 = vmatprep.subr.bf16.mxu1 %v5300_v47 }
 0x305   :  { %v6303_v33 = vpop.f32.mrb[33].mxu0  ;;  %v6305_v45 = vpop.f32.mrb[33].mxu1  ;;  %5303 = vmatpush3.bf16.msra.mxu1 %v5302_v6  ;;  %v900_v50 = vmul.f32 %v6299_v0, %v6299_v0  ;;  %v916_v58 = vmul.f32 %v6301_v44, %v6301_v44  ;;  %v5579_v6 = vld [vmem:[%s8306_s1 + $0x18] sm:$0xff]  }
 0x306   :  { %v898_v3 = vmul.f32 %v6303_v33, %v6303_v33  ;;  %v914_v9 = vmul.f32 %v6305_v45, %v6305_v45  ;;  %v6315_v10 = vpop.f32.mrb[34].mxu0  ;;  %v6317_v53 = vpop.f32.mrb[34].mxu1  ;;  %5305 = vmatprep.subr.bf16.mxu1 %v5304_v57 }
 0x307   :  { %v5282_v41 = vpack.c.bf16 %v6315_v10, %v6299_v0  ;;  %v901_v31 = vmul.f32 %v6315_v10, %v6315_v10  ;;  %v5280_v37 = vpack.c.bf16 %v6317_v53, %v6301_v44  ;;  %v917_v20 = vmul.f32 %v6317_v53, %v6317_v53  ;;  %v6327_v35 = vpop.f32.mrb[35].mxu0  ;;  %v6329_v15 = vpop.f32.mrb[35].mxu1  ;;  %5275 = vmatpush3.bf16.msra.mxu0 %v5274_v56  ;;  %v5578_v56 = vld [vmem:[%s8306_s1 + $0x10] sm:$0xff]  }
 0x308   :  { %v5278_v5 = vpack.c.bf16 %v6327_v35, %v6303_v33  ;;  %v899_v27 = vmul.f32 %v6327_v35, %v6327_v35  ;;  %v5276_v63 = vpack.c.bf16 %v6329_v15, %v6305_v45  ;;  %v915_v52 = vmul.f32 %v6329_v15, %v6329_v15 }
 0x309   :  { %v5314_v60 = vpack.c.bf16 %v901_v31, %v900_v50  ;;  %5307 = vmatpush3.bf16.msra.mxu1 %v5306_v18  ;;  %v5312_v21 = vpack.c.bf16 %v917_v20, %v916_v58  ;;  %v8319_v18 = vmov 0.0   ;;  %v814_v20 = vld [vmem:[%s8308_s3 + $0x2] ss:$0 sm:$0xff] }
 0x30a   :  { %v5310_v36 = vpack.c.bf16 %v899_v27, %v898_v3  ;;  %5277 = vmatprep.subr.bf16.mxu0 %v5276_v63  ;;  %v5308_v57 = vpack.c.bf16 %v915_v52, %v914_v9  ;;  %v815_v63 = vld [vmem:[%s8308_s3 + $0x3] ss:$0 sm:$0xff] }
 0x30b   :  { %5279 = vmatpush3.bf16.msra.mxu0 %v5278_v5 }
 0x30c   :  { %5281 = vmatprep.subr.bf16.mxu0 %v5280_v37  ;;  %5309 = vmatprep.subr.bf16.mxu1 %v5308_v57 }
 0x30d   :  { %5311 = vmatpush3.bf16.msra.mxu1 %v5310_v36 }
 0x30e   :  { %5313 = vmatprep.subr.bf16.mxu1 %v5312_v21 }
 0x30f   :  { %5283 = vmatpush3.bf16.msra.mxu0 %v5282_v41 }
 0x310   :  { %4992 = vmatprep.subr.bf16.mxu0 %v8319_v18 }
 0x311   :  { %5315 = vmatpush3.bf16.msra.mxu1 %v5314_v60 }
 0x312   :  { %881 = vmatmul.mubr.f32.vlgmr.msra.gmra.mrb[18].mxu0 %v8362_v7 }
 0x313   :  { %4996 = vmatprep.mubr.msk.bf16.mxu0 %vm5697_vm3, %v8319_v18  ;;  %4993 = vmatpush3.bf16.msra.mxu0 %v5578_v56 }
 0x314   :  { %983 = vmatmul.mubr.f32.vlgmr.msra.gmra.mrb[18].mxu1 %v8362_v7  ;;  %4994 = vmatprep.subr.bf16.mxu0 %v8319_v18 }
 0x315   :  { %5014 = vmatprep.mubr.msk.bf16.mxu1 %vm81_vm1, %v5753_v4 }
 0x317   :  { %4995 = vmatpush3.bf16.msra.mxu0 %v5579_v6 }
 0x318   :  { %5000 = vmatprep.subr.bf16.mxu0 %v8319_v18 }
 0x3e5   :  { %v4588_v4 = vpop.f32.mrb[18].mxu0 }
 0x3e6   :  { %v4589_v47 = vpop.f32.mrb[19].mxu0 }
 0x3e7   :  { %v4590_v50 = vadd.f32 %v4589_v47, %v4588_v4  ;;  %v4623_v58 = vpop.f32.mrb[18].mxu1 }
 0x3e8   :  { %v4624_v3 = vpop.f32.mrb[19].mxu1 }
 0x3e9   :  { %v988_v9 = vmul.f32 %v4590_v50, %v4590_v50  ;;  %v4625_v41 = vadd.f32 %v4624_v3, %v4623_v58 }
 0x3eb   :  { %v989_v31 = vsub.f32 %v4625_v41, %v988_v9 }
 0x3ed   :  { %v990_v37 = vadd.f32 1e-05, %v989_v31 }
 0x3ef   :  { %5624 = vrsqrt.f32 %v990_v37 }
 0x3f9   :  { %v5625_v5 = vpop.eup %5624 }
 0x3fa   :  { %v992_v27 = vmul.f32 %v5625_v5, %v814_v20 }
 0x3fc   :  { %v993_v52 = vmul.f32 %v4590_v50, %v992_v27  ;;  %v998_v60 = vrot.slane %v992_v27, %v6075_v32 }
 0x3fe   :  { %v994_v21 = vsub.f32 %v815_v63, %v993_v52  ;;  %v999_v36 = vmul.f32 %v998_v60, %v6183_v51  ;;  %v1000_v57 = vmul.f32 %v998_v60, %v6207_v24  ;;  %v1001_v56 = vmul.f32 %v6179_v13, %v998_v60 }
 0x3ff   :  { %v1002_v6 = vmul.f32 %v6195_v38, %v998_v60  ;;  %v1003_v4 = vmul.f32 %v998_v60, %v6223_v26  ;;  %v1004_v47 = vmul.f32 %v998_v60, %v6247_v43  ;;  %v1005_v58 = vmul.f32 %v6219_v22, %v998_v60 }
 0x400   :  { %v1034_v3 = vrot.slane %v994_v21, %v6075_v32  ;;  %v1006_v50 = vmul.f32 %v6235_v23, %v998_v60  ;;  %v1007_v9 = vmul.f32 %v998_v60, %v6263_v29  ;;  %v1008_v51 = vmul.f32 %v998_v60, %v6287_v55 }
 0x401   :  { %v1009_v24 = vmul.f32 %v6259_v34, %v998_v60  ;;  %v1010_v13 = vmul.f32 %v6275_v61, %v998_v60  ;;  %v1011_v38 = vmul.f32 %v998_v60, %v6303_v33  ;;  %v1012_v26 = vmul.f32 %v998_v60, %v6327_v35 }
 0x402   :  { %v1013_v43 = vmul.f32 %v6299_v0, %v998_v60  ;;  %v1014_v22 = vmul.f32 %v6315_v10, %v998_v60  ;;  %v1015_v41 = vmul.f32 %v998_v60, %v6185_v59  ;;  %v1016_v23 = vmul.f32 %v998_v60, %v6209_v46 }
 0x403   :  { %v1017_v29 = vmul.f32 %v6181_v1, %v998_v60  ;;  %v1018_v55 = vmul.f32 %v6197_v25, %v998_v60  ;;  %v1019_v34 = vmul.f32 %v998_v60, %v6225_v62  ;;  %v1020_v61 = vmul.f32 %v998_v60, %v6249_v49 }
 0x404   :  { %v1021_v33 = vmul.f32 %v6221_v16, %v998_v60  ;;  %v1022_v35 = vmul.f32 %v6237_v39, %v998_v60  ;;  %v1023_v0 = vmul.f32 %v998_v60, %v6265_v54  ;;  %v1024_v10 = vmul.f32 %v998_v60, %v6289_v2 }
 0x405   :  { %v1025_v59 = vmul.f32 %v6261_v19, %v998_v60  ;;  %v1026_v46 = vmul.f32 %v6277_v14, %v998_v60  ;;  %v1027_v1 = vmul.f32 %v998_v60, %v6305_v45  ;;  %v1028_v25 = vmul.f32 %v998_v60, %v6329_v15 }
 0x406   :  { %v1029_v62 = vmul.f32 %v6301_v44, %v998_v60  ;;  %v1030_v49 = vmul.f32 %v6317_v53, %v998_v60  ;;  %v6394_v31 = vadd.f32 %v1034_v3, %v999_v36  ;;  %v6396_v16 = vadd.f32 %v1034_v3, %v1000_v57 }
 0x407   :  { %v6398_v39 = vadd.f32 %v1034_v3, %v1001_v56  ;;  %v6400_v54 = vadd.f32 %v1034_v3, %v1002_v6  ;;  %v6402_v2 = vadd.f32 %v1034_v3, %v1003_v4  ;;  %v6404_v19 = vadd.f32 %v1034_v3, %v1004_v47 }
 0x408   :  { %v6406_v14 = vadd.f32 %v1034_v3, %v1005_v58  ;;  %v6408_v45 = vadd.f32 %v1034_v3, %v1006_v50  ;;  %v6410_v15 = vadd.f32 %v1034_v3, %v1007_v9  ;;  %v6412_v44 = vadd.f32 %v1034_v3, %v1008_v51 }
 0x409   :  { %v6414_v53 = vadd.f32 %v1034_v3, %v1009_v24  ;;  %v6416_v37 = vadd.f32 %v1034_v3, %v1010_v13  ;;  %v6418_v20 = vadd.f32 %v1034_v3, %v1011_v38  ;;  %v6420_v5 = vadd.f32 %v1034_v3, %v1012_v26 }
 0x40a   :  { %v6422_v27 = vadd.f32 %v1034_v3, %v1013_v43  ;;  %v6424_v63 = vadd.f32 %v1034_v3, %v1014_v22  ;;  %v6426_v52 = vadd.f32 %v1034_v3, %v1015_v41  ;;  %v6428_v60 = vadd.f32 %v1034_v3, %v1016_v23 }
 0x40b   :  { %v6430_v21 = vadd.f32 %v1034_v3, %v1017_v29  ;;  %v6432_v36 = vadd.f32 %v1034_v3, %v1018_v55  ;;  %v6434_v57 = vadd.f32 %v1034_v3, %v1019_v34  ;;  %v6436_v56 = vadd.f32 %v1034_v3, %v1020_v61 }
 0x40c   :  { %v6438_v6 = vadd.f32 %v1034_v3, %v1021_v33  ;;  %v6440_v4 = vadd.f32 %v1034_v3, %v1022_v35  ;;  %v6442_v47 = vadd.f32 %v1034_v3, %v1023_v0  ;;  %v6444_v58 = vadd.f32 %v1034_v3, %v1024_v10 }
 0x40d   :  { %v6446_v50 = vadd.f32 %v1034_v3, %v1025_v59  ;;  %v6448_v9 = vadd.f32 %v1034_v3, %v1026_v46  ;;  %v6450_v51 = vadd.f32 %v1034_v3, %v1027_v1  ;;  %v6452_v24 = vadd.f32 %v1034_v3, %v1028_v25 }
 0x40e   :  { %v6454_v13 = vadd.f32 %v1034_v3, %v1029_v62  ;;  %v6456_v38 = vadd.f32 %v1034_v3, %v1030_v49  ;;  %v1067_v26 = vmax.f32 %v6394_v31, 0.0  ;;  %v1068_v43 = vmax.f32 %v6396_v16, 0.0 }
 0x40f   :  { %v1069_v22 = vmax.f32 %v6398_v39, 0.0  ;;  %v1070_v41 = vmax.f32 %v6400_v54, 0.0  ;;  %v1071_v23 = vmax.f32 %v6402_v2, 0.0  ;;  %v1072_v29 = vmax.f32 %v6404_v19, 0.0 }
 0x410   :  { %v1073_v55 = vmax.f32 %v6406_v14, 0.0  ;;  %v1074_v34 = vmax.f32 %v6408_v45, 0.0  ;;  %v1075_v61 = vmax.f32 %v6410_v15, 0.0  ;;  %v1076_v3 = vmax.f32 %v6412_v44, 0.0 }
 0x411   :  { %v1077_v33 = vmax.f32 %v6414_v53, 0.0  ;;  %v1078_v35 = vmax.f32 %v6416_v37, 0.0  ;;  %v1079_v0 = vmax.f32 %v6418_v20, 0.0  ;;  %v1080_v10 = vmax.f32 %v6420_v5, 0.0 }
 0x412   :  { %v1081_v59 = vmax.f32 %v6422_v27, 0.0  ;;  %v1082_v46 = vmax.f32 %v6424_v63, 0.0  ;;  %v1083_v1 = vmax.f32 %v6426_v52, 0.0  ;;  %v1084_v25 = vmax.f32 %v6428_v60, 0.0 }
 0x413   :  { %v1085_v62 = vmax.f32 %v6430_v21, 0.0  ;;  %v1086_v49 = vmax.f32 %v6432_v36, 0.0  ;;  %v1087_v31 = vmax.f32 %v6434_v57, 0.0  ;;  %v1088_v16 = vmax.f32 %v6436_v56, 0.0 }
 0x414   :  { %v1089_v39 = vmax.f32 %v6438_v6, 0.0  ;;  %v1090_v54 = vmax.f32 %v6440_v4, 0.0  ;;  %v1091_v2 = vmax.f32 %v6442_v47, 0.0  ;;  %v1092_v19 = vmax.f32 %v6444_v58, 0.0 }
 0x415   :  { %v1093_v14 = vmax.f32 %v6446_v50, 0.0  ;;  %v1094_v45 = vmax.f32 %v6448_v9, 0.0  ;;  %v1095_v15 = vmax.f32 %v6450_v51, 0.0  ;;  %v1096_v44 = vmax.f32 %v6452_v24, 0.0 }
 0x416   :  { %v1097_v53 = vmax.f32 %v6454_v13, 0.0  ;;  %v1098_v37 = vmax.f32 %v6456_v38, 0.0  ;;  %v1100_v20 = vsel %vm1099_vm4, %v1067_v26, -inf  ;;  %v1101_v5 = vsel %vm1099_vm4, %v1068_v43, -inf }
 0x417   :  { %v1102_v27 = vsel %vm1099_vm4, %v1069_v22, -inf  ;;  %v1103_v63 = vsel %vm1099_vm4, %v1070_v41, -inf  ;;  %v1104_v52 = vsel %vm1099_vm4, %v1071_v23, -inf  ;;  %v1106_v60 = vsel %vm1099_vm4, %v1072_v29, -inf }
 0x418   :  { %v1105_v21 = vmax.f32 %v1100_v20, %v1104_v52  ;;  %v1107_v36 = vmax.f32 %v1101_v5, %v1106_v60  ;;  %v1108_v57 = vsel %vm1099_vm4, %v1073_v55, -inf  ;;  %v1110_v56 = vsel %vm1099_vm4, %v1074_v34, -inf }
 0x419   :  { %v1109_v6 = vmax.f32 %v1102_v27, %v1108_v57  ;;  %v1111_v4 = vmax.f32 %v1103_v63, %v1110_v56  ;;  %v1112_v47 = vsel %vm1099_vm4, %v1075_v61, -inf  ;;  %v1114_v58 = vsel %vm1099_vm4, %v1076_v3, -inf }
 0x41a   :  { %v1113_v50 = vmax.f32 %v1105_v21, %v1112_v47  ;;  %v1115_v9 = vmax.f32 %v1107_v36, %v1114_v58  ;;  %v1116_v51 = vsel %vm1099_vm4, %v1077_v33, -inf  ;;  %v1118_v24 = vsel %vm1099_vm4, %v1078_v35, -inf }
 0x41b   :  { %v1117_v13 = vmax.f32 %v1109_v6, %v1116_v51  ;;  %v1119_v38 = vmax.f32 %v1111_v4, %v1118_v24  ;;  %v1120_v26 = vsel %vm1099_vm4, %v1079_v0, -inf  ;;  %v1122_v43 = vsel %vm1099_vm4, %v1080_v10, -inf }
 0x41c   :  { %v1121_v22 = vmax.f32 %v1113_v50, %v1120_v26  ;;  %v1123_v41 = vmax.f32 %v1115_v9, %v1122_v43  ;;  %v1124_v23 = vsel %vm1099_vm4, %v1081_v59, -inf  ;;  %v1126_v29 = vsel %vm1099_vm4, %v1082_v46, -inf }
 0x41d   :  { %v1125_v55 = vmax.f32 %v1117_v13, %v1124_v23  ;;  %v1127_v34 = vmax.f32 %v1119_v38, %v1126_v29  ;;  %v1137_v61 = vsel %vm1099_vm4, %v1083_v1, -inf  ;;  %v1138_v3 = vsel %vm1099_vm4, %v1084_v25, -inf  ;;  %v5580_v23 = vld [vmem:[%s8306_s1 + $0x20] sm:$0xff]  }
 0x41e   :  { %v1128_v33 = vmax.f32 %v1121_v22, %v1123_v41  ;;  %v1139_v35 = vsel %vm1099_vm4, %v1085_v62, -inf  ;;  %v1140_v20 = vsel %vm1099_vm4, %v1086_v49, -inf  ;;  %v1141_v0 = vsel %vm1099_vm4, %v1087_v31, -inf  ;;  %v1181_v29 = vld [vmem:[%s8308_s3 + $0x4] ss:$0 sm:$0xff] }
 0x41f   :  { %v1129_v10 = vmax.f32 %v1125_v55, %v1127_v34  ;;  %v1142_v5 = vmax.f32 %v1137_v61, %v1141_v0  ;;  %v1143_v27 = vsel %vm1099_vm4, %v1088_v16, -inf  ;;  %v1145_v59 = vsel %vm1099_vm4, %v1089_v39, -inf  ;;  %v5581_v0 = vld [vmem:[%s8306_s1 + $0x28] sm:$0xff]  }
 0x420   :  { %v1144_v46 = vmax.f32 %v1138_v3, %v1143_v27  ;;  %v1146_v63 = vmax.f32 %v1139_v35, %v1145_v59  ;;  %v1147_v52 = vsel %vm1099_vm4, %v1090_v54, -inf  ;;  %v1149_v1 = vsel %vm1099_vm4, %v1091_v2, -inf }
 0x421   :  { %v1130_v25 = vmax.f32 %v1128_v33, %v1129_v10  ;;  %v1148_v60 = vmax.f32 %v1140_v20, %v1147_v52  ;;  %v1150_v21 = vmax.f32 %v1142_v5, %v1149_v1  ;;  %v1151_v62 = vsel %vm1099_vm4, %v1092_v19, -inf  ;;  %v1241_v10 = vld [vmem:[%s8308_s3 + $0x5] ss:$0 sm:$0xff] }
 0x422   :  { %v1152_v49 = vmax.f32 %v1144_v46, %v1151_v62  ;;  %v1153_v31 = vsel %vm1099_vm4, %v1093_v14, -inf  ;;  %v1155_v36 = vsel %vm1099_vm4, %v1094_v45, -inf  ;;  %v1157_v16 = vsel %vm1099_vm4, %v1095_v15, -inf }
 0x423   :  { %v1131_v57 = vrot.slane %v1130_v25, 4  ;;  %v1154_v39 = vmax.f32 %v1146_v63, %v1153_v31  ;;  %v1156_v56 = vmax.f32 %v1148_v60, %v1155_v36  ;;  %v1158_v6 = vmax.f32 %v1150_v21, %v1157_v16  ;;  %v6549_v60 = vld [vmem:[%s8306_s1 + $0x30] sm:$0x3] }
 0x424   :  { %v1159_v54 = vsel %vm1099_vm4, %v1096_v44, -inf  ;;  %v1161_v2 = vsel %vm1099_vm4, %v1097_v53, -inf  ;;  %v1163_v4 = vsel %vm1099_vm4, %v1098_v37, -inf  ;;  %8365 = vst [vmem:[#allocation14_spill] sm:$0xff] %v6549_v60  ;;  %v6552_v21 = vsub.s32 1, %v6069_v11  ;;  %5562 = vmatprep.subr.msk.bf16.mxu1 %vm130_vm0, %v6549_v60 }
 0x425   :  { %v1132_v47 = vmax.f32 %v1130_v25, %v1131_v57  ;;  %v1160_v58 = vmax.f32 %v1152_v49, %v1159_v54  ;;  %v1162_v19 = vmax.f32 %v1154_v39, %v1161_v2  ;;  %v1164_v50 = vmax.f32 %v1156_v56, %v1163_v4  ;;  %v1295_v25 = vld [vmem:[%s8308_s3 + $0x6] ss:$0 sm:$0xff] }
 0x426   :  { %8366 = vst [vmem:[#allocation15_spill] sm:$0xff] %v6552_v21  ;;  %v1982_v62 = vsel %vm130_vm0, %v6549_v60, 0  ;;  %v6614_v2 = vld [vmem:[%s8305_s0 + $0x80] sm:$0xff] }
 0x427   :  { %v1133_v9 = vrot.slane %v1132_v47, 2  ;;  %v1165_v14 = vmax.f32 %v1158_v6, %v1160_v58  ;;  %v1166_v51 = vmax.f32 %v1162_v19, %v1164_v50  ;;  %5013 = vmatpush3.bf16.msra.mxu1 %v1982_v62  ;;  %v6605_v6 = vld [vmem:[%s8305_s0 + $0x88] sm:$0xff]  ;;  %v8321_v19 = vmov 0   ;;  %v6790_v62 = vld [vmem:[%s8305_s0 + $0xb0] sm:$0xff] }
 0x428   :  { %5576 = vset.pattern.permute.xlu1 %v8321_v19  ;;  %v6632_v50 = vld [vmem:[%s8305_s0 + $0x8] sm:$0xff]  ;;  %5575 = vset.pattern.permute.xlu0 %v8321_v19 }
 0x429   :  { %v1167_v45 = vmax.f32 %v1165_v14, %v1166_v51  ;;  %v1134_v24 = vmax.f32 %v1132_v47, %v1133_v9  ;;  %v6641_v14 = vld [vmem:[%s8305_s0] sm:$0xff]  ;;  %v6949_v19 = vld [vmem:[%s8305_s0 + $0xe8] sm:$0xff] }
 0x42a   :  { %5015 = vmatmul.mubr.msk.bf16.vlgmr.msra.gmra.mrb[36].mxu1 %vm81_vm1, %v5777_v12  ;;  %v8367_v12 = vld [vmem:[#allocation5_spill] sm:$0xff] }
 0x42b   :  { %v1168_v15 = vrot.slane %v1167_v45, 4  ;;  %v1135_v26 = vrot.slane %v1134_v24, 1  ;;  %5018 = vmatprep.mubr.msk.bf16.mxu1 %vm81_vm1, %v5792_v17  ;;  %v8368_v17 = vld [vmem:[#allocation6_spill] sm:$0xff] }
 0x42d   :  { %v1169_v13 = vmax.f32 %v1167_v45, %v1168_v15  ;;  %v1136_v22 = vmax.f32 %v1134_v24, %v1135_v26  ;;  %v6669_v26 = vld [vmem:[%s8305_s0 + $0x98] sm:$0xff] }
 0x42f   :  { %v1170_v38 = vrot.slane %v1169_v13, 2 }
 0x431   :  { %v1171_v43 = vmax.f32 %v1169_v13, %v1170_v38 }
 0x432   :  { %5019 = vmatmul.mubr.msk.bf16.gmra.mrb[40].mxu1 %vm81_vm1, %v5831_v28  ;;  %v8369_v28 = vld [vmem:[#allocation7_spill] sm:$0xff] }
 0x433   :  { %v1172_v44 = vrot.slane %v1171_v43, 1  ;;  %5022 = vmatprep.mubr.msk.bf16.mxu1 %vm81_vm1, %v5835_v30  ;;  %v8370_v30 = vld [vmem:[#allocation8_spill] sm:$0xff] }
 0x435   :  { %v1173_v53 = vmax.f32 %v1171_v43, %v1172_v44 }
 0x437   :  { %v1175_v41 = vsel %vm1174_vm5, %v1136_v22, %v1173_v53  ;;  %v6678_v22 = vld [vmem:[%s8305_s0 + $0x90] sm:$0xff]  ;;  %v6691_v53 = vld [vmem:[%s8305_s0 + $0x18] sm:$0xff] }
 0x438   :  { %v1180_v37 = vpack.c.bf16 %v1175_v41, %v1175_v41 }
 0x43a   :  { %4997 = vmatmul.mubr.msk.bf16.vlgmr.msra.gmra.mrb[36].mxu0 %vm1099_vm4, %v1180_v37  ;;  %5023 = vmatmul.mubr.msk.bf16.gmra.mrb[44].mxu1 %vm81_vm1, %v5871_v40  ;;  %v8371_v40 = vld [vmem:[#allocation9_spill] sm:$0xff]  ;;  %v6700_v37 = vld [vmem:[%s8305_s0 + $0x10] sm:$0xff] }
 0x43b   :  { %5002 = vmatprep.mubr.msk.bf16.mxu0 %vm5697_vm3, %v8319_v18  ;;  %5001 = vmatpush3.bf16.msra.mxu0 %v5580_v23 }
 0x43c   :  { %5006 = vmatprep.subr.bf16.mxu0 %v8319_v18  ;;  %5026 = vmatprep.mubr.msk.bf16.mxu1 %vm81_vm1, %v5875_v42  ;;  %v8372_v42 = vld [vmem:[#allocation10_spill] sm:$0xff] }
 0x43d   :  { %8379 = vst [vmem:[#allocation10_spill] sm:$0xff] %v6949_v19 }
 0x442   :  { %5027 = vmatmul.mubr.msk.bf16.gmra.mrb[48].mxu1 %vm81_vm1, %v5899_v48  ;;  %v8373_v48 = vld [vmem:[#allocation11_spill] sm:$0xff] }
 0x443   :  { %5030 = vmatprep.mubr.msk.bf16.mxu1 %vm81_vm1, %v5764_v8 }
 0x44a   :  { %5031 = vmatmul.mubr.msk.bf16.gmra.mrb[52].mxu1 %vm81_vm1, %v8367_v12 }
 0x44b   :  { %5034 = vmatprep.mubr.msk.bf16.mxu1 %vm81_vm1, %v8368_v17 }
 0x452   :  { %5035 = vmatmul.mubr.msk.bf16.gmra.mrb[56].mxu1 %vm81_vm1, %v8369_v28 }
 0x453   :  { %5038 = vmatprep.mubr.msk.bf16.mxu1 %vm81_vm1, %v8370_v30 }
 0x45a   :  { %5039 = vmatmul.mubr.msk.bf16.gmra.mrb[60].mxu1 %vm81_vm1, %v8371_v40  ;;  %v6837_v40 = vld [vmem:[%s8305_s0 + $0xc8] sm:$0xff] }
 0x45b   :  { %5042 = vmatprep.mubr.msk.bf16.mxu1 %vm81_vm1, %v8372_v42 }
 0x462   :  { %5043 = vmatmul.mubr.msk.bf16.gmra.mrb[64].mxu1 %vm81_vm1, %v8373_v48  ;;  %v6846_v48 = vld [vmem:[%s8305_s0 + $0xc0] sm:$0xff] }
 0x50d   :  { %v1231_v55 = vpop.f32.mrb[36].mxu0 }
 0x50e   :  { %v1232_v34 = vadd.f32 %v1231_v55, %v1181_v29  ;;  %v4998_v61 = vpop.f32.mrb[37].mxu0 }
 0x50f   :  { %v1234_v3 = vpop.f32.mrb[38].mxu0 }
 0x510   :  { %v1237_v33 = vmax.f32 %v1232_v34, 0.0  ;;  %v4999_v35 = vpop.f32.mrb[39].mxu0  ;;  %v6725_v3 = vld [vmem:[%s8305_s0 + $0xa8] sm:$0xff] }
 0x511   :  { %v6734_v35 = vld [vmem:[%s8305_s0 + $0xa0] sm:$0xff] }
 0x512   :  { %v1240_v20 = vpack.c.bf16 %v1237_v33, %v1237_v33 }
 0x514   :  { %5003 = vmatmul.mubr.msk.bf16.vlgmr.msra.gmra.mrb[40].mxu0 %vm604_vm2, %v1240_v20 }
 0x515   :  { %5008 = vmatprep.mubr.msk.bf16.mxu0 %vm5697_vm3, %v8319_v18  ;;  %5007 = vmatpush3.bf16.msra.mxu0 %v5581_v0  ;;  %v6747_v0 = vld [vmem:[%s8305_s0 + $0x28] sm:$0xff] }
 0x5e7   :  { %v1285_v5 = vpop.f32.mrb[40].mxu0 }
 0x5e8   :  { %v1286_v27 = vadd.f32 %v1285_v5, %v1241_v10  ;;  %v5004_v59 = vpop.f32.mrb[41].mxu0  ;;  %v6756_v5 = vld [vmem:[%s8305_s0 + $0x20] sm:$0xff] }
 0x5e9   :  { %v1288_v46 = vpop.f32.mrb[42].mxu0 }
 0x5ea   :  { %v1291_v63 = vmax.f32 %v1286_v27, 0.0  ;;  %v5005_v52 = vpop.f32.mrb[43].mxu0 }
 0x5ec   :  { %v1294_v1 = vpack.c.bf16 %v1291_v63, %v1291_v63 }
 0x5ee   :  { %5009 = vmatmul.mubr.msk.bf16.vlgmr.msra.gmra.mrb[44].mxu0 %vm604_vm2, %v1294_v1  ;;  %v6781_v1 = vld [vmem:[%s8305_s0 + $0xb8] sm:$0xff] }
 0x5ef   :  { %2439 = vmatprep.mubr.f32.mxu0 %v8362_v7  ;;  %v6980_v7 = vld [vmem:[%s8305_s0 + $0x60] sm:$0xff] }
 0x5f0   :  { %8385 = vst [vmem:[#allocation20_spill] sm:$0xff] %v6980_v7 }
 0x6c1   :  { %v1339_v49 = vpop.f32.mrb[44].mxu0 }
 0x6c2   :  { %v1340_v31 = vadd.f32 %v1339_v49, %v1295_v25  ;;  %v5010_v36 = vpop.f32.mrb[45].mxu0 }
 0x6c3   :  { %v1342_v16 = vpop.f32.mrb[46].mxu0 }
 0x6c4   :  { %v6559_v57 = vrot.slane %v1340_v31, %v6552_v21  ;;  %v5011_v39 = vpop.f32.mrb[47].mxu0  ;;  %v6569_v56 = vrot.slane %v1340_v31, %v6075_v32  ;;  %v6803_v31 = vld [vmem:[%s8305_s0 + $0x38] sm:$0xff]  ;;  %v6812_v16 = vld [vmem:[%s8305_s0 + $0x30] sm:$0xff] }
 0x6c6   :  { %1588 = vrot.lane.b32.xlu1 %v6559_v57, %s5698_s13  ;;  %1390 = vrot.lane.b32.xlu0 %v6559_v57, %s5699_s14 }
 0x6ca   :  { %1586 = vrot.lane.b32.xlu1 %v6569_v56, %s5698_s13  ;;  %1388 = vrot.lane.b32.xlu0 %v6569_v56, %s5699_s14 }
 0x738   :  { %v6600_v8 = vpop.permute.xlu0 %1390  ;;  %v6624_v47 = vpop.permute.xlu1 %1588 }
 0x739   :  { %v6609_v54 = vmul.f32 %v6605_v6, %v6600_v8  ;;  %v6618_v4 = vmul.f32 %v6614_v2, %v6600_v8  ;;  %v1609_v45 = vmul.f32 %v6605_v6, %v6624_v47  ;;  %v1608_v24 = vmul.f32 %v6614_v2, %v6624_v47 }
 0x73a   :  { %v6673_v43 = vmul.f32 %v6669_v26, %v6600_v8  ;;  %v6682_v44 = vmul.f32 %v6678_v22, %v6600_v8  ;;  %v1611_v29 = vmul.f32 %v6669_v26, %v6624_v47  ;;  %v1610_v55 = vmul.f32 %v6678_v22, %v6624_v47 }
 0x73b   :  { %1492 = vrot.lane.b32.xlu1 %v6609_v54, %s5699_s14  ;;  %1490 = vrot.lane.b32.xlu0 %v6618_v4, %s5699_s14  ;;  %v6729_v33 = vmul.f32 %v6725_v3, %v6600_v8  ;;  %v6738_v20 = vmul.f32 %v6734_v35, %v6600_v8  ;;  %v1613_v59 = vmul.f32 %v6725_v3, %v6624_v47 }
 0x73c   :  { %v6626_v58 = vpop.permute.xlu0 %1388  ;;  %v6656_v15 = vpop.permute.xlu1 %1586  ;;  %v1612_v46 = vmul.f32 %v6734_v35, %v6624_v47  ;;  %v6785_v25 = vmul.f32 %v6781_v1, %v6600_v8  ;;  %v6794_v49 = vmul.f32 %v6790_v62, %v6600_v8  ;;  %v1615_v12 = vmul.f32 %v6781_v1, %v6624_v47 }
 0x73d   :  { %v6636_v9 = vmul.f32 %v6632_v50, %v6626_v58  ;;  %v6645_v51 = vmul.f32 %v6641_v14, %v6626_v58  ;;  %v1593_v13 = vmul.f32 %v6632_v50, %v6656_v15  ;;  %v1592_v38 = vmul.f32 %v6641_v14, %v6656_v15 }
 0x73e   :  { %v6695_v41 = vmul.f32 %v6691_v53, %v6626_v58  ;;  %v6704_v23 = vmul.f32 %v6700_v37, %v6626_v58  ;;  %v1595_v34 = vmul.f32 %v6691_v53, %v6656_v15  ;;  %v1594_v61 = vmul.f32 %v6700_v37, %v6656_v15 }
 0x73f   :  { %1460 = vrot.lane.b32.xlu1 %v6636_v9, %s5699_s14  ;;  %1458 = vrot.lane.b32.xlu0 %v6645_v51, %s5699_s14  ;;  %v6751_v10 = vmul.f32 %v6747_v0, %v6626_v58  ;;  %v6760_v27 = vmul.f32 %v6756_v5, %v6626_v58  ;;  %v1597_v63 = vmul.f32 %v6747_v0, %v6656_v15 }
 0x740   :  { %v1596_v52 = vmul.f32 %v6756_v5, %v6656_v15  ;;  %v6807_v36 = vmul.f32 %v6803_v31, %v6626_v58  ;;  %v6816_v39 = vmul.f32 %v6812_v16, %v6626_v58  ;;  %v1614_v17 = vmul.f32 %v6790_v62, %v6624_v47 }
 0x741   :  { %v1599_v28 = vmul.f32 %v6803_v31, %v6656_v15  ;;  %v1598_v30 = vmul.f32 %v6812_v16, %v6656_v15  ;;  %v6841_v42 = vmul.f32 %v6837_v40, %v6600_v8  ;;  %v6984_v21 = vmul.f32 %v6980_v7, %v6626_v58 }
 0x742   :  { %v1621_v32 = vmul.f32 %v6949_v19, %v6624_v47 }
 0x743   :  { %1690 = vrot.lane.b32.xlu1 %v1609_v45, %s5699_s14  ;;  %1688 = vrot.lane.b32.xlu0 %v1608_v24, %s5699_s14  ;;  %v6850_v45 = vmul.f32 %v6846_v48, %v6600_v8  ;;  %v6859_v24 = vld [vmem:[%s8305_s0 + $0x48] sm:$0xff]  ;;  %8386 = vst [vmem:[#allocation21_spill] sm:$0xff] %v6984_v21 }
 0x747   :  { %1658 = vrot.lane.b32.xlu1 %v1593_v13, %s5699_s14  ;;  %1656 = vrot.lane.b32.xlu0 %v1592_v38, %s5699_s14  ;;  %v6863_v13 = vmul.f32 %v6859_v24, %v6626_v58  ;;  %v6868_v38 = vld [vmem:[%s8305_s0 + $0x40] sm:$0xff] }
 0x74b   :  { %1496 = vrot.lane.b32.xlu1 %v6673_v43, %s5699_s14  ;;  %1494 = vrot.lane.b32.xlu0 %v6682_v44, %s5699_s14 }
 0x74f   :  { %1464 = vrot.lane.b32.xlu1 %v6695_v41, %s5699_s14  ;;  %1462 = vrot.lane.b32.xlu0 %v6704_v23, %s5699_s14 }
 0x753   :  { %1694 = vrot.lane.b32.xlu1 %v1611_v29, %s5699_s14  ;;  %1692 = vrot.lane.b32.xlu0 %v1610_v55, %s5699_s14  ;;  %v6872_v29 = vmul.f32 %v6868_v38, %v6626_v58  ;;  %v1617_v55 = vmul.f32 %v6837_v40, %v6624_v47 }
 0x757   :  { %1662 = vrot.lane.b32.xlu1 %v1595_v34, %s5699_s14  ;;  %1660 = vrot.lane.b32.xlu0 %v1594_v61, %s5699_s14  ;;  %v1616_v34 = vmul.f32 %v6846_v48, %v6624_v47  ;;  %v1601_v61 = vmul.f32 %v6859_v24, %v6656_v15 }
 0x75b   :  { %1500 = vrot.lane.b32.xlu1 %v6729_v33, %s5699_s14  ;;  %1498 = vrot.lane.b32.xlu0 %v6738_v20, %s5699_s14 }
 0x75f   :  { %1468 = vrot.lane.b32.xlu1 %v6751_v10, %s5699_s14  ;;  %1466 = vrot.lane.b32.xlu0 %v6760_v27, %s5699_s14 }
 0x763   :  { %1698 = vrot.lane.b32.xlu1 %v1613_v59, %s5699_s14  ;;  %1696 = vrot.lane.b32.xlu0 %v1612_v46, %s5699_s14  ;;  %v1600_v59 = vmul.f32 %v6868_v38, %v6656_v15  ;;  %v6893_v46 = vld [vmem:[%s8305_s0 + $0xd8] sm:$0xff] }
 0x767   :  { %1666 = vrot.lane.b32.xlu1 %v1597_v63, %s5699_s14  ;;  %1664 = vrot.lane.b32.xlu0 %v1596_v52, %s5699_s14  ;;  %v6897_v63 = vmul.f32 %v6893_v46, %v6600_v8  ;;  %v6902_v52 = vld [vmem:[%s8305_s0 + $0xd0] sm:$0xff] }
 0x769   :  { %8374 = vst [vmem:[#allocation5_spill] sm:$0xff] %v6897_v63 }
 0x76b   :  { %1504 = vrot.lane.b32.xlu1 %v6785_v25, %s5699_s14  ;;  %1502 = vrot.lane.b32.xlu0 %v6794_v49, %s5699_s14 }
 0x76f   :  { %1472 = vrot.lane.b32.xlu1 %v6807_v36, %s5699_s14  ;;  %1470 = vrot.lane.b32.xlu0 %v6816_v39, %s5699_s14 }
 0x773   :  { %1702 = vrot.lane.b32.xlu1 %v1615_v12, %s5699_s14  ;;  %1700 = vrot.lane.b32.xlu0 %v1614_v17, %s5699_s14  ;;  %v6906_v12 = vmul.f32 %v6902_v52, %v6600_v8  ;;  %v6915_v17 = vld [vmem:[%s8305_s0 + $0x58] sm:$0xff] }
 0x775   :  { %8375 = vst [vmem:[#allocation6_spill] sm:$0xff] %v6906_v12 }
 0x777   :  { %1670 = vrot.lane.b32.xlu1 %v1599_v28, %s5699_s14  ;;  %1668 = vrot.lane.b32.xlu0 %v1598_v30, %s5699_s14  ;;  %v6919_v28 = vmul.f32 %v6915_v17, %v6626_v58  ;;  %v6924_v30 = vld [vmem:[%s8305_s0 + $0x50] sm:$0xff] }
 0x778   :  { %8377 = vst [vmem:[#allocation8_spill] sm:$0xff] %v6924_v30  ;;  %v1602_v18 = vmul.f32 %v6924_v30, %v6656_v15 }
 0x779   :  { %8376 = vst [vmem:[#allocation7_spill] sm:$0xff] %v6919_v28 }
 0x77b   :  { %1508 = vrot.lane.b32.xlu1 %v6841_v42, %s5699_s14  ;;  %1506 = vrot.lane.b32.xlu0 %v6850_v45, %s5699_s14 }
 0x77f   :  { %1476 = vrot.lane.b32.xlu1 %v6863_v13, %s5699_s14  ;;  %1474 = vrot.lane.b32.xlu0 %v6872_v29, %s5699_s14 }
 0x783   :  { %1706 = vrot.lane.b32.xlu1 %v1617_v55, %s5699_s14  ;;  %1704 = vrot.lane.b32.xlu0 %v1616_v34, %s5699_s14  ;;  %v6928_v55 = vmul.f32 %v6924_v30, %v6626_v58  ;;  %v1619_v34 = vmul.f32 %v6893_v46, %v6624_v47 }
 0x785   :  { %8378 = vst [vmem:[#allocation9_spill] sm:$0xff] %v6928_v55 }
 0x787   :  { %1674 = vrot.lane.b32.xlu1 %v1601_v61, %s5699_s14  ;;  %1672 = vrot.lane.b32.xlu0 %v1600_v59, %s5699_s14  ;;  %v1618_v61 = vmul.f32 %v6902_v52, %v6624_v47  ;;  %v1603_v59 = vmul.f32 %v6915_v17, %v6656_v15 }
 0x78b   :  { %1512 = vrot.lane.b32.xlu1 %v6897_v63, %s5699_s14  ;;  %1510 = vrot.lane.b32.xlu0 %v6906_v12, %s5699_s14 }
 0x78f   :  { %1480 = vrot.lane.b32.xlu1 %v6919_v28, %s5699_s14  ;;  %1478 = vrot.lane.b32.xlu0 %v6928_v55, %s5699_s14 }
 0x793   :  { %1710 = vrot.lane.b32.xlu1 %v1619_v34, %s5699_s14  ;;  %1708 = vrot.lane.b32.xlu0 %v1618_v61, %s5699_s14  ;;  %v6953_v34 = vmul.f32 %v6949_v19, %v6600_v8  ;;  %v6958_v61 = vld [vmem:[%s8305_s0 + $0xe0] sm:$0xff]  ;;  %v7035_v19 = vld [vmem:[%s8305_s0 + $0x78] sm:$0xff] }
 0x794   :  { %8381 = vst [vmem:[#allocation16_spill] sm:$0xff] %v6958_v61  ;;  %v6962_v11 = vmul.f32 %v6958_v61, %v6600_v8  ;;  %v1620_v60 = vmul.f32 %v6958_v61, %v6624_v47  ;;  %8394 = vst [vmem:[#allocation29_spill] sm:$0xff] %v7035_v19 }
 0x795   :  { %8380 = vst [vmem:[#allocation11_spill] sm:$0xff] %v6953_v34 }
 0x796   :  { %8382 = vst [vmem:[#allocation17_spill] sm:$0xff] %v6962_v11 }
 0x797   :  { %1678 = vrot.lane.b32.xlu1 %v1603_v59, %s5699_s14  ;;  %1676 = vrot.lane.b32.xlu0 %v1602_v18, %s5699_s14  ;;  %v6971_v18 = vld [vmem:[%s8305_s0 + $0x68] sm:$0xff] }
 0x798   :  { %8383 = vst [vmem:[#allocation18_spill] sm:$0xff] %v6971_v18  ;;  %v6975_v59 = vmul.f32 %v6971_v18, %v6626_v58 }
 0x79a   :  { %8384 = vst [vmem:[#allocation19_spill] sm:$0xff] %v6975_v59 }
 0x79b   :  { %1516 = vrot.lane.b32.xlu1 %v6953_v34, %s5699_s14  ;;  %1514 = vrot.lane.b32.xlu0 %v6962_v11, %s5699_s14  ;;  %v1605_v11 = vmul.f32 %v6971_v18, %v6656_v15  ;;  %v1604_v34 = vmul.f32 %v6980_v7, %v6656_v15 }
 0x79f   :  { %1484 = vrot.lane.b32.xlu1 %v6975_v59, %s5699_s14  ;;  %1482 = vrot.lane.b32.xlu0 %v6984_v21, %s5699_s14  ;;  %v7002_v21 = vpop.f32.mrb[36].mxu1  ;;  %v7007_v59 = vld [vmem:[%s8305_s0 + $0xf8] sm:$0xff] }
 0x7a0   :  { %8387 = vst [vmem:[#allocation22_spill] sm:$0xff] %v7002_v21  ;;  %8388 = vst [vmem:[#allocation23_spill] sm:$0xff] %v7007_v59  ;;  %v1623_v12 = vmul.f32 %v7007_v59, %v6624_v47 }
 0x7a3   :  { %1714 = vrot.lane.b32.xlu1 %v1621_v32, %s5699_s14  ;;  %1712 = vrot.lane.b32.xlu0 %v1620_v60, %s5699_s14  ;;  %v7011_v32 = vmul.f32 %v7007_v59, %v6600_v8  ;;  %v7016_v60 = vld [vmem:[%s8305_s0 + $0xf0] sm:$0xff] }
 0x7a5   :  { %8389 = vst [vmem:[#allocation24_spill] sm:$0xff] %v7011_v32 }
 0x7a7   :  { %1682 = vrot.lane.b32.xlu1 %v1605_v11, %s5699_s14  ;;  %1680 = vrot.lane.b32.xlu0 %v1604_v34, %s5699_s14  ;;  %v7020_v11 = vmul.f32 %v7016_v60, %v6600_v8  ;;  %v7022_v34 = vpop.f32.mrb[37].mxu1  ;;  %v7039_v8 = vmul.f32 %v7035_v19, %v6626_v58 }
 0x7a8   :  { %8391 = vst [vmem:[#allocation26_spill] sm:$0xff] %v7022_v34  ;;  %v7028_v21 = vpop.f32.mrb[38].mxu1  ;;  %v7044_v34 = vld [vmem:[%s8305_s0 + $0x70] sm:$0xff] }
 0x7a9   :  { %8390 = vst [vmem:[#allocation25_spill] sm:$0xff] %v7020_v11  ;;  %8392 = vst [vmem:[#allocation27_spill] sm:$0xff] %v7028_v21  ;;  %v7030_v7 = vpop.f32.mrb[39].mxu1  ;;  %v7048_v21 = vmul.f32 %v7044_v34, %v6626_v58  ;;  %v1622_v58 = vmul.f32 %v7016_v60, %v6624_v47  ;;  %v1606_v59 = vmul.f32 %v7044_v34, %v6656_v15 }
 0x7aa   :  { %8393 = vst [vmem:[#allocation28_spill] sm:$0xff] %v7030_v7  ;;  %8395 = vst [vmem:[#allocation30_spill] sm:$0xff] %v7039_v8  ;;  %v7050_v7 = vpop.f32.mrb[40].mxu1  ;;  %v1373_v47 = vmul.f32 %v6605_v6, %v6559_v57  ;;  %v1357_v6 = vmul.f32 %v6632_v50, %v6569_v56 }
 0x7ab   :  { %1520 = vrot.lane.b32.xlu1 %v7011_v32, %s5699_s14  ;;  %1518 = vrot.lane.b32.xlu0 %v7020_v11, %s5699_s14  ;;  %8396 = vst [vmem:[#allocation31_spill] sm:$0xff] %v7044_v34  ;;  %8397 = vst [vmem:[#allocation32_spill] sm:$0xff] %v7048_v21  ;;  %v7056_v11 = vpop.f32.mrb[41].mxu1 }
 0x7ac   :  { %8398 = vst [vmem:[#allocation33_spill] sm:$0xff] %v7050_v7  ;;  %8399 = vst [vmem:[#allocation34_spill] sm:$0xff] %v7056_v11  ;;  %v7058_v32 = vpop.f32.mrb[42].mxu1 }
 0x7ad   :  { %v1493_v18 = vpop.permute.xlu1 %1492  ;;  %v1491_v61 = vpop.permute.xlu0 %1490  ;;  %8400 = vst [vmem:[#allocation35_spill] sm:$0xff] %v7058_v32 }
 0x7ae   :  { %v7064_v63 = vpop.f32.mrb[43].mxu1 }
 0x7af   :  { %1488 = vrot.lane.b32.xlu1 %v7039_v8, %s5699_s14  ;;  %1486 = vrot.lane.b32.xlu0 %v7048_v21, %s5699_s14  ;;  %8401 = vst [vmem:[#allocation36_spill] sm:$0xff] %v7064_v63  ;;  %v7068_v7 = vpop.f32.mrb[44].mxu1  ;;  %v1607_v8 = vmul.f32 %v7035_v19, %v6656_v15 }
 0x7b0   :  { %8402 = vst [vmem:[#allocation37_spill] sm:$0xff] %v7068_v7  ;;  %v7070_v21 = vpop.f32.mrb[45].mxu1 }
 0x7b1   :  { %v1461_v55 = vpop.permute.xlu1 %1460  ;;  %v1459_v28 = vpop.permute.xlu0 %1458  ;;  %8403 = vst [vmem:[#allocation38_spill] sm:$0xff] %v7070_v21  ;;  %v1571_v21 = vadd.f32 %v1493_v18, %v1373_v47 }
 0x7b2   :  { %v7076_v30 = vpop.f32.mrb[46].mxu1 }
 0x7b3   :  { %1718 = vrot.lane.b32.xlu1 %v1623_v12, %s5699_s14  ;;  %1716 = vrot.lane.b32.xlu0 %v1622_v58, %s5699_s14  ;;  %8404 = vst [vmem:[#allocation39_spill] sm:$0xff] %v7076_v30  ;;  %v1372_v12 = vmul.f32 %v6614_v2, %v6559_v57  ;;  %v7084_v58 = vpop.f32.mrb[47].mxu1  ;;  %v1356_v2 = vmul.f32 %v6641_v14, %v6569_v56 }
 0x7b4   :  { %v7086_v7 = vpop.f32.mrb[48].mxu1  ;;  %v1555_v30 = vadd.f32 %v1461_v55, %v1357_v6  ;;  %v1375_v6 = vmul.f32 %v6669_v26, %v6559_v57 }
 0x7b5   :  { %v1691_v11 = vpop.permute.xlu1 %1690  ;;  %v1689_v32 = vpop.permute.xlu0 %1688  ;;  %8405 = vst [vmem:[#allocation40_spill] sm:$0xff] %v7086_v7  ;;  %v1570_v63 = vadd.f32 %v1491_v61, %v1372_v12  ;;  %v1554_v7 = vadd.f32 %v1459_v28, %v1356_v2 }
 0x7b6   :  { %v7088_v34 = vpop.f32.mrb[49].mxu1  ;;  %v1769_v14 = vadd.f32 %v1691_v11, %v6609_v54  ;;  %v1374_v54 = vmul.f32 %v6678_v22, %v6559_v57 }
 0x7b7   :  { %1686 = vrot.lane.b32.xlu1 %v1607_v8, %s5699_s14  ;;  %1684 = vrot.lane.b32.xlu0 %v1606_v59, %s5699_s14  ;;  %8406 = vst [vmem:[#allocation41_spill] sm:$0xff] %v7088_v34  ;;  %v7094_v8 = vpop.f32.mrb[50].mxu1 }
 0x7b8   :  { %8407 = vst [vmem:[#allocation42_spill] sm:$0xff] %v7094_v8  ;;  %v7096_v59 = vpop.f32.mrb[51].mxu1 }
 0x7b9   :  { %v1659_v19 = vpop.permute.xlu1 %1658  ;;  %v1657_v15 = vpop.permute.xlu0 %1656 }
 0x7ba   :  { %v7098_v47 = vpop.f32.mrb[52].mxu1  ;;  %v1753_v28 = vadd.f32 %v1659_v19, %v6636_v9  ;;  %v1752_v55 = vadd.f32 %v1657_v15, %v6645_v51  ;;  %v1358_v19 = vmul.f32 %v6700_v37, %v6569_v56 }
 0x7bb   :  { %1872 = vperm.xlu1 %5576, %v1571_v21   ;;  %1867 = vperm.xlu0 %5575, %v1570_v63   ;;  %v7100_v12 = vpop.f32.mrb[53].mxu1  ;;  %v1768_v21 = vadd.f32 %v1689_v32, %v6618_v4 }
 0x7bc   :  { %v7102_v50 = vpop.f32.mrb[54].mxu1 }
 0x7bd   :  { %v1497_v18 = vpop.permute.xlu1 %1496  ;;  %v1495_v61 = vpop.permute.xlu0 %1494 }
 0x7be   :  { %v7106_v34 = vpop.f32.mrb[55].mxu1  ;;  %v1573_v4 = vadd.f32 %v1497_v18, %v1375_v6  ;;  %v1572_v32 = vadd.f32 %v1495_v61, %v1374_v54  ;;  %v1361_v6 = vmul.f32 %v6747_v0, %v6569_v56 }
 0x7bf   :  { %1792 = vperm.xlu0 %5575, %v1555_v30   ;;  %1787 = vperm.xlu1 %5576, %v1554_v7  }
 0x7c1   :  { %v1465_v63 = vpop.permute.xlu1 %1464  ;;  %v1463_v8 = vpop.permute.xlu0 %1462 }
 0x7c2   :  { %v1556_v51 = vadd.f32 %v1463_v8, %v1358_v19  ;;  %v1377_v8 = vmul.f32 %v6725_v3, %v6559_v57 }
 0x7c3   :  { %2232 = vperm.xlu0 %5575, %v1769_v14   ;;  %2227 = vperm.xlu1 %5576, %v1768_v21   ;;  %v1359_v14 = vmul.f32 %v6691_v53, %v6569_v56 }
 0x7c5   :  { %v1695_v30 = vpop.permute.xlu1 %1694  ;;  %v1693_v7 = vpop.permute.xlu0 %1692  ;;  %v1557_v9 = vadd.f32 %v1465_v63, %v1359_v14  ;;  %v1376_v63 = vmul.f32 %v6734_v35, %v6559_v57 }
 0x7c6   :  { %v1771_v22 = vadd.f32 %v1695_v30, %v6673_v43  ;;  %v1770_v18 = vadd.f32 %v1693_v7, %v6682_v44 }
 0x7c7   :  { %2152 = vperm.xlu0 %5575, %v1753_v28   ;;  %2147 = vperm.xlu1 %5576, %v1752_v55  }
 0x7c9   :  { %v1663_v11 = vpop.permute.xlu1 %1662  ;;  %v1661_v2 = vpop.permute.xlu0 %1660 }
 0x7ca   :  { %v1755_v53 = vadd.f32 %v1663_v11, %v6695_v41  ;;  %v1754_v37 = vadd.f32 %v1661_v2, %v6704_v23  ;;  %v1360_v41 = vmul.f32 %v6756_v5, %v6569_v56  ;;  %v7130_v23 = vpop.f32.mrb[56].mxu1 }
 0x7cb   :  { %1882 = vperm.xlu0 %5575, %v1573_v4   ;;  %1877 = vperm.xlu1 %5576, %v1572_v32   ;;  %v7132_v3 = vpop.f32.mrb[57].mxu1 }
 0x7cc   :  { %v7134_v11 = vpop.f32.mrb[58].mxu1 }
 0x7cd   :  { %v1501_v26 = vpop.permute.xlu1 %1500  ;;  %v1499_v15 = vpop.permute.xlu0 %1498 }
 0x7ce   :  { %v1575_v43 = vadd.f32 %v1501_v26, %v1377_v8  ;;  %v1574_v44 = vadd.f32 %v1499_v15, %v1376_v63  ;;  %v7136_v2 = vpop.f32.mrb[59].mxu1 }
 0x7cf   :  { %1802 = vperm.xlu0 %5575, %v1557_v9   ;;  %1797 = vperm.xlu1 %5576, %v1556_v51  }
 0x7d1   :  { %v1469_v61 = vpop.permute.xlu1 %1468  ;;  %v1467_v21 = vpop.permute.xlu0 %1466 }
 0x7d2   :  { %v1559_v54 = vadd.f32 %v1469_v61, %v1361_v6  ;;  %v1558_v35 = vadd.f32 %v1467_v21, %v1360_v41 }
 0x7d3   :  { %2242 = vperm.xlu0 %5575, %v1771_v22   ;;  %2237 = vperm.xlu1 %5576, %v1770_v18   ;;  %v1379_v22 = vmul.f32 %v6781_v1, %v6559_v57  ;;  %v1378_v18 = vmul.f32 %v6790_v62, %v6559_v57 }
 0x7d5   :  { %v1699_v28 = vpop.permute.xlu1 %1698  ;;  %v1697_v55 = vpop.permute.xlu0 %1696 }
 0x7d6   :  { %v1773_v0 = vadd.f32 %v1699_v28, %v6729_v33  ;;  %v1772_v5 = vadd.f32 %v1697_v55, %v6738_v20 }
 0x7d7   :  { %2162 = vperm.xlu0 %5575, %v1755_v53   ;;  %2157 = vperm.xlu1 %5576, %v1754_v37   ;;  %v1363_v53 = vmul.f32 %v6803_v31, %v6569_v56 }
 0x7d9   :  { %v1667_v30 = vpop.permute.xlu1 %1666  ;;  %v1665_v7 = vpop.permute.xlu0 %1664 }
 0x7da   :  { %v1757_v9 = vadd.f32 %v1667_v30, %v6751_v10  ;;  %v1756_v51 = vadd.f32 %v1665_v7, %v6760_v27  ;;  %v1362_v10 = vmul.f32 %v6812_v16, %v6569_v56  ;;  %v1381_v30 = vmul.f32 %v6837_v40, %v6559_v57 }
 0x7db   :  { %1892 = vperm.xlu0 %5575, %v1575_v43   ;;  %1887 = vperm.xlu1 %5576, %v1574_v44   ;;  %v1380_v7 = vmul.f32 %v6846_v48, %v6559_v57 }
 0x7dd   :  { %v1505_v4 = vpop.permute.xlu1 %1504  ;;  %v1503_v32 = vpop.permute.xlu0 %1502 }
 0x7de   :  { %v1577_v33 = vadd.f32 %v1505_v4, %v1379_v22  ;;  %v1576_v20 = vadd.f32 %v1503_v32, %v1378_v18  ;;  %v1383_v22 = vmul.f32 %v6893_v46, %v6559_v57  ;;  %v1382_v18 = vmul.f32 %v6902_v52, %v6559_v57  ;;  %v8409_v52 = vld [vmem:[#allocation5_spill] sm:$0xff] }
 0x7df   :  { %1812 = vperm.xlu0 %5575, %v1559_v54   ;;  %1807 = vperm.xlu1 %5576, %v1558_v35   ;;  %v1365_v54 = vmul.f32 %v6859_v24, %v6569_v56 }
 0x7e1   :  { %v1473_v14 = vpop.permute.xlu1 %1472  ;;  %v1471_v19 = vpop.permute.xlu0 %1470 }
 0x7e2   :  { %v1561_v27 = vadd.f32 %v1473_v14, %v1363_v53  ;;  %v1560_v37 = vadd.f32 %v1471_v19, %v1362_v10 }
 0x7e3   :  { %2252 = vperm.xlu0 %5575, %v1773_v0   ;;  %2247 = vperm.xlu1 %5576, %v1772_v5  }
 0x7e5   :  { %v1703_v26 = vpop.permute.xlu1 %1702  ;;  %v1701_v15 = vpop.permute.xlu0 %1700 }
 0x7e6   :  { %v1775_v62 = vadd.f32 %v1703_v26, %v6785_v25  ;;  %v1774_v55 = vadd.f32 %v1701_v15, %v6794_v49 }
 0x7e7   :  { %2172 = vperm.xlu0 %5575, %v1757_v9   ;;  %2167 = vperm.xlu1 %5576, %v1756_v51  }
 0x7e9   :  { %v1671_v61 = vpop.permute.xlu1 %1670  ;;  %v1669_v21 = vpop.permute.xlu0 %1668 }
 0x7ea   :  { %v1759_v31 = vadd.f32 %v1671_v61, %v6807_v36  ;;  %v1758_v16 = vadd.f32 %v1669_v21, %v6816_v39  ;;  %v1364_v36 = vmul.f32 %v6868_v38, %v6569_v56  ;;  %v7162_v39 = vpop.f32.mrb[60].mxu1  ;;  %v1367_v61 = vmul.f32 %v6915_v17, %v6569_v56  ;;  %v8411_v17 = vld [vmem:[#allocation7_spill] sm:$0xff] }
 0x7eb   :  { %1902 = vperm.xlu0 %5575, %v1577_v33   ;;  %1897 = vperm.xlu1 %5576, %v1576_v20   ;;  %v7164_v40 = vpop.f32.mrb[61].mxu1 }
 0x7ec   :  { %v7166_v0 = vpop.f32.mrb[62].mxu1 }
 0x7ed   :  { %v1509_v1 = vpop.permute.xlu1 %1508  ;;  %v1507_v28 = vpop.permute.xlu0 %1506 }
 0x7ee   :  { %v1579_v25 = vadd.f32 %v1509_v1, %v1381_v30  ;;  %v1578_v49 = vadd.f32 %v1507_v28, %v1380_v7  ;;  %v7168_v5 = vpop.f32.mrb[63].mxu1  ;;  %v8414_v30 = vld [vmem:[#allocation16_spill] sm:$0xff] }
 0x7ef   :  { %1822 = vperm.xlu0 %5575, %v1561_v27   ;;  %1817 = vperm.xlu1 %5576, %v1560_v37   ;;  %v8410_v37 = vld [vmem:[#allocation6_spill] sm:$0xff]  ;;  %v1384_v7 = vmul.f32 %v8414_v30, %v6559_v57  ;;  %v8427_v30 = vld [vmem:[#allocation32_spill] sm:$0xff] }
 0x7f1   :  { %v1477_v8 = vpop.permute.xlu1 %1476  ;;  %v1475_v63 = vpop.permute.xlu0 %1474 }
 0x7f2   :  { %v1563_v35 = vadd.f32 %v1477_v8, %v1365_v54  ;;  %v1562_v48 = vadd.f32 %v1475_v63, %v1364_v36  ;;  %v8412_v8 = vld [vmem:[#allocation9_spill] sm:$0xff]  ;;  %v8415_v54 = vld [vmem:[#allocation18_spill] sm:$0xff] }
 0x7f3   :  { %2262 = vperm.xlu0 %5575, %v1775_v62   ;;  %2257 = vperm.xlu1 %5576, %v1774_v55   ;;  %v1369_v36 = vmul.f32 %v8415_v54, %v6569_v56 }
 0x7f5   :  { %v1707_v43 = vpop.permute.xlu1 %1706  ;;  %v1705_v44 = vpop.permute.xlu0 %1704 }
 0x7f6   :  { %v1777_v24 = vadd.f32 %v1707_v43, %v6841_v42  ;;  %v1776_v38 = vadd.f32 %v1705_v44, %v6850_v45  ;;  %v8413_v43 = vld [vmem:[#allocation10_spill] sm:$0xff] }
 0x7f7   :  { %2182 = vperm.xlu0 %5575, %v1759_v31   ;;  %2177 = vperm.xlu1 %5576, %v1758_v16   ;;  %v1385_v44 = vmul.f32 %v8413_v43, %v6559_v57  ;;  %v8426_v43 = vld [vmem:[#allocation30_spill] sm:$0xff] }
 0x7f9   :  { %v1675_v6 = vpop.permute.xlu1 %1674  ;;  %v1673_v41 = vpop.permute.xlu0 %1672 }
 0x7fa   :  { %v1761_v9 = vadd.f32 %v1675_v6, %v6863_v13  ;;  %v1760_v51 = vadd.f32 %v1673_v41, %v6872_v29  ;;  %v8408_v13 = vld [vmem:[#allocation8_spill] sm:$0xff] }
 0x7fb   :  { %1912 = vperm.xlu0 %5575, %v1579_v25   ;;  %1907 = vperm.xlu1 %5576, %v1578_v49   ;;  %v1366_v29 = vmul.f32 %v8408_v13, %v6569_v56 }
 0x7fd   :  { %v1513_v4 = vpop.permute.xlu1 %1512  ;;  %v1511_v32 = vpop.permute.xlu0 %1510 }
 0x7fe   :  { %v1581_v42 = vadd.f32 %v1513_v4, %v1383_v22  ;;  %v1580_v45 = vadd.f32 %v1511_v32, %v1382_v18  ;;  %v7194_v4 = vpop.f32.mrb[64].mxu1  ;;  %v8418_v22 = vld [vmem:[#allocation17_spill] sm:$0xff] }
 0x7ff   :  { %1832 = vperm.xlu0 %5575, %v1563_v35   ;;  %1827 = vperm.xlu1 %5576, %v1562_v48   ;;  %v8416_v35 = vld [vmem:[#allocation20_spill] sm:$0xff]  ;;  %v7196_v32 = vpop.f32.mrb[65].mxu1 }
 0x800   :  { %v1368_v48 = vmul.f32 %v8416_v35, %v6569_v56 }
 0x801   :  { %v1481_v14 = vpop.permute.xlu1 %1480  ;;  %v1479_v19 = vpop.permute.xlu0 %1478 }
 0x802   :  { %v1565_v21 = vadd.f32 %v1481_v14, %v1367_v61  ;;  %v1564_v53 = vadd.f32 %v1479_v19, %v1366_v29  ;;  %v7198_v14 = vpop.f32.mrb[66].mxu1  ;;  %v8421_v29 = vld [vmem:[#allocation23_spill] sm:$0xff] }
 0x803   :  { %2272 = vperm.xlu0 %5575, %v1777_v24   ;;  %2267 = vperm.xlu1 %5576, %v1776_v38   ;;  %v7200_v19 = vpop.f32.mrb[67].mxu1 }
 0x805   :  { %v1711_v26 = vpop.permute.xlu1 %1710  ;;  %v1709_v15 = vpop.permute.xlu0 %1708 }
 0x806   :  { %v1779_v27 = vadd.f32 %v1711_v26, %v8409_v52  ;;  %v1778_v1 = vadd.f32 %v1709_v15, %v8410_v37  ;;  %v8417_v26 = vld [vmem:[#allocation11_spill] sm:$0xff]  ;;  %v8422_v52 = vld [vmem:[#allocation29_spill] sm:$0xff] }
 0x807   :  { %2192 = vperm.xlu0 %5575, %v1761_v9   ;;  %2187 = vperm.xlu1 %5576, %v1760_v51   ;;  %v8423_v37 = vld [vmem:[#allocation31_spill] sm:$0xff] }
 0x809   :  { %v1679_v33 = vpop.permute.xlu1 %1678  ;;  %v1677_v20 = vpop.permute.xlu0 %1676 }
 0x80a   :  { %v1763_v55 = vadd.f32 %v1679_v33, %v8411_v17  ;;  %v1762_v63 = vadd.f32 %v1677_v20, %v8412_v8  ;;  %v8420_v33 = vld [vmem:[#allocation21_spill] sm:$0xff]  ;;  %v8424_v8 = vld [vmem:[#allocation24_spill] sm:$0xff] }
 0x80b   :  { %1922 = vperm.xlu0 %5575, %v1581_v42   ;;  %1917 = vperm.xlu1 %5576, %v1580_v45   ;;  %v8419_v42 = vld [vmem:[#allocation19_spill] sm:$0xff] }
 0x80d   :  { %v1517_v46 = vpop.permute.xlu1 %1516  ;;  %v1515_v10 = vpop.permute.xlu0 %1514 }
 0x80e   :  { %v1583_v25 = vadd.f32 %v1517_v46, %v1385_v44  ;;  %v1582_v49 = vadd.f32 %v1515_v10, %v1384_v7  ;;  %v8428_v7 = vld [vmem:[#allocation14_spill] sm:$0xff] }
 0x80f   :  { %1842 = vperm.xlu0 %5575, %v1565_v21   ;;  %1837 = vperm.xlu1 %5576, %v1564_v53   ;;  %v1387_v21 = vmul.f32 %v8421_v29, %v6559_v57  ;;  %v1386_v53 = vmul.f32 %v7016_v60, %v6559_v57  ;;  %v8425_v60 = vld [vmem:[#allocation25_spill] sm:$0xff] }
 0x811   :  { %v1485_v28 = vpop.permute.xlu1 %1484  ;;  %v1483_v62 = vpop.permute.xlu0 %1482 }
 0x812   :  { %v1567_v24 = vadd.f32 %v1485_v28, %v1369_v36  ;;  %v1566_v38 = vadd.f32 %v1483_v62, %v1368_v48 }
 0x813   :  { %2282 = vperm.xlu0 %5575, %v1779_v27   ;;  %2277 = vperm.xlu1 %5576, %v1778_v1   ;;  %v1371_v27 = vmul.f32 %v8422_v52, %v6569_v56  ;;  %v1370_v1 = vmul.f32 %v8423_v37, %v6569_v56 }
 0x815   :  { %v1715_v31 = vpop.permute.xlu1 %1714  ;;  %v1713_v16 = vpop.permute.xlu0 %1712 }
 0x816   :  { %v1781_v15 = vadd.f32 %v1715_v31, %v8417_v26  ;;  %v1780_v18 = vadd.f32 %v1713_v16, %v8418_v22 }
 0x817   :  { %2202 = vperm.xlu0 %5575, %v1763_v55   ;;  %2197 = vperm.xlu1 %5576, %v1762_v63  }
 0x819   :  { %v1683_v6 = vpop.permute.xlu1 %1682  ;;  %v1681_v41 = vpop.permute.xlu0 %1680 }
 0x81a   :  { %v1765_v45 = vadd.f32 %v1683_v6, %v8419_v42  ;;  %v1764_v20 = vadd.f32 %v1681_v41, %v8420_v33 }
 0x81b   :  { %1932 = vperm.xlu0 %5575, %v1583_v25   ;;  %1927 = vperm.xlu1 %5576, %v1582_v49   ;;  %v1784_v25 = vunpack.c.l.bf16 %v8428_v7  ;;  %v8429_v49 = vld [vmem:[#allocation13_spill] sm:$0xff] }
 0x81d   :  { %v1521_v9 = vpop.permute.xlu1 %1520  ;;  %v1519_v51 = vpop.permute.xlu0 %1518  ;;  %v7220_v6 = vrot.slane %v1784_v25, %v8429_v49 }
 0x81e   :  { %v1585_v46 = vadd.f32 %v1521_v9, %v1387_v21  ;;  %v1584_v10 = vadd.f32 %v1519_v51, %v1386_v53  ;;  %v8432_v53 = vld [vmem:[#allocation26_spill] sm:$0xff] }
 0x81f   :  { %1852 = vperm.xlu0 %5575, %v1567_v24   ;;  %1847 = vperm.xlu1 %5576, %v1566_v38   ;;  %v8430_v24 = vld [vmem:[#allocation15_spill] sm:$0xff] }
 0x820   :  { %v7224_v38 = vrot.slane %v1784_v25, %v8430_v24 }
 0x821   :  { %v1489_v61 = vpop.permute.xlu1 %1488  ;;  %v1487_v13 = vpop.permute.xlu0 %1486 }
 0x822   :  { %v1569_v17 = vadd.f32 %v1489_v61, %v1371_v27  ;;  %v1568_v55 = vadd.f32 %v1487_v13, %v1370_v1  ;;  %v8431_v13 = vld [vmem:[#allocation28_spill] sm:$0xff] }
 0x823   :  { %2292 = vperm.xlu0 %5575, %v1781_v15   ;;  %2287 = vperm.xlu1 %5576, %v1780_v18  }
 0x825   :  { %v1719_v28 = vpop.permute.xlu1 %1718  ;;  %v1717_v62 = vpop.permute.xlu0 %1716 }
 0x826   :  { %v1783_v57 = vadd.f32 %v1719_v28, %v8424_v8  ;;  %v1782_v63 = vadd.f32 %v1717_v62, %v8425_v60 }
 0x827   :  { %2212 = vperm.xlu0 %5575, %v1765_v45   ;;  %2207 = vperm.xlu1 %5576, %v1764_v20  }
 0x829   :  { %v1687_v31 = vpop.permute.xlu1 %1686  ;;  %v1685_v16 = vpop.permute.xlu0 %1684 }
 0x82a   :  { %v1767_v44 = vadd.f32 %v1687_v31, %v8426_v43  ;;  %v1766_v56 = vadd.f32 %v1685_v16, %v8427_v30 }
 0x82b   :  { %1942 = vperm.xlu0 %5575, %v1585_v46   ;;  %1937 = vperm.xlu1 %5576, %v1584_v10  }
 0x82f   :  { %1862 = vperm.xlu0 %5575, %v1569_v17   ;;  %1857 = vperm.xlu1 %5576, %v1568_v55  }
 0x833   :  { %2302 = vperm.xlu0 %5575, %v1783_v57   ;;  %2297 = vperm.xlu1 %5576, %v1782_v63  }
 0x837   :  { %2222 = vperm.xlu0 %5575, %v1767_v44   ;;  %2217 = vperm.xlu1 %5576, %v1766_v56  }
 0x83a   :  { %v1873_v41 = vpop.permute.xlu1 %1872  ;;  %v1868_v54 = vpop.permute.xlu0 %1867 }
 0x83b   :  { %v1965_v36 = vmul.f32 %v7220_v6, %v1868_v54  ;;  %v1966_v9 = vmul.f32 %v7220_v6, %v1873_v41  ;;  %v8433_v41 = vld [vmem:[#allocation27_spill] sm:$0xff] }
 0x83d   :  { %v2083_v51 = vadd.f32 %v7100_v12, %v1965_v36  ;;  %v2086_v18 = vadd.f32 %v7106_v34, %v1966_v9 }
 0x83e   :  { %v1793_v35 = vpop.permute.xlu0 %1792  ;;  %v1788_v48 = vpop.permute.xlu1 %1787 }
 0x83f   :  { %v1950_v26 = vmul.f32 %v7220_v6, %v1793_v35  ;;  %v1949_v42 = vmul.f32 %v7220_v6, %v1788_v48  ;;  %v8434_v35 = vld [vmem:[#allocation22_spill] sm:$0xff] }
 0x841   :  { %v2022_v29 = vadd.f32 %v8431_v13, %v1950_v26  ;;  %v2019_v46 = vadd.f32 %v8432_v53, %v1949_v42 }
 0x842   :  { %v2233_v15 = vpop.permute.xlu0 %2232  ;;  %v2228_v22 = vpop.permute.xlu1 %2227 }
 0x843   :  { %v2326_v45 = vmul.f32 %v7224_v38, %v2233_v15  ;;  %v2325_v33 = vmul.f32 %v7224_v38, %v2228_v22 }
 0x845   :  { %v7233_v20 = vadd.f32 %v2326_v45, %v2086_v18  ;;  %v7235_v61 = vadd.f32 %v2325_v33, %v2083_v51 }
 0x846   :  { %v2153_v21 = vpop.permute.xlu0 %2152  ;;  %v2148_v12 = vpop.permute.xlu1 %2147 }
 0x847   :  { %v2310_v10 = vmul.f32 %v7224_v38, %v2153_v21  ;;  %v2309_v34 = vmul.f32 %v7224_v38, %v2148_v12  ;;  %v5316_v52 = vpack.c.bf16 %v7233_v20, %v7235_v61 }
 0x849   :  { %v7243_v27 = vadd.f32 %v2310_v10, %v2022_v29  ;;  %v7245_v37 = vadd.f32 %v2309_v34, %v2019_v46  ;;  %5317 = vmatprep.subr.bf16.mxu0 %v5316_v52 }
 0x84a   :  { %v1883_v1 = vpop.permute.xlu0 %1882  ;;  %v1878_v28 = vpop.permute.xlu1 %1877 }
 0x84b   :  { %v5318_v62 = vpack.c.bf16 %v7243_v27, %v7245_v37  ;;  %v1968_v17 = vmul.f32 %v7220_v6, %v1883_v1  ;;  %v1967_v57 = vmul.f32 %v7220_v6, %v1878_v28 }
 0x84d   :  { %5319 = vmatpush3.bf16.msra.mxu0 %v5318_v62  ;;  %v2094_v60 = vadd.f32 %v7102_v50, %v1968_v17  ;;  %v2091_v43 = vadd.f32 %v7098_v47, %v1967_v57  ;;  %v8435_v17 = vld [vmem:[#allocation36_spill] sm:$0xff]  ;;  %v8436_v57 = vld [vmem:[#allocation34_spill] sm:$0xff] }
 0x84e   :  { %v1803_v55 = vpop.permute.xlu0 %1802  ;;  %v1798_v8 = vpop.permute.xlu1 %1797 }
 0x84f   :  { %v1952_v63 = vmul.f32 %v7220_v6, %v1803_v55  ;;  %v1951_v44 = vmul.f32 %v7220_v6, %v1798_v8 }
 0x851   :  { %v2030_v54 = vadd.f32 %v8433_v41, %v1952_v63  ;;  %v2027_v48 = vadd.f32 %v8434_v35, %v1951_v44 }
 0x852   :  { %v2243_v31 = vpop.permute.xlu0 %2242  ;;  %v2238_v16 = vpop.permute.xlu1 %2237 }
 0x853   :  { %v2328_v30 = vmul.f32 %v7224_v38, %v2243_v31  ;;  %v2327_v56 = vmul.f32 %v7224_v38, %v2238_v16 }
 0x855   :  { %v7257_v7 = vadd.f32 %v2328_v30, %v2094_v60  ;;  %v7259_v25 = vadd.f32 %v2327_v56, %v2091_v43 }
 0x856   :  { %v2163_v36 = vpop.permute.xlu0 %2162  ;;  %v2158_v50 = vpop.permute.xlu1 %2157 }
 0x857   :  { %v2312_v9 = vmul.f32 %v7224_v38, %v2163_v36  ;;  %v2311_v47 = vmul.f32 %v7224_v38, %v2158_v50  ;;  %v5320_v51 = vpack.c.bf16 %v7257_v7, %v7259_v25 }
 0x859   :  { %v7267_v26 = vadd.f32 %v2312_v9, %v2030_v54  ;;  %v7269_v15 = vadd.f32 %v2311_v47, %v2027_v48  ;;  %5321 = vmatprep.subr.bf16.mxu0 %v5320_v51 }
 0x85a   :  { %v1893_v22 = vpop.permute.xlu0 %1892  ;;  %v1888_v18 = vpop.permute.xlu1 %1887 }
 0x85b   :  { %v5322_v42 = vpack.c.bf16 %v7267_v26, %v7269_v15  ;;  %v1970_v45 = vmul.f32 %v7220_v6, %v1893_v22  ;;  %v1969_v29 = vmul.f32 %v7220_v6, %v1888_v18 }
 0x85d   :  { %5323 = vmatpush3.bf16.msra.mxu0 %v5322_v42  ;;  %v2102_v21 = vadd.f32 %v7136_v2, %v1970_v45  ;;  %v2099_v10 = vadd.f32 %v7132_v3, %v1969_v29 }
 0x85e   :  { %v1813_v33 = vpop.permute.xlu0 %1812  ;;  %v1808_v13 = vpop.permute.xlu1 %1807 }
 0x85f   :  { %v1954_v12 = vmul.f32 %v7220_v6, %v1813_v33  ;;  %v1953_v34 = vmul.f32 %v7220_v6, %v1808_v13  ;;  %v8437_v13 = vld [vmem:[#allocation35_spill] sm:$0xff] }
 0x861   :  { %v2038_v55 = vadd.f32 %v8435_v17, %v1954_v12  ;;  %v2035_v60 = vadd.f32 %v8436_v57, %v1953_v34  ;;  %v8438_v12 = vld [vmem:[#allocation33_spill] sm:$0xff] }
 0x862   :  { %v2253_v53 = vpop.permute.xlu0 %2252  ;;  %v2248_v46 = vpop.permute.xlu1 %2247 }
 0x863   :  { %v2330_v52 = vmul.f32 %v7224_v38, %v2253_v53  ;;  %v2329_v1 = vmul.f32 %v7224_v38, %v2248_v46 }
 0x865   :  { %v7281_v28 = vadd.f32 %v2330_v52, %v2102_v21  ;;  %v7283_v62 = vadd.f32 %v2329_v1, %v2099_v10 }
 0x866   :  { %v2173_v8 = vpop.permute.xlu0 %2172  ;;  %v2168_v2 = vpop.permute.xlu1 %2167 }
 0x867   :  { %v2314_v63 = vmul.f32 %v7224_v38, %v2173_v8  ;;  %v2313_v3 = vmul.f32 %v7224_v38, %v2168_v2  ;;  %v5324_v31 = vpack.c.bf16 %v7281_v28, %v7283_v62 }
 0x869   :  { %v7291_v16 = vadd.f32 %v2314_v63, %v2038_v55  ;;  %v7293_v43 = vadd.f32 %v2313_v3, %v2035_v60  ;;  %5325 = vmatprep.subr.bf16.mxu0 %v5324_v31 }
 0x86a   :  { %v1903_v44 = vpop.permute.xlu0 %1902  ;;  %v1898_v30 = vpop.permute.xlu1 %1897 }
 0x86b   :  { %v5326_v56 = vpack.c.bf16 %v7291_v16, %v7293_v43  ;;  %v1972_v41 = vmul.f32 %v7220_v6, %v1903_v44  ;;  %v1971_v50 = vmul.f32 %v7220_v6, %v1898_v30 }
 0x86d   :  { %5327 = vmatpush3.bf16.msra.mxu0 %v5326_v56  ;;  %v2110_v35 = vadd.f32 %v7134_v11, %v1972_v41  ;;  %v2107_v51 = vadd.f32 %v7130_v23, %v1971_v50 }
 0x86e   :  { %v1823_v54 = vpop.permute.xlu0 %1822  ;;  %v1818_v36 = vpop.permute.xlu1 %1817 }
 0x86f   :  { %v1956_v48 = vmul.f32 %v7220_v6, %v1823_v54  ;;  %v1955_v22 = vmul.f32 %v7220_v6, %v1818_v36 }
 0x871   :  { %v2046_v29 = vadd.f32 %v8437_v13, %v1956_v48  ;;  %v2043_v53 = vadd.f32 %v8438_v12, %v1955_v22 }
 0x872   :  { %v2263_v9 = vpop.permute.xlu0 %2262  ;;  %v2258_v47 = vpop.permute.xlu1 %2257 }
 0x873   :  { %v2332_v18 = vmul.f32 %v7224_v38, %v2263_v9  ;;  %v2331_v42 = vmul.f32 %v7224_v38, %v2258_v47  ;;  %v8439_v9 = vld [vmem:[#allocation38_spill] sm:$0xff] }
 0x875   :  { %v7305_v45 = vadd.f32 %v2332_v18, %v2110_v35  ;;  %v7307_v33 = vadd.f32 %v2331_v42, %v2107_v51 }
 0x876   :  { %v2183_v21 = vpop.permute.xlu0 %2182  ;;  %v2178_v11 = vpop.permute.xlu1 %2177 }
 0x877   :  { %v2316_v46 = vmul.f32 %v7224_v38, %v2183_v21  ;;  %v2315_v23 = vmul.f32 %v7224_v38, %v2178_v11  ;;  %v5328_v10 = vpack.c.bf16 %v7305_v45, %v7307_v33 }
 0x879   :  { %v7315_v34 = vadd.f32 %v2316_v46, %v2046_v29  ;;  %v7317_v52 = vadd.f32 %v2315_v23, %v2043_v53  ;;  %5329 = vmatprep.subr.bf16.mxu0 %v5328_v10 }
 0x87a   :  { %v1913_v1 = vpop.permute.xlu0 %1912  ;;  %v1908_v17 = vpop.permute.xlu1 %1907 }
 0x87b   :  { %v5330_v55 = vpack.c.bf16 %v7315_v34, %v7317_v52  ;;  %v1974_v8 = vmul.f32 %v7220_v6, %v1913_v1  ;;  %v1973_v60 = vmul.f32 %v7220_v6, %v1908_v17 }
 0x87d   :  { %5331 = vmatpush3.bf16.msra.mxu0 %v5330_v55  ;;  %v2118_v63 = vadd.f32 %v7168_v5, %v1974_v8  ;;  %v2115_v30 = vadd.f32 %v7164_v40, %v1973_v60 }
 0x87e   :  { %v1833_v2 = vpop.permute.xlu0 %1832  ;;  %v1828_v57 = vpop.permute.xlu1 %1827 }
 0x87f   :  { %v1958_v3 = vmul.f32 %v7220_v6, %v1833_v2  ;;  %v1957_v56 = vmul.f32 %v7220_v6, %v1828_v57 }
 0x881   :  { %v2054_v35 = vadd.f32 %v7084_v58, %v1958_v3  ;;  %v2051_v47 = vadd.f32 %v8439_v9, %v1957_v56 }
 0x882   :  { %v2273_v31 = vpop.permute.xlu0 %2272  ;;  %v2268_v44 = vpop.permute.xlu1 %2267 }
 0x883   :  { %v2334_v41 = vmul.f32 %v7224_v38, %v2273_v31  ;;  %v2333_v54 = vmul.f32 %v7224_v38, %v2268_v44  ;;  %v8441_v44 = vld [vmem:[#allocation37_spill] sm:$0xff] }
 0x885   :  { %v7329_v36 = vadd.f32 %v2334_v41, %v2118_v63  ;;  %v7331_v50 = vadd.f32 %v2333_v54, %v2115_v30  ;;  %v8440_v63 = vld [vmem:[#allocation39_spill] sm:$0xff] }
 0x886   :  { %v2193_v48 = vpop.permute.xlu0 %2192  ;;  %v2188_v5 = vpop.permute.xlu1 %2187 }
 0x887   :  { %v2318_v51 = vmul.f32 %v7224_v38, %v2193_v48  ;;  %v2317_v40 = vmul.f32 %v7224_v38, %v2188_v5  ;;  %v5332_v22 = vpack.c.bf16 %v7329_v36, %v7331_v50 }
 0x889   :  { %v7339_v18 = vadd.f32 %v2318_v51, %v2054_v35  ;;  %v7341_v42 = vadd.f32 %v2317_v40, %v2051_v47  ;;  %5333 = vmatprep.subr.bf16.mxu0 %v5332_v22 }
 0x88a   :  { %v1923_v13 = vpop.permute.xlu0 %1922  ;;  %v1918_v29 = vpop.permute.xlu1 %1917 }
 0x88b   :  { %v5334_v58 = vpack.c.bf16 %v7339_v18, %v7341_v42  ;;  %v1976_v21 = vmul.f32 %v7220_v6, %v1923_v13  ;;  %v1975_v53 = vmul.f32 %v7220_v6, %v1918_v29 }
 0x88d   :  { %5335 = vmatpush3.bf16.msra.mxu0 %v5334_v58  ;;  %v2126_v46 = vadd.f32 %v7166_v0, %v1976_v21  ;;  %v2123_v17 = vadd.f32 %v7162_v39, %v1975_v53 }
 0x88e   :  { %v1843_v11 = vpop.permute.xlu0 %1842  ;;  %v1838_v12 = vpop.permute.xlu1 %1837 }
 0x88f   :  { %v1960_v23 = vmul.f32 %v7220_v6, %v1843_v11  ;;  %v1959_v55 = vmul.f32 %v7220_v6, %v1838_v12 }
 0x891   :  { %v2062_v3 = vadd.f32 %v8440_v63, %v1960_v23  ;;  %v2059_v30 = vadd.f32 %v8441_v44, %v1959_v55  ;;  %v8442_v55 = vld [vmem:[#allocation41_spill] sm:$0xff] }
 0x892   :  { %v2283_v10 = vpop.permute.xlu0 %2282  ;;  %v2278_v1 = vpop.permute.xlu1 %2277 }
 0x893   :  { %v2336_v8 = vmul.f32 %v7224_v38, %v2283_v10  ;;  %v2335_v2 = vmul.f32 %v7224_v38, %v2278_v1 }
 0x895   :  { %v7353_v57 = vadd.f32 %v2336_v8, %v2126_v46  ;;  %v7355_v60 = vadd.f32 %v2335_v2, %v2123_v17 }
 0x896   :  { %v2203_v31 = vpop.permute.xlu0 %2202  ;;  %v2198_v0 = vpop.permute.xlu1 %2197 }
 0x897   :  { %v2320_v56 = vmul.f32 %v7224_v38, %v2203_v31  ;;  %v2319_v39 = vmul.f32 %v7224_v38, %v2198_v0  ;;  %v5336_v41 = vpack.c.bf16 %v7353_v57, %v7355_v60 }
 0x899   :  { %v7363_v54 = vadd.f32 %v2320_v56, %v2062_v3  ;;  %v7365_v35 = vadd.f32 %v2319_v39, %v2059_v30  ;;  %5337 = vmatprep.subr.bf16.mxu0 %v5336_v41 }
 0x89a   :  { %v1933_v48 = vpop.permute.xlu0 %1932  ;;  %v1928_v5 = vpop.permute.xlu1 %1927 }
 0x89b   :  { %v5338_v9 = vpack.c.bf16 %v7363_v54, %v7365_v35  ;;  %v1978_v47 = vmul.f32 %v7220_v6, %v1933_v48  ;;  %v1977_v22 = vmul.f32 %v7220_v6, %v1928_v5 }
 0x89d   :  { %5339 = vmatpush3.bf16.msra.mxu0 %v5338_v9  ;;  %v2134_v13 = vadd.f32 %v7200_v19, %v1978_v47  ;;  %v2131_v11 = vadd.f32 %v7196_v32, %v1977_v22 }
 0x89e   :  { %v1853_v51 = vpop.permute.xlu0 %1852  ;;  %v1848_v40 = vpop.permute.xlu1 %1847 }
 0x89f   :  { %v1962_v29 = vmul.f32 %v7220_v6, %v1853_v51  ;;  %v1961_v12 = vmul.f32 %v7220_v6, %v1848_v40 }
 0x8a1   :  { %v2070_v1 = vadd.f32 %v7096_v59, %v1962_v29  ;;  %v2067_v8 = vadd.f32 %v8442_v55, %v1961_v12 }
 0x8a2   :  { %v2293_v58 = vpop.permute.xlu0 %2292  ;;  %v2288_v21 = vpop.permute.xlu1 %2287 }
 0x8a3   :  { %v2338_v53 = vmul.f32 %v7224_v38, %v2293_v58  ;;  %v2337_v46 = vmul.f32 %v7224_v38, %v2288_v21  ;;  %v8443_v21 = vld [vmem:[#allocation42_spill] sm:$0xff] }
 0x8a5   :  { %v7377_v23 = vadd.f32 %v2338_v53, %v2134_v13  ;;  %v7379_v10 = vadd.f32 %v2337_v46, %v2131_v11  ;;  %v8444_v53 = vld [vmem:[#allocation40_spill] sm:$0xff] }
 0x8a6   :  { %v2213_v17 = vpop.permute.xlu0 %2212  ;;  %v2208_v19 = vpop.permute.xlu1 %2207 }
 0x8a7   :  { %v2322_v2 = vmul.f32 %v7224_v38, %v2213_v17  ;;  %v2321_v32 = vmul.f32 %v7224_v38, %v2208_v19  ;;  %v5340_v63 = vpack.c.bf16 %v7377_v23, %v7379_v10  ;;  %v2461_v17 = vmul.f32 %v7235_v61, %v7235_v61 }
 0x8a8   :  { %v2462_v19 = vmul.f32 %v7233_v20, %v7233_v20 }
 0x8a9   :  { %v7387_v3 = vadd.f32 %v2322_v2, %v2070_v1  ;;  %v7389_v31 = vadd.f32 %v2321_v32, %v2067_v8  ;;  %5341 = vmatprep.subr.bf16.mxu0 %v5340_v63  ;;  %v2446_v2 = vmul.f32 %v7243_v27, %v7243_v27 }
 0x8aa   :  { %v1943_v0 = vpop.permute.xlu0 %1942  ;;  %v1938_v44 = vpop.permute.xlu1 %1937  ;;  %v5348_v63 = vpack.c.bf16 %v2462_v19, %v2461_v17  ;;  %v2471_v19 = vmul.f32 %v7355_v60, %v7355_v60 }
 0x8ab   :  { %v5342_v59 = vpack.c.bf16 %v7387_v3, %v7389_v31  ;;  %v1980_v30 = vmul.f32 %v7220_v6, %v1943_v0  ;;  %v1979_v41 = vmul.f32 %v7220_v6, %v1938_v44  ;;  %v2463_v0 = vmul.f32 %v7259_v25, %v7259_v25 }
 0x8ac   :  { %v2464_v44 = vmul.f32 %v7257_v7, %v7257_v7 }
 0x8ad   :  { %5343 = vmatpush3.bf16.msra.mxu0 %v5342_v59  ;;  %v2142_v48 = vadd.f32 %v7198_v14, %v1980_v30  ;;  %v2139_v51 = vadd.f32 %v7194_v4, %v1979_v41  ;;  %v2448_v59 = vmul.f32 %v7267_v26, %v7267_v26  ;;  %v2447_v30 = vmul.f32 %v7269_v15, %v7269_v15 }
 0x8ae   :  { %v1863_v56 = vpop.permute.xlu0 %1862  ;;  %v1858_v39 = vpop.permute.xlu1 %1857  ;;  %v5352_v41 = vpack.c.bf16 %v2464_v44, %v2463_v0  ;;  %v2473_v44 = vmul.f32 %v7379_v10, %v7379_v10 }
 0x8af   :  { %v1964_v5 = vmul.f32 %v7220_v6, %v1863_v56  ;;  %v1963_v40 = vmul.f32 %v7220_v6, %v1858_v39  ;;  %v8445_v39 = vmov 0.00390625  }
 0x8b1   :  { %v2078_v11 = vadd.f32 %v8443_v21, %v1964_v5  ;;  %v2075_v46 = vadd.f32 %v8444_v53, %v1963_v40  ;;  %v2466_v5 = vmul.f32 %v7281_v28, %v7281_v28  ;;  %v2452_v21 = vmul.f32 %v7315_v34, %v7315_v34 }
 0x8b2   :  { %v2303_v9 = vpop.permute.xlu0 %2302  ;;  %v2298_v47 = vpop.permute.xlu1 %2297  ;;  %v2469_v53 = vmul.f32 %v7331_v50, %v7331_v50 }
 0x8b3   :  { %v2340_v22 = vmul.f32 %v7224_v38, %v2303_v9  ;;  %v2339_v13 = vmul.f32 %v7224_v38, %v2298_v47  ;;  %v2450_v9 = vmul.f32 %v7291_v16, %v7291_v16  ;;  %v2449_v47 = vmul.f32 %v7293_v43, %v7293_v43 }
 0x8b5   :  { %v7401_v29 = vadd.f32 %v2340_v22, %v2142_v48  ;;  %v7403_v58 = vadd.f32 %v2339_v13, %v2139_v51  ;;  %v2465_v48 = vmul.f32 %v7283_v62, %v7283_v62  ;;  %v5354_v51 = vpack.c.bf16 %v2448_v59, %v2447_v30 }
 0x8b6   :  { %v2223_v12 = vpop.permute.xlu0 %2222  ;;  %v2218_v14 = vpop.permute.xlu1 %2217  ;;  %v2467_v22 = vmul.f32 %v7307_v33, %v7307_v33  ;;  %v2468_v13 = vmul.f32 %v7305_v45, %v7305_v45  ;;  %v2474_v59 = vmul.f32 %v7377_v23, %v7377_v23  ;;  %v2458_v30 = vmul.f32 %v7387_v3, %v7387_v3 }
 0x8b7   :  { %v2324_v1 = vmul.f32 %v7224_v38, %v2223_v12  ;;  %v2323_v4 = vmul.f32 %v7224_v38, %v2218_v14  ;;  %v5344_v6 = vpack.c.bf16 %v7401_v29, %v7403_v58  ;;  %v2445_v38 = vmul.f32 %v7245_v37, %v7245_v37 }
 0x8b8   :  { %v5356_v40 = vpack.c.bf16 %v2466_v5, %v2465_v48  ;;  %v5358_v12 = vpack.c.bf16 %v2450_v9, %v2449_v47  ;;  %v5360_v14 = vpack.c.bf16 %v2468_v13, %v2467_v22  ;;  %v5372_v48 = vpack.c.bf16 %v2474_v59, %v2473_v44  ;;  %v2374_v44 = vld [vmem:[%s8308_s3 + $0x10] ss:$0 sm:$0xff] }
 0x8b9   :  { %v7415_v55 = vadd.f32 %v2324_v1, %v2078_v11  ;;  %v7417_v8 = vadd.f32 %v2323_v4, %v2075_v46  ;;  %5345 = vmatprep.subr.bf16.mxu0 %v5344_v6  ;;  %v5350_v56 = vpack.c.bf16 %v2446_v2, %v2445_v38  ;;  %v2451_v11 = vmul.f32 %v7317_v52, %v7317_v52 }
 0x8ba   :  { %v2470_v46 = vmul.f32 %v7329_v36, %v7329_v36  ;;  %v2454_v1 = vmul.f32 %v7339_v18, %v7339_v18  ;;  %v2453_v4 = vmul.f32 %v7341_v42, %v7341_v42  ;;  %v2472_v2 = vmul.f32 %v7353_v57, %v7353_v57 }
 0x8bb   :  { %v5346_v32 = vpack.c.bf16 %v7415_v55, %v7417_v8  ;;  %v5362_v6 = vpack.c.bf16 %v2452_v21, %v2451_v11  ;;  %v2456_v38 = vmul.f32 %v7363_v54, %v7363_v54  ;;  %v2475_v5 = vmul.f32 %v7403_v58, %v7403_v58  ;;  %v5582_v21 = vld [vmem:[%s8306_s1 + $0x38] sm:$0xff]   ;;  %v5583_v11 = vld [vmem:[%s8306_s1 + $0x40] sm:$0xff]  }
 0x8bc   :  { %v5364_v17 = vpack.c.bf16 %v2470_v46, %v2469_v53  ;;  %v5368_v0 = vpack.c.bf16 %v2472_v2, %v2471_v19  ;;  %v2476_v9 = vmul.f32 %v7401_v29, %v7401_v29  ;;  %v2460_v47 = vmul.f32 %v7415_v55, %v7415_v55  ;;  %5046 = vmatprep.subr.bf16.mxu1 %v5582_v21 }
 0x8bd   :  { %5347 = vmatpush3.bf16.msra.mxu0 %v5346_v32  ;;  %v2455_v32 = vmul.f32 %v7365_v35, %v7365_v35  ;;  %5047 = vmatpush3.bf16.msra.mxu1 %v5582_v21 }
 0x8be   :  { %5349 = vmatprep.subr.bf16.mxu0 %v5348_v63  ;;  %v5366_v63 = vpack.c.bf16 %v2454_v1, %v2453_v4  ;;  %v5376_v22 = vpack.c.bf16 %v2476_v9, %v2475_v5  ;;  %5048 = vmatprep.subr.bf16.mxu1 %v5583_v11 }
 0x8c0   :  { %2440 = vmatmul.mubr.f32.vlgmr.msra.gmra.mrb[48].mxu0 %v8445_v39 }
 0x8c1   :  { %5351 = vmatpush3.bf16.msra.mxu0 %v5350_v56  ;;  %2541 = vmatprep.mubr.f32.mxu0 %v8445_v39  ;;  %v2457_v56 = vmul.f32 %v7389_v31, %v7389_v31 }
 0x8c2   :  { %5353 = vmatprep.subr.bf16.mxu0 %v5352_v41  ;;  %v5370_v41 = vpack.c.bf16 %v2456_v38, %v2455_v32  ;;  %5049 = vmatpush3.bf16.msra.mxu1 %v5583_v11  ;;  %v2373_v32 = vld [vmem:[%s8308_s3 + $0x7] ss:$0 sm:$0xff] }
 0x8c5   :  { %5355 = vmatpush3.bf16.msra.mxu0 %v5354_v51  ;;  %v2459_v51 = vmul.f32 %v7417_v8, %v7417_v8 }
 0x8c6   :  { %5357 = vmatprep.subr.bf16.mxu0 %v5356_v40  ;;  %v5374_v40 = vpack.c.bf16 %v2458_v30, %v2457_v56 }
 0x8c7   :  { %v5378_v13 = vpack.c.bf16 %v2460_v47, %v2459_v51 }
 0x8c9   :  { %5359 = vmatpush3.bf16.msra.mxu0 %v5358_v12  ;;  %v5584_v12 = vld [vmem:[%s8306_s1 + $0x48] sm:$0xff]  }
 0x8ca   :  { %5361 = vmatprep.subr.bf16.mxu0 %v5360_v14  ;;  %v5585_v14 = vld [vmem:[%s8306_s1 + $0x50] sm:$0xff]   ;;  %5050 = vmatprep.subr.bf16.mxu1 %v5584_v12 }
 0x8cb   :  { %5051 = vmatpush3.bf16.msra.mxu1 %v5584_v12 }
 0x8cc   :  { %5052 = vmatprep.subr.bf16.mxu1 %v5585_v14 }
 0x8cd   :  { %5363 = vmatpush3.bf16.msra.mxu0 %v5362_v6 }
 0x8ce   :  { %5365 = vmatprep.subr.bf16.mxu0 %v5364_v17 }
 0x8cf   :  { %5053 = vmatpush3.bf16.msra.mxu1 %v5585_v14 }
 0x8d1   :  { %5367 = vmatpush3.bf16.msra.mxu0 %v5366_v63 }
 0x8d2   :  { %5369 = vmatprep.subr.bf16.mxu0 %v5368_v0 }
 0x8d5   :  { %5371 = vmatpush3.bf16.msra.mxu0 %v5370_v41 }
 0x8d6   :  { %5373 = vmatprep.subr.bf16.mxu0 %v5372_v48 }
 0x8d9   :  { %5375 = vmatpush3.bf16.msra.mxu0 %v5374_v40 }
 0x8da   :  { %5377 = vmatprep.subr.bf16.mxu0 %v5376_v22 }
 0x8dd   :  { %5379 = vmatpush3.bf16.msra.mxu0 %v5378_v13 }
 0x8e0   :  { %2542 = vmatmul.mubr.f32.vlgmr.msra.gmra.mrb[50].mxu0 %v8445_v39 }
 0x8e1   :  { %2982 = vmatprep.mubr.f32.mxu0 %v8445_v39 }
 0x993   :  { %v4682_v53 = vpop.f32.mrb[48].mxu0 }
 0x994   :  { %v4683_v46 = vpop.f32.mrb[49].mxu0 }
 0x995   :  { %v4684_v1 = vadd.f32 %v4683_v46, %v4682_v53 }
 0x997   :  { %v2547_v17 = vmul.f32 %v4684_v1, %v4684_v1 }
 0x9b3   :  { %v4717_v4 = vpop.f32.mrb[50].mxu0 }
 0x9b4   :  { %v4718_v6 = vpop.f32.mrb[51].mxu0 }
 0x9b5   :  { %v4719_v19 = vadd.f32 %v4718_v6, %v4717_v4 }
 0x9b7   :  { %v2548_v2 = vsub.f32 %v4719_v19, %v2547_v17 }
 0x9b9   :  { %v2549_v38 = vadd.f32 1e-05, %v2548_v2 }
 0x9bb   :  { %5626 = vrsqrt.f32 %v2549_v38 }
 0x9c5   :  { %v5627_v63 = vpop.eup %5626 }
 0x9c6   :  { %v2551_v0 = vmul.f32 %v5627_v63, %v2373_v32 }
 0x9c8   :  { %v2552_v59 = vmul.f32 %v4684_v1, %v2551_v0  ;;  %v2557_v30 = vrot.slane %v2551_v0, %v8429_v49 }
 0x9ca   :  { %v2553_v56 = vsub.f32 %v2374_v44, %v2552_v59  ;;  %v2558_v41 = vmul.f32 %v2557_v30, %v7245_v37  ;;  %v2559_v48 = vmul.f32 %v2557_v30, %v7243_v27  ;;  %v2560_v5 = vmul.f32 %v2557_v30, %v7269_v15 }
 0x9cb   :  { %v2561_v9 = vmul.f32 %v2557_v30, %v7267_v26  ;;  %v2562_v47 = vmul.f32 %v2557_v30, %v7293_v43  ;;  %v2563_v51 = vmul.f32 %v2557_v30, %v7291_v16  ;;  %v2564_v40 = vmul.f32 %v2557_v30, %v7317_v52 }
 0x9cc   :  { %v2593_v22 = vrot.slane %v2553_v56, %v8429_v49  ;;  %v2565_v13 = vmul.f32 %v2557_v30, %v7315_v34  ;;  %v2566_v21 = vmul.f32 %v2557_v30, %v7341_v42  ;;  %v2567_v37 = vmul.f32 %v2557_v30, %v7339_v18 }
 0x9cd   :  { %v2568_v27 = vmul.f32 %v2557_v30, %v7365_v35  ;;  %v2569_v15 = vmul.f32 %v2557_v30, %v7363_v54  ;;  %v2570_v26 = vmul.f32 %v2557_v30, %v7389_v31  ;;  %v2571_v43 = vmul.f32 %v2557_v30, %v7387_v3 }
 0x9ce   :  { %v2572_v16 = vmul.f32 %v2557_v30, %v7417_v8  ;;  %v2573_v52 = vmul.f32 %v2557_v30, %v7415_v55  ;;  %v2574_v11 = vmul.f32 %v2557_v30, %v7235_v61  ;;  %v2575_v34 = vmul.f32 %v2557_v30, %v7233_v20 }
 0x9cf   :  { %v2576_v42 = vmul.f32 %v2557_v30, %v7259_v25  ;;  %v2577_v18 = vmul.f32 %v2557_v30, %v7257_v7  ;;  %v2578_v35 = vmul.f32 %v2557_v30, %v7283_v62  ;;  %v2579_v54 = vmul.f32 %v2557_v30, %v7281_v28 }
 0x9d0   :  { %v2580_v31 = vmul.f32 %v2557_v30, %v7307_v33  ;;  %v2581_v3 = vmul.f32 %v2557_v30, %v7305_v45  ;;  %v2582_v8 = vmul.f32 %v2557_v30, %v7331_v50  ;;  %v2583_v55 = vmul.f32 %v2557_v30, %v7329_v36 }
 0x9d1   :  { %v2584_v61 = vmul.f32 %v2557_v30, %v7355_v60  ;;  %v2585_v20 = vmul.f32 %v2557_v30, %v7353_v57  ;;  %v2586_v25 = vmul.f32 %v2557_v30, %v7379_v10  ;;  %v2587_v7 = vmul.f32 %v2557_v30, %v7377_v23 }
 0x9d2   :  { %v2588_v62 = vmul.f32 %v2557_v30, %v7403_v58  ;;  %v2589_v28 = vmul.f32 %v2557_v30, %v7401_v29  ;;  %v2594_v12 = vadd.f32 %v2593_v22, %v2558_v41  ;;  %v2595_v33 = vadd.f32 %v2593_v22, %v2559_v48 }
 0x9d3   :  { %v2596_v14 = vadd.f32 %v2593_v22, %v2560_v5  ;;  %v2597_v45 = vadd.f32 %v2593_v22, %v2561_v9  ;;  %v2598_v53 = vadd.f32 %v2593_v22, %v2562_v47  ;;  %v2599_v50 = vadd.f32 %v2593_v22, %v2563_v51 }
 0x9d4   :  { %v2600_v46 = vadd.f32 %v2593_v22, %v2564_v40  ;;  %v2601_v36 = vadd.f32 %v2593_v22, %v2565_v13  ;;  %v2602_v1 = vadd.f32 %v2593_v22, %v2566_v21  ;;  %v2603_v60 = vadd.f32 %v2593_v22, %v2567_v37 }
 0x9d5   :  { %v2604_v57 = vadd.f32 %v2593_v22, %v2568_v27  ;;  %v2605_v4 = vadd.f32 %v2593_v22, %v2569_v15  ;;  %v2606_v10 = vadd.f32 %v2593_v22, %v2570_v26  ;;  %v2607_v6 = vadd.f32 %v2593_v22, %v2571_v43 }
 0x9d6   :  { %v2608_v23 = vadd.f32 %v2593_v22, %v2572_v16  ;;  %v2609_v17 = vadd.f32 %v2593_v22, %v2573_v52  ;;  %v2610_v58 = vadd.f32 %v2593_v22, %v2574_v11  ;;  %v2611_v19 = vadd.f32 %v2593_v22, %v2575_v34 }
 0x9d7   :  { %v2612_v29 = vadd.f32 %v2593_v22, %v2576_v42  ;;  %v2613_v2 = vadd.f32 %v2593_v22, %v2577_v18  ;;  %v2614_v38 = vadd.f32 %v2593_v22, %v2578_v35  ;;  %v2615_v32 = vadd.f32 %v2593_v22, %v2579_v54 }
 0x9d8   :  { %v2616_v63 = vadd.f32 %v2593_v22, %v2580_v31  ;;  %v2617_v0 = vadd.f32 %v2593_v22, %v2581_v3  ;;  %v2618_v44 = vadd.f32 %v2593_v22, %v2582_v8  ;;  %v2619_v59 = vadd.f32 %v2593_v22, %v2583_v55 }
 0x9d9   :  { %v2620_v30 = vadd.f32 %v2593_v22, %v2584_v61  ;;  %v2621_v56 = vadd.f32 %v2593_v22, %v2585_v20  ;;  %v2622_v41 = vadd.f32 %v2593_v22, %v2586_v25  ;;  %v2623_v48 = vadd.f32 %v2593_v22, %v2587_v7 }
 0x9da   :  { %v2624_v5 = vadd.f32 %v2593_v22, %v2588_v62  ;;  %v2625_v9 = vadd.f32 %v2593_v22, %v2589_v28  ;;  %v2628_v47 = vmax.f32 %v2596_v14, 0.0  ;;  %v2629_v51 = vmax.f32 %v2597_v45, 0.0 }
 0x9db   :  { %v2626_v40 = vmax.f32 %v2594_v12, 0.0  ;;  %v2627_v13 = vmax.f32 %v2595_v33, 0.0  ;;  %v2630_v21 = vmax.f32 %v2598_v53, 0.0  ;;  %v2631_v37 = vmax.f32 %v2599_v50, 0.0 }
 0x9dc   :  { %v2667_v27 = vpack.c.bf16 %v2629_v51, %v2628_v47  ;;  %v2632_v15 = vmax.f32 %v2600_v46, 0.0  ;;  %v2633_v26 = vmax.f32 %v2601_v36, 0.0  ;;  %v2634_v43 = vmax.f32 %v2602_v1, 0.0 }
 0x9dd   :  { %v2666_v16 = vpack.c.bf16 %v2627_v13, %v2626_v40  ;;  %v2668_v52 = vpack.c.bf16 %v2631_v37, %v2630_v21  ;;  %v2635_v11 = vmax.f32 %v2603_v60, 0.0  ;;  %v2636_v34 = vmax.f32 %v2604_v57, 0.0 }
 0x9de   :  { %v2669_v42 = vpack.c.bf16 %v2633_v26, %v2632_v15  ;;  %v2637_v18 = vmax.f32 %v2605_v4, 0.0  ;;  %v2638_v35 = vmax.f32 %v2606_v10, 0.0  ;;  %v2639_v54 = vmax.f32 %v2607_v6, 0.0 }
 0x9df   :  { %5054 = vmatprep.mubr.msk.bf16.mxu1 %vm2706_vm6, %v2666_v16  ;;  %v2670_v22 = vpack.c.bf16 %v2635_v11, %v2634_v43  ;;  %v2640_v31 = vmax.f32 %v2608_v23, 0.0  ;;  %v2641_v3 = vmax.f32 %v2609_v17, 0.0  ;;  %v2642_v8 = vmax.f32 %v2610_v58, 0.0 }
 0x9e0   :  { %5055 = vmatmul.mubr.msk.bf16.vlgmr.msra.gmra.mrb[68].mxu1 %vm2706_vm6, %v2667_v27  ;;  %v2671_v55 = vpack.c.bf16 %v2637_v18, %v2636_v34  ;;  %v2672_v61 = vpack.c.bf16 %v2639_v54, %v2638_v35  ;;  %v2643_v20 = vmax.f32 %v2611_v19, 0.0  ;;  %v2644_v25 = vmax.f32 %v2612_v29, 0.0 }
 0x9e1   :  { %5058 = vmatprep.mubr.msk.bf16.mxu1 %vm2706_vm6, %v2668_v52  ;;  %v2673_v7 = vpack.c.bf16 %v2641_v3, %v2640_v31  ;;  %v2645_v62 = vmax.f32 %v2613_v2, 0.0  ;;  %v2646_v28 = vmax.f32 %v2614_v38, 0.0  ;;  %v2647_v12 = vmax.f32 %v2615_v32, 0.0 }
 0x9e2   :  { %v2674_v33 = vpack.c.bf16 %v2643_v20, %v2642_v8  ;;  %v2648_v14 = vmax.f32 %v2616_v63, 0.0  ;;  %v2649_v45 = vmax.f32 %v2617_v0, 0.0  ;;  %v2650_v53 = vmax.f32 %v2618_v44, 0.0 }
 0x9e3   :  { %v2675_v50 = vpack.c.bf16 %v2645_v62, %v2644_v25  ;;  %v2676_v46 = vpack.c.bf16 %v2647_v12, %v2646_v28  ;;  %v2651_v36 = vmax.f32 %v2619_v59, 0.0  ;;  %v2652_v1 = vmax.f32 %v2620_v30, 0.0 }
 0x9e4   :  { %v2677_v60 = vpack.c.bf16 %v2649_v45, %v2648_v14  ;;  %v2653_v57 = vmax.f32 %v2621_v56, 0.0  ;;  %v2654_v4 = vmax.f32 %v2622_v41, 0.0  ;;  %v2655_v10 = vmax.f32 %v2623_v48, 0.0 }
 0x9e5   :  { %v2678_v6 = vpack.c.bf16 %v2651_v36, %v2650_v53  ;;  %v2656_v23 = vmax.f32 %v2624_v5, 0.0  ;;  %v2657_v17 = vmax.f32 %v2625_v9, 0.0  ;;  %v8446_v2 = vmov 0  }
 0x9e6   :  { %v2679_v58 = vpack.c.bf16 %v2653_v57, %v2652_v1  ;;  %v2680_v19 = vpack.c.bf16 %v2655_v10, %v2654_v4 }
 0x9e7   :  { %v2681_v29 = vpack.c.bf16 %v2657_v17, %v2656_v23 }
 0x9e8   :  { %5059 = vmatmul.mubr.msk.bf16.gmra.mrb[72].mxu1 %vm2706_vm6, %v2669_v42 }
 0x9e9   :  { %5062 = vmatprep.mubr.msk.bf16.mxu1 %vm2706_vm6, %v2670_v22 }
 0x9f0   :  { %5063 = vmatmul.mubr.msk.bf16.gmra.mrb[76].mxu1 %vm2706_vm6, %v2671_v55 }
 0x9f1   :  { %5066 = vmatprep.mubr.msk.bf16.mxu1 %vm2706_vm6, %v2672_v61 }
 0x9f8   :  { %5067 = vmatmul.mubr.msk.bf16.gmra.mrb[80].mxu1 %vm2706_vm6, %v2673_v7 }
 0x9f9   :  { %5070 = vmatprep.mubr.msk.bf16.mxu1 %vm2706_vm6, %v2674_v33 }
 0xa00   :  { %5071 = vmatmul.mubr.msk.bf16.gmra.mrb[84].mxu1 %vm2706_vm6, %v2675_v50 }
 0xa01   :  { %5074 = vmatprep.mubr.msk.bf16.mxu1 %vm2706_vm6, %v2676_v46 }
 0xa08   :  { %5075 = vmatmul.mubr.msk.bf16.gmra.mrb[88].mxu1 %vm2706_vm6, %v2677_v60 }
 0xa09   :  { %5078 = vmatprep.mubr.msk.bf16.mxu1 %vm2706_vm6, %v2678_v6 }
 0xa10   :  { %5079 = vmatmul.mubr.msk.bf16.gmra.mrb[92].mxu1 %vm2706_vm6, %v2679_v58 }
 0xa11   :  { %5082 = vmatprep.mubr.msk.bf16.mxu1 %vm2706_vm6, %v2680_v19 }
 0xa18   :  { %5083 = vmatmul.mubr.msk.bf16.gmra.mrb[96].mxu1 %vm2706_vm6, %v2681_v29 }
 0xa19   :  { %3265 = vmatprep.mubr.bf16.mxu1 %v8446_v2 }
 0xab3   :  { %v7554_v38 = vpop.f32.mrb[68].mxu1 }
 0xab4   :  { %v7556_v32 = vpop.f32.mrb[69].mxu1  ;;  %v7562_v0 = vmul.f32 %v7554_v38, %v7554_v38 }
 0xab5   :  { %v7558_v63 = vpop.f32.mrb[70].mxu1  ;;  %v7574_v56 = vmul.f32 %v7556_v32, %v7556_v32 }
 0xab6   :  { %v5386_v44 = vpack.c.bf16 %v7558_v63, %v7554_v38  ;;  %v7568_v59 = vmul.f32 %v7558_v63, %v7558_v63  ;;  %v7570_v30 = vpop.f32.mrb[71].mxu1 }
 0xab7   :  { %v5382_v41 = vpack.c.bf16 %v7570_v30, %v7556_v32  ;;  %v7580_v48 = vmul.f32 %v7570_v30, %v7570_v30 }
 0xab9   :  { %v5414_v9 = vpack.c.bf16 %v7580_v48, %v7574_v56 }
 0xabb   :  { %v7586_v47 = vpop.f32.mrb[72].mxu1 }
 0xabc   :  { %v7588_v51 = vpop.f32.mrb[73].mxu1  ;;  %v7594_v13 = vmul.f32 %v7586_v47, %v7586_v47 }
 0xabd   :  { %v7590_v40 = vpop.f32.mrb[74].mxu1  ;;  %v7606_v15 = vmul.f32 %v7588_v51, %v7588_v51 }
 0xabe   :  { %v5394_v21 = vpack.c.bf16 %v7590_v40, %v7586_v47  ;;  %v7600_v37 = vmul.f32 %v7590_v40, %v7590_v40  ;;  %v7602_v27 = vpop.f32.mrb[75].mxu1 }
 0xabf   :  { %v5390_v26 = vpack.c.bf16 %v7602_v27, %v7588_v51  ;;  %v7612_v43 = vmul.f32 %v7602_v27, %v7602_v27 }
 0xac3   :  { %v7618_v11 = vpop.f32.mrb[76].mxu1 }
 0xac4   :  { %v7620_v34 = vpop.f32.mrb[77].mxu1  ;;  %v7626_v18 = vmul.f32 %v7618_v11, %v7618_v11 }
 0xac5   :  { %v7622_v42 = vpop.f32.mrb[78].mxu1  ;;  %v7638_v31 = vmul.f32 %v7620_v34, %v7620_v34 }
 0xac6   :  { %v5402_v35 = vpack.c.bf16 %v7622_v42, %v7618_v11  ;;  %v7632_v54 = vmul.f32 %v7622_v42, %v7622_v42  ;;  %v7634_v22 = vpop.f32.mrb[79].mxu1 }
 0xac7   :  { %v5398_v3 = vpack.c.bf16 %v7634_v22, %v7620_v34  ;;  %v7644_v8 = vmul.f32 %v7634_v22, %v7634_v22 }
 0xac9   :  { %v8450_v56 = vpack.c.bf16 %v7644_v8, %v7638_v31  ;;  %v5595_v31 = vld [vmem:[#allocation2 + $0x30] ss:$8 sps:$4 sm:$0xff]  }
 0xacb   :  { %v7650_v20 = vpop.f32.mrb[80].mxu1 }
 0xacc   :  { %v7652_v25 = vpop.f32.mrb[81].mxu1  ;;  %v7658_v62 = vmul.f32 %v7650_v20, %v7650_v20 }
 0xacd   :  { %v7654_v7 = vpop.f32.mrb[82].mxu1  ;;  %v7670_v14 = vmul.f32 %v7652_v25, %v7652_v25 }
 0xace   :  { %v5410_v28 = vpack.c.bf16 %v7654_v7, %v7650_v20  ;;  %v7664_v12 = vmul.f32 %v7654_v7, %v7654_v7  ;;  %v7666_v33 = vpop.f32.mrb[83].mxu1 }
 0xacf   :  { %v5406_v45 = vpack.c.bf16 %v7666_v33, %v7652_v25  ;;  %v7676_v53 = vmul.f32 %v7666_v33, %v7666_v33 }
 0xad0   :  { %v8453_v48 = vpack.c.bf16 %v7664_v12, %v7658_v62 }
 0xad3   :  { %v5072_v36 = vpop.f32.mrb[84].mxu1 }
 0xad4   :  { %v2853_v1 = vpop.f32.mrb[85].mxu1  ;;  %v7682_v57 = vmul.f32 %v5072_v36, %v5072_v36 }
 0xad5   :  { %v5073_v60 = vpop.f32.mrb[86].mxu1  ;;  %v3004_v23 = vmul.f32 %v2853_v1, %v2853_v1 }
 0xad6   :  { %v5384_v4 = vpack.c.bf16 %v5073_v60, %v5072_v36  ;;  %v7684_v10 = vmul.f32 %v5073_v60, %v5073_v60  ;;  %v2856_v6 = vpop.f32.mrb[87].mxu1 }
 0xad7   :  { %v5380_v17 = vpack.c.bf16 %v2856_v6, %v2853_v1  ;;  %v3005_v58 = vmul.f32 %v2856_v6, %v2856_v6 }
 0xad8   :  { %v5416_v19 = vpack.c.bf16 %v7684_v10, %v7682_v57 }
 0xad9   :  { %v5412_v29 = vpack.c.bf16 %v3005_v58, %v3004_v23  ;;  %5381 = vmatprep.subr.bf16.mxu0 %v5380_v17 }
 0xada   :  { %5383 = vmatpush3.bf16.msra.mxu0 %v5382_v41 }
 0xadb   :  { %v5076_v50 = vpop.f32.mrb[88].mxu1  ;;  %5385 = vmatprep.subr.bf16.mxu0 %v5384_v4 }
 0xadc   :  { %v2869_v46 = vpop.f32.mrb[89].mxu1  ;;  %v3010_v61 = vmul.f32 %v5076_v50, %v5076_v50 }
 0xadd   :  { %v5077_v55 = vpop.f32.mrb[90].mxu1  ;;  %v3008_v1 = vmul.f32 %v2869_v46, %v2869_v46 }
 0xade   :  { %v5392_v16 = vpack.c.bf16 %v5077_v55, %v5076_v50  ;;  %v3011_v52 = vmul.f32 %v5077_v55, %v5077_v55  ;;  %v2872_v36 = vpop.f32.mrb[91].mxu1  ;;  %5387 = vmatpush3.bf16.msra.mxu0 %v5386_v44 }
 0xadf   :  { %v5388_v60 = vpack.c.bf16 %v2872_v36, %v2869_v46  ;;  %v3009_v6 = vmul.f32 %v2872_v36, %v2872_v36 }
 0xae0   :  { %v5424_v5 = vpack.c.bf16 %v3011_v52, %v3010_v61 }
 0xae1   :  { %v5420_v57 = vpack.c.bf16 %v3009_v6, %v3008_v1  ;;  %5389 = vmatprep.subr.bf16.mxu0 %v5388_v60 }
 0xae2   :  { %5391 = vmatpush3.bf16.msra.mxu0 %v5390_v26 }
 0xae3   :  { %v5080_v41 = vpop.f32.mrb[92].mxu1  ;;  %5393 = vmatprep.subr.bf16.mxu0 %v5392_v16 }
 0xae4   :  { %v2885_v4 = vpop.f32.mrb[93].mxu1  ;;  %v3014_v23 = vmul.f32 %v5080_v41, %v5080_v41 }
 0xae5   :  { %v5081_v10 = vpop.f32.mrb[94].mxu1  ;;  %v3012_v44 = vmul.f32 %v2885_v4, %v2885_v4 }
 0xae6   :  { %v5400_v17 = vpack.c.bf16 %v5081_v10, %v5080_v41  ;;  %v3015_v50 = vmul.f32 %v5081_v10, %v5081_v10  ;;  %v2888_v55 = vpop.f32.mrb[95].mxu1  ;;  %5395 = vmatpush3.bf16.msra.mxu0 %v5394_v21 }
 0xae7   :  { %v5396_v58 = vpack.c.bf16 %v2888_v55, %v2885_v4  ;;  %v3013_v46 = vmul.f32 %v2888_v55, %v2888_v55 }
 0xae8   :  { %v5432_v36 = vpack.c.bf16 %v3015_v50, %v3014_v23 }
 0xae9   :  { %v5428_v52 = vpack.c.bf16 %v3013_v46, %v3012_v44  ;;  %5397 = vmatprep.subr.bf16.mxu0 %v5396_v58  ;;  %v2917_v44 = vld [vmem:[%s8308_s3 + $0x12] ss:$0 sm:$0xff] }
 0xaea   :  { %5399 = vmatpush3.bf16.msra.mxu0 %v5398_v3  ;;  %v8448_v3 = vpack.c.bf16 %v7612_v43, %v7606_v15  ;;  %v5591_v15 = vld [vmem:[#allocation2 + $0x14] ss:$8 sps:$4 sm:$0xff]   ;;  %v5592_v43 = vld [vmem:[#allocation2 + $0x20] ss:$8 sps:$4 sm:$0xff]  }
 0xaeb   :  { %v5084_v26 = vpop.f32.mrb[96].mxu1  ;;  %5401 = vmatprep.subr.bf16.mxu0 %v5400_v17 }
 0xaec   :  { %v2901_v16 = vpop.f32.mrb[97].mxu1  ;;  %v3018_v1 = vmul.f32 %v5084_v26, %v5084_v26 }
 0xaed   :  { %v5085_v61 = vpop.f32.mrb[98].mxu1  ;;  %v3016_v21 = vmul.f32 %v2901_v16, %v2901_v16 }
 0xaee   :  { %v5408_v60 = vpack.c.bf16 %v5085_v61, %v5084_v26  ;;  %v3019_v6 = vmul.f32 %v5085_v61, %v5085_v61  ;;  %v2904_v41 = vpop.f32.mrb[99].mxu1  ;;  %5403 = vmatpush3.bf16.msra.mxu0 %v5402_v35  ;;  %v8447_v35 = vpack.c.bf16 %v7568_v59, %v7562_v0  ;;  %v8451_v0 = vpack.c.bf16 %v7632_v54, %v7626_v18  ;;  %v5594_v18 = vld [vmem:[#allocation2 + $0x24] ss:$8 sps:$4 sm:$0xff]   ;;  %v5597_v54 = vld [vmem:[#allocation2 + $0x34] ss:$8 sps:$4 sm:$0xff]  }
 0xaef   :  { %v5404_v10 = vpack.c.bf16 %v2904_v41, %v2901_v16  ;;  %v3017_v4 = vmul.f32 %v2904_v41, %v2904_v41  ;;  %v8452_v59 = vpack.c.bf16 %v7676_v53, %v7670_v14 }
 0xaf0   :  { %v5440_v55 = vpack.c.bf16 %v3019_v6, %v3018_v1 }
 0xaf1   :  { %v5436_v23 = vpack.c.bf16 %v3017_v4, %v3016_v21  ;;  %5405 = vmatprep.subr.bf16.mxu0 %v5404_v10 }
 0xaf2   :  { %5407 = vmatpush3.bf16.msra.mxu0 %v5406_v45 }
 0xaf3   :  { %5409 = vmatprep.subr.bf16.mxu0 %v5408_v60 }
 0xaf6   :  { %5411 = vmatpush3.bf16.msra.mxu0 %v5410_v28  ;;  %v8449_v28 = vpack.c.bf16 %v7600_v37, %v7594_v13  ;;  %v5588_v13 = vld [vmem:[#allocation2 + $0x4] ss:$8 sps:$4 sm:$0xff]   ;;  %v5589_v37 = vld [vmem:[#allocation2 + $0x10] ss:$8 sps:$4 sm:$0xff]  }
 0xaf7   :  { %5413 = vmatprep.subr.bf16.mxu0 %v5412_v29  ;;  %3233 = vmatprep.subr.bf16.mxu1 %v5588_v13 }
 0xaf9   :  { %2983 = vmatmul.mubr.f32.vlgmr.msra.gmra.mrb[52].mxu0 %v8445_v39 }
 0xafa   :  { %5415 = vmatpush3.bf16.msra.mxu0 %v5414_v9  ;;  %3084 = vmatprep.mubr.f32.mxu0 %v8445_v39  ;;  %v5586_v9 = vld [vmem:[#allocation2] ss:$8 sps:$4 sm:$0xff]  }
 0xafb   :  { %5417 = vmatprep.subr.bf16.mxu0 %v5416_v19  ;;  %3234 = vmatpush1.bf16.msra.mxu1 %v5586_v9 }
 0xafc   :  { %3235 = vmatprep.subr.bf16.mxu1 %v5591_v15 }
 0xafe   :  { %5419 = vmatpush3.bf16.msra.mxu0 %v8447_v35 }
 0xaff   :  { %5421 = vmatprep.subr.bf16.mxu0 %v5420_v57  ;;  %3236 = vmatpush1.bf16.msra.mxu1 %v5589_v37  ;;  %v2916_v57 = vld [vmem:[%s8308_s3 + $0x11] ss:$0 sm:$0xff] }
 0xb00   :  { %3237 = vmatprep.subr.bf16.mxu1 %v5594_v18 }
 0xb02   :  { %5423 = vmatpush3.bf16.msra.mxu0 %v8448_v3 }
 0xb03   :  { %5425 = vmatprep.subr.bf16.mxu0 %v5424_v5  ;;  %v8454_v5 = vmov 0.0   ;;  %3238 = vmatpush1.bf16.msra.mxu1 %v5592_v43 }
 0xb04   :  { %3239 = vmatprep.subr.bf16.mxu1 %v5597_v54 }
 0xb06   :  { %5427 = vmatpush3.bf16.msra.mxu0 %v8449_v28 }
 0xb07   :  { %5429 = vmatprep.subr.bf16.mxu0 %v5428_v52  ;;  %3240 = vmatpush1.bf16.msra.mxu1 %v5595_v31 }
 0xb0a   :  { %5431 = vmatpush3.bf16.msra.mxu0 %v8450_v56 }
 0xb0b   :  { %5433 = vmatprep.subr.bf16.mxu0 %v5432_v36 }
 0xb0e   :  { %5435 = vmatpush3.bf16.msra.mxu0 %v8451_v0 }
 0xb0f   :  { %5437 = vmatprep.subr.bf16.mxu0 %v5436_v23 }
 0xb12   :  { %5439 = vmatpush3.bf16.msra.mxu0 %v8452_v59 }
 0xb13   :  { %5441 = vmatprep.subr.bf16.mxu0 %v5440_v55 }
 0xb16   :  { %5443 = vmatpush3.bf16.msra.mxu0 %v8453_v48 }
 0xb19   :  { %3085 = vmatmul.mubr.f32.vlgmr.msra.gmra.mrb[54].mxu0 %v8445_v39 }
 0xb1a   :  { %3414 = vmatprep.mubr.f32.mxu0 %v8454_v5 }
 0xbcc   :  { %v4772_v8 = vpop.f32.mrb[52].mxu0 }
 0xbcd   :  { %v4773_v39 = vpop.f32.mrb[53].mxu0 }
 0xbce   :  { %v4774_v62 = vadd.f32 %v4773_v39, %v4772_v8 }
 0xbd0   :  { %v3090_v45 = vmul.f32 %v4774_v62, %v4774_v62 }
 0xbec   :  { %v4807_v12 = vpop.f32.mrb[54].mxu0 }
 0xbed   :  { %v4808_v14 = vpop.f32.mrb[55].mxu0 }
 0xbee   :  { %v4809_v53 = vadd.f32 %v4808_v14, %v4807_v12 }
 0xbf0   :  { %v3091_v19 = vsub.f32 %v4809_v53, %v3090_v45 }
 0xbf2   :  { %v3092_v29 = vadd.f32 1e-05, %v3091_v19 }
 0xbf4   :  { %5628 = vrsqrt.f32 %v3092_v29 }
 0xbfe   :  { %v5629_v17 = vpop.eup %5628 }
 0xbff   :  { %v3094_v50 = vmul.f32 %v5629_v17, %v2916_v57 }
 0xc01   :  { %v3095_v58 = vmul.f32 %v4774_v62, %v3094_v50  ;;  %v3100_v46 = vrot.slane %v3094_v50, %v8429_v49 }
 0xc03   :  { %v3096_v36 = vsub.f32 %v2917_v44, %v3095_v58  ;;  %v3101_v52 = vmul.f32 %v3100_v46, %v7556_v32  ;;  %v3102_v26 = vmul.f32 %v3100_v46, %v7570_v30  ;;  %v3103_v16 = vmul.f32 %v7554_v38, %v3100_v46 }
 0xc04   :  { %v3104_v61 = vmul.f32 %v7558_v63, %v3100_v46  ;;  %v3105_v1 = vmul.f32 %v3100_v46, %v7588_v51  ;;  %v3106_v60 = vmul.f32 %v3100_v46, %v7602_v27  ;;  %v3107_v6 = vmul.f32 %v7586_v47, %v3100_v46 }
 0xc05   :  { %v3120_v41 = vrot.slane %v3096_v36, %v8429_v49  ;;  %v3108_v21 = vmul.f32 %v7590_v40, %v3100_v46  ;;  %v3109_v10 = vmul.f32 %v3100_v46, %v7620_v34  ;;  %v3110_v32 = vmul.f32 %v3100_v46, %v7634_v22 }
 0xc06   :  { %v3111_v30 = vmul.f32 %v7618_v11, %v3100_v46  ;;  %v3112_v38 = vmul.f32 %v7622_v42, %v3100_v46  ;;  %v3113_v63 = vmul.f32 %v3100_v46, %v7652_v25  ;;  %v3114_v51 = vmul.f32 %v3100_v46, %v7666_v33 }
 0xc07   :  { %v3121_v4 = vadd.f32 %v3120_v41, %v3101_v52  ;;  %v3122_v27 = vadd.f32 %v3120_v41, %v3102_v26  ;;  %v3123_v55 = vadd.f32 %v3120_v41, %v3103_v16  ;;  %v3124_v47 = vadd.f32 %v3120_v41, %v3104_v61 }
 0xc08   :  { %v3125_v23 = vadd.f32 %v3120_v41, %v3105_v1  ;;  %v3126_v35 = vadd.f32 %v3120_v41, %v3106_v60  ;;  %v3127_v3 = vadd.f32 %v3120_v41, %v3107_v6  ;;  %v3128_v40 = vadd.f32 %v3120_v41, %v3108_v21 }
 0xc09   :  { %v3137_v28 = vmax.f32 %v3121_v4, 0.0  ;;  %v3138_v34 = vmax.f32 %v3122_v27, 0.0  ;;  %v3139_v56 = vmax.f32 %v3123_v55, 0.0  ;;  %v3140_v22 = vmax.f32 %v3124_v47, 0.0 }
 0xc0a   :  { %v3141_v0 = vmax.f32 %v3125_v23, 0.0  ;;  %v3142_v11 = vmax.f32 %v3126_v35, 0.0  ;;  %v3143_v59 = vmax.f32 %v3127_v3, 0.0  ;;  %v3144_v42 = vmax.f32 %v3128_v40, 0.0 }
 0xc0b   :  { %v3161_v48 = vpack.c.bf16 %v3138_v34, %v3137_v28  ;;  %v3162_v25 = vpack.c.bf16 %v3140_v22, %v3139_v56  ;;  %v3129_v9 = vadd.f32 %v3120_v41, %v3109_v10  ;;  %v3130_v33 = vadd.f32 %v3120_v41, %v3110_v32 }
 0xc0c   :  { %v3163_v13 = vpack.c.bf16 %v3142_v11, %v3141_v0  ;;  %v3164_v37 = vpack.c.bf16 %v3144_v42, %v3143_v59  ;;  %v3131_v15 = vadd.f32 %v3120_v41, %v3111_v30  ;;  %v3132_v43 = vadd.f32 %v3120_v41, %v3112_v38 }
 0xc0d   :  { %4418 = vmatmul.mubr.msk.bf16.vlgmr.msra.gmra.mrb[100].mxu1 %vm2706_vm6, %v3161_v48  ;;  %v3145_v18 = vmax.f32 %v3129_v9, 0.0  ;;  %v3146_v54 = vmax.f32 %v3130_v33, 0.0  ;;  %v3133_v31 = vadd.f32 %v3120_v41, %v3113_v63  ;;  %v3134_v8 = vadd.f32 %v3120_v41, %v3114_v51 }
 0xc0e   :  { %3275 = vmatprep.mubr.bf16.mxu1 %v8446_v2  ;;  %v3147_v39 = vmax.f32 %v3131_v15, 0.0  ;;  %v3148_v62 = vmax.f32 %v3132_v43, 0.0  ;;  %v3115_v12 = vmul.f32 %v7650_v20, %v3100_v46  ;;  %v3116_v14 = vmul.f32 %v7654_v7, %v3100_v46 }
 0xc0f   :  { %v3165_v45 = vpack.c.bf16 %v3146_v54, %v3145_v18  ;;  %v3149_v53 = vmax.f32 %v3133_v31, 0.0  ;;  %v3150_v19 = vmax.f32 %v3134_v8, 0.0 }
 0xc10   :  { %v3166_v29 = vpack.c.bf16 %v3148_v62, %v3147_v39  ;;  %v3135_v57 = vadd.f32 %v3120_v41, %v3115_v12  ;;  %v3136_v17 = vadd.f32 %v3120_v41, %v3116_v14 }
 0xc11   :  { %v3167_v50 = vpack.c.bf16 %v3150_v19, %v3149_v53 }
 0xc12   :  { %v3151_v44 = vmax.f32 %v3135_v57, 0.0  ;;  %v3152_v58 = vmax.f32 %v3136_v17, 0.0 }
 0xc14   :  { %v3168_v36 = vpack.c.bf16 %v3152_v58, %v3151_v44 }
 0xc15   :  { %4419 = vmatmul.mubr.msk.bf16.gmra.mrb[104].mxu1 %vm2706_vm6, %v3162_v25 }
 0xc16   :  { %3285 = vmatprep.mubr.bf16.mxu1 %v8446_v2 }
 0xc1d   :  { %4420 = vmatmul.mubr.msk.bf16.gmra.mrb[108].mxu1 %vm2706_vm6, %v3163_v13 }
 0xc1e   :  { %3295 = vmatprep.mubr.bf16.mxu1 %v8446_v2 }
 0xc25   :  { %4421 = vmatmul.mubr.msk.bf16.gmra.mrb[112].mxu1 %vm2706_vm6, %v3164_v37 }
 0xc26   :  { %3305 = vmatprep.mubr.bf16.mxu1 %v8446_v2 }
 0xc2d   :  { %4422 = vmatmul.mubr.msk.bf16.gmra.mrb[116].mxu1 %vm2706_vm6, %v3165_v45 }
 0xc2e   :  { %3315 = vmatprep.mubr.bf16.mxu1 %v8446_v2 }
 0xc35   :  { %4423 = vmatmul.mubr.msk.bf16.gmra.mrb[120].mxu1 %vm2706_vm6, %v3166_v29 }
 0xc36   :  { %3325 = vmatprep.mubr.bf16.mxu1 %v8446_v2 }
 0xc3d   :  { %4424 = vmatmul.mubr.msk.bf16.gmra.mrb[124].mxu1 %vm2706_vm6, %v3167_v50 }
 0xc3e   :  { %3335 = vmatprep.mubr.bf16.mxu1 %v8446_v2 }
 0xc45   :  { %4425 = vmatmul.mubr.msk.bf16.gmra.mrb[128].mxu1 %vm2706_vm6, %v3168_v36 }
 0xce0   :  { %v7770_v20 = vpop.f32.mrb[100].mxu1 }
 0xce1   :  { %v7772_v7 = vpop.f32.mrb[101].mxu1  ;;  %v7778_v52 = vmul.f32 %v7770_v20, %v7770_v20 }
 0xce2   :  { %v7774_v46 = vpop.f32.mrb[102].mxu1  ;;  %v7790_v61 = vmul.f32 %v7772_v7, %v7772_v7 }
 0xce3   :  { %v5446_v26 = vpack.c.bf16 %v7774_v46, %v7770_v20  ;;  %v7784_v16 = vmul.f32 %v7774_v46, %v7774_v46  ;;  %v7786_v2 = vpop.f32.mrb[103].mxu1 }
 0xce4   :  { %v5444_v1 = vpack.c.bf16 %v7786_v2, %v7772_v7  ;;  %v7796_v60 = vmul.f32 %v7786_v2, %v7786_v2 }
 0xce6   :  { %5445 = vmatprep.subr.bf16.mxu0 %v5444_v1 }
 0xce7   :  { %5447 = vmatpush1.bf16.msra.mxu0 %v5446_v26 }
 0xce8   :  { %v7802_v21 = vpop.f32.mrb[104].mxu1 }
 0xce9   :  { %v7804_v10 = vpop.f32.mrb[105].mxu1  ;;  %v7810_v30 = vmul.f32 %v7802_v21, %v7802_v21 }
 0xcea   :  { %v7806_v32 = vpop.f32.mrb[106].mxu1  ;;  %v7822_v4 = vmul.f32 %v7804_v10, %v7804_v10 }
 0xceb   :  { %v5450_v38 = vpack.c.bf16 %v7806_v32, %v7802_v21  ;;  %v7816_v63 = vmul.f32 %v7806_v32, %v7806_v32  ;;  %v7818_v51 = vpop.f32.mrb[107].mxu1 }
 0xcec   :  { %v5448_v27 = vpack.c.bf16 %v7818_v51, %v7804_v10  ;;  %v7828_v55 = vmul.f32 %v7818_v51, %v7818_v51 }
 0xcee   :  { %5449 = vmatprep.subr.bf16.mxu0 %v5448_v27 }
 0xcef   :  { %5451 = vmatpush1.bf16.msra.mxu0 %v5450_v38 }
 0xcf0   :  { %v7834_v35 = vpop.f32.mrb[108].mxu1 }
 0xcf1   :  { %v7836_v3 = vpop.f32.mrb[109].mxu1  ;;  %v7842_v28 = vmul.f32 %v7834_v35, %v7834_v35 }
 0xcf2   :  { %v7838_v40 = vpop.f32.mrb[110].mxu1  ;;  %v7854_v0 = vmul.f32 %v7836_v3, %v7836_v3 }
 0xcf3   :  { %v5454_v34 = vpack.c.bf16 %v7838_v40, %v7834_v35  ;;  %v7848_v56 = vmul.f32 %v7838_v40, %v7838_v40  ;;  %v7850_v22 = vpop.f32.mrb[111].mxu1 }
 0xcf4   :  { %v5452_v11 = vpack.c.bf16 %v7850_v22, %v7836_v3  ;;  %v7860_v59 = vmul.f32 %v7850_v22, %v7850_v22 }
 0xcf6   :  { %5453 = vmatprep.subr.bf16.mxu0 %v5452_v11 }
 0xcf7   :  { %5455 = vmatpush1.bf16.msra.mxu0 %v5454_v34 }
 0xcf8   :  { %v7866_v25 = vpop.f32.mrb[112].mxu1 }
 0xcf9   :  { %v7868_v9 = vpop.f32.mrb[113].mxu1  ;;  %v7874_v13 = vmul.f32 %v7866_v25, %v7866_v25 }
 0xcfa   :  { %v7870_v33 = vpop.f32.mrb[114].mxu1  ;;  %v7886_v18 = vmul.f32 %v7868_v9, %v7868_v9 }
 0xcfb   :  { %v5458_v37 = vpack.c.bf16 %v7870_v33, %v7866_v25  ;;  %v7880_v15 = vmul.f32 %v7870_v33, %v7870_v33  ;;  %v7882_v43 = vpop.f32.mrb[115].mxu1 }
 0xcfc   :  { %v5456_v54 = vpack.c.bf16 %v7882_v43, %v7868_v9  ;;  %v7892_v31 = vmul.f32 %v7882_v43, %v7882_v43 }
 0xcfe   :  { %5457 = vmatprep.subr.bf16.mxu0 %v5456_v54 }
 0xcff   :  { %5459 = vmatpush1.bf16.msra.mxu0 %v5458_v37 }
 0xd00   :  { %v7898_v62 = vpop.f32.mrb[116].mxu1 }
 0xd01   :  { %v7900_v12 = vpop.f32.mrb[117].mxu1  ;;  %v7906_v45 = vmul.f32 %v7898_v62, %v7898_v62 }
 0xd02   :  { %v7902_v14 = vpop.f32.mrb[118].mxu1  ;;  %v3438_v57 = vmul.f32 %v7900_v12, %v7900_v12 }
 0xd03   :  { %v5462_v53 = vpack.c.bf16 %v7902_v14, %v7898_v62  ;;  %v7912_v19 = vmul.f32 %v7902_v14, %v7902_v14  ;;  %v7914_v29 = vpop.f32.mrb[119].mxu1 }
 0xd04   :  { %v5460_v17 = vpack.c.bf16 %v7914_v29, %v7900_v12  ;;  %v3440_v50 = vmul.f32 %v7914_v29, %v7914_v29 }
 0xd05   :  { %v5494_v44 = vpack.c.bf16 %v7912_v19, %v7906_v45 }
 0xd06   :  { %5461 = vmatprep.subr.bf16.mxu0 %v5460_v17  ;;  %v5492_v58 = vpack.c.bf16 %v3440_v50, %v3438_v57 }
 0xd07   :  { %5463 = vmatpush1.bf16.msra.mxu0 %v5462_v53 }
 0xd08   :  { %v7924_v36 = vpop.f32.mrb[120].mxu1 }
 0xd09   :  { %v7926_v26 = vpop.f32.mrb[121].mxu1  ;;  %v3441_v38 = vmul.f32 %v7924_v36, %v7924_v36 }
 0xd0a   :  { %v7928_v1 = vpop.f32.mrb[122].mxu1  ;;  %v3442_v37 = vmul.f32 %v7926_v26, %v7926_v26 }
 0xd0b   :  { %v5466_v27 = vpack.c.bf16 %v7928_v1, %v7924_v36  ;;  %v3443_v34 = vmul.f32 %v7928_v1, %v7928_v1  ;;  %v7936_v11 = vpop.f32.mrb[123].mxu1 }
 0xd0c   :  { %v5464_v54 = vpack.c.bf16 %v7936_v11, %v7926_v26  ;;  %v3444_v45 = vmul.f32 %v7936_v11, %v7936_v11 }
 0xd0d   :  { %v5498_v53 = vpack.c.bf16 %v3443_v34, %v3441_v38 }
 0xd0e   :  { %5465 = vmatprep.subr.bf16.mxu0 %v5464_v54  ;;  %v5496_v19 = vpack.c.bf16 %v3444_v45, %v3442_v37 }
 0xd0f   :  { %5467 = vmatpush1.bf16.msra.mxu0 %v5466_v27 }
 0xd10   :  { %v7944_v57 = vpop.f32.mrb[124].mxu1 }
 0xd11   :  { %8455 = vst [vmem:[#allocation8_spill] sm:$0xff] %v7944_v57  ;;  %v7946_v17 = vpop.f32.mrb[125].mxu1  ;;  %v3445_v8 = vmul.f32 %v7944_v57, %v7944_v57 }
 0xd12   :  { %v7948_v50 = vpop.f32.mrb[126].mxu1  ;;  %v3446_v38 = vmul.f32 %v7946_v17, %v7946_v17 }
 0xd13   :  { %8456 = vst [vmem:[#allocation5_spill] sm:$0xff] %v7948_v50  ;;  %v5470_v39 = vpack.c.bf16 %v7948_v50, %v7944_v57  ;;  %v3447_v42 = vmul.f32 %v7948_v50, %v7948_v50  ;;  %v7956_v48 = vpop.f32.mrb[127].mxu1 }
 0xd14   :  { %v5468_v27 = vpack.c.bf16 %v7956_v48, %v7946_v17  ;;  %v3448_v34 = vmul.f32 %v7956_v48, %v7956_v48 }
 0xd15   :  { %v5502_v37 = vpack.c.bf16 %v3447_v42, %v3445_v8 }
 0xd16   :  { %5469 = vmatprep.subr.bf16.mxu0 %v5468_v27  ;;  %v5500_v54 = vpack.c.bf16 %v3448_v34, %v3446_v38  ;;  %v8460_v34 = vpack.c.bf16 %v7796_v60, %v7790_v61  ;;  %v8464_v61 = vpack.c.bf16 %v7860_v59, %v7854_v0  ;;  %v8465_v60 = vpack.c.bf16 %v7848_v56, %v7842_v28  ;;  %v5603_v28 = vld [vmem:[#allocation2 + $0x60] ss:$8 sps:$4 sm:$0xff]   ;;  %v5604_v56 = vld [vmem:[#allocation2 + $0xf0] ss:$8 sps:$4 sm:$0xff]  }
 0xd17   :  { %5471 = vmatpush1.bf16.msra.mxu0 %v5470_v39  ;;  %v5605_v0 = vld [vmem:[#allocation2 + $0x70] ss:$8 sps:$4 sm:$0xff]   ;;  %v5606_v59 = vld [vmem:[#allocation2 + $0x100] ss:$8 sps:$4 sm:$0xff]  }
 0xd18   :  { %v7964_v45 = vpop.f32.mrb[128].mxu1 }
 0xd19   :  { %8457 = vst [vmem:[#allocation6_spill] sm:$0xff] %v7964_v45  ;;  %v7966_v47 = vpop.f32.mrb[129].mxu1  ;;  %v3449_v6 = vmul.f32 %v7964_v45, %v7964_v45 }
 0xd1a   :  { %v7968_v23 = vpop.f32.mrb[130].mxu1  ;;  %v3450_v42 = vmul.f32 %v7966_v47, %v7966_v47 }
 0xd1b   :  { %8458 = vst [vmem:[#allocation7_spill] sm:$0xff] %v7968_v23  ;;  %v5474_v41 = vpack.c.bf16 %v7968_v23, %v7964_v45  ;;  %v3451_v50 = vmul.f32 %v7968_v23, %v7968_v23  ;;  %v7976_v57 = vpop.f32.mrb[131].mxu1  ;;  %v5701_v23 = vmov 0.0078125   ;;  %v8461_v45 = vpack.c.bf16 %v7784_v16, %v7778_v52 }
 0xd1c   :  { %8459 = vst [vmem:[#allocation9_spill] sm:$0xff] %v7976_v57  ;;  %v5472_v8 = vpack.c.bf16 %v7976_v57, %v7966_v47  ;;  %v3452_v39 = vmul.f32 %v7976_v57, %v7976_v57  ;;  %v8462_v57 = vpack.c.bf16 %v7828_v55, %v7822_v4  ;;  %v8466_v52 = vpack.c.bf16 %v7892_v31, %v7886_v18  ;;  %v5601_v4 = vld [vmem:[#allocation2 + $0x50] ss:$8 sps:$4 sm:$0xff]   ;;  %v5602_v55 = vld [vmem:[#allocation2 + $0xe0] ss:$8 sps:$4 sm:$0xff]  }
 0xd1d   :  { %v5506_v38 = vpack.c.bf16 %v3451_v50, %v3449_v6  ;;  %v8463_v6 = vpack.c.bf16 %v7816_v63, %v7810_v30  ;;  %v8467_v16 = vpack.c.bf16 %v7880_v15, %v7874_v13  ;;  %v5599_v30 = vld [vmem:[#allocation2 + $0x40] ss:$8 sps:$4 sm:$0xff]   ;;  %v5600_v63 = vld [vmem:[#allocation2 + $0xd0] ss:$8 sps:$4 sm:$0xff]  }
 0xd1e   :  { %5473 = vmatprep.subr.bf16.mxu0 %v5472_v8  ;;  %v5504_v27 = vpack.c.bf16 %v3452_v39, %v3450_v42  ;;  %v5607_v13 = vld [vmem:[#allocation2 + $0x80] ss:$8 sps:$4 sm:$0xff]   ;;  %v5608_v15 = vld [vmem:[#allocation2 + $0x110] ss:$8 sps:$4 sm:$0xff]  }
 0xd1f   :  { %5475 = vmatpush1.bf16.msra.mxu0 %v5474_v41  ;;  %v5598_v41 = vld [vmem:[#allocation2 + $0xc0] ss:$8 sps:$4 sm:$0xff]   ;;  %v5609_v18 = vld [vmem:[#allocation2 + $0x90] ss:$8 sps:$4 sm:$0xff]  }
 0xd20   :  { %5477 = vmatprep.subr.bf16.mxu0 %v8460_v34  ;;  %4810 = vmatprep.subr.bf16.mxu1 %v5598_v41  ;;  %v5610_v31 = vld [vmem:[#allocation2 + $0x120] ss:$8 sps:$4 sm:$0xff]   ;;  %v5702_v34 = vmov 1966171168  }
 0xd21   :  { %4811 = vmatpush3.bf16.msra.mxu1 %v5599_v30 }
 0xd22   :  { %3415 = vmatmul.mubr.f32.vlgmr.msra.gmra.mrb[56].mxu0 %v5701_v23  ;;  %4812 = vmatprep.subr.bf16.mxu1 %v5600_v63 }
 0xd23   :  { %5479 = vmatpush1.bf16.msra.mxu0 %v8461_v45  ;;  %3517 = vmatprep.mubr.f32.mxu0 %v8454_v5 }
 0xd24   :  { %5481 = vmatprep.subr.bf16.mxu0 %v8462_v57 }
 0xd25   :  { %4813 = vmatpush3.bf16.msra.mxu1 %v5601_v4 }
 0xd26   :  { %4814 = vmatprep.subr.bf16.mxu1 %v5602_v55 }
 0xd27   :  { %5483 = vmatpush1.bf16.msra.mxu0 %v8463_v6  ;;  %v3551_v6 = vunpack.c.l.s4 %v5702_v34 }
 0xd28   :  { %5485 = vmatprep.subr.bf16.mxu0 %v8464_v61 }
 0xd29   :  { %4815 = vmatpush3.bf16.msra.mxu1 %v5603_v28 }
 0xd2a   :  { %4816 = vmatprep.subr.bf16.mxu1 %v5604_v56  ;;  %v8468_v56 = vld [vmem:[#allocation12_spill] sm:$0xff] }
 0xd2b   :  { %5487 = vmatpush1.bf16.msra.mxu0 %v8465_v60 }
 0xd2c   :  { %5489 = vmatprep.subr.bf16.mxu0 %v8466_v52 }
 0xd2d   :  { %4817 = vmatpush3.bf16.msra.mxu1 %v5605_v0 }
 0xd2e   :  { %4818 = vmatprep.subr.bf16.mxu1 %v5606_v59 }
 0xd2f   :  { %5491 = vmatpush1.bf16.msra.mxu0 %v8467_v16  ;;  %v3552_v16 = vunpack.c.0.s8 %v3551_v6 }
 0xd30   :  { %5493 = vmatprep.subr.bf16.mxu0 %v5492_v58  ;;  %v5612_v58 = vld [vmem:[#allocation2 + $0x130] ss:$8 sps:$4 sm:$0xff]  }
 0xd31   :  { %4819 = vmatpush3.bf16.msra.mxu1 %v5607_v13  ;;  %v3555_v0 = vsub.s32 %v3552_v16, %v8468_v56 }
 0xd32   :  { %4820 = vmatprep.subr.bf16.mxu1 %v5608_v15 }
 0xd33   :  { %5495 = vmatpush1.bf16.msra.mxu0 %v5494_v44  ;;  %v5611_v44 = vld [vmem:[#allocation2 + $0xa0] ss:$8 sps:$4 sm:$0xff]  }
 0xd34   :  { %5497 = vmatprep.subr.bf16.mxu0 %v5496_v19 }
 0xd35   :  { %4821 = vmatpush3.bf16.msra.mxu1 %v5609_v18 }
 0xd36   :  { %4822 = vmatprep.subr.bf16.mxu1 %v5610_v31 }
 0xd37   :  { %5499 = vmatpush1.bf16.msra.mxu0 %v5498_v53  ;;  %v5613_v53 = vld [vmem:[#allocation2 + $0xb0] ss:$8 sps:$4 sm:$0xff]  }
 0xd38   :  { %5501 = vmatprep.subr.bf16.mxu0 %v5500_v54 }
 0xd39   :  { %4823 = vmatpush3.bf16.msra.mxu1 %v5611_v44 }
 0xd3a   :  { %4824 = vmatprep.subr.bf16.mxu1 %v5612_v58 }
 0xd3b   :  { %5503 = vmatpush1.bf16.msra.mxu0 %v5502_v37 }
 0xd3c   :  { %5505 = vmatprep.subr.bf16.mxu0 %v5504_v27  ;;  %v4426_v27 = vld [vmem:[%s8308_s3 + $0x13] ss:$8 sm:$0x3] }
 0xd3d   :  { %4825 = vmatpush3.bf16.msra.mxu1 %v5613_v53  ;;  %v3536_v61 = vrot.slane %v4426_v27, %v8429_v49  ;;  %v3540_v60 = vrot.slane %v4426_v27, %v8430_v24 }
 0xd3f   :  { %5507 = vmatpush1.bf16.msra.mxu0 %v5506_v38 }
 0xd42   :  { %3518 = vmatmul.mubr.f32.vlgmr.msra.gmra.mrb[58].mxu0 %v5701_v23 }
 0xd43   :  { %5118 = vmatprep.mubr.msk.f32.mxu0 %vm5697_vm3, %v8454_v5 }
 0xdf5   :  { %v3416_v19 = vpop.f32.mrb[56].mxu0 }
 0xdf6   :  { %v3418_v57 = vpop.f32.mrb[57].mxu0  ;;  %v3524_v50 = vmul.f32 %v3416_v19, %v3416_v19 }
 0xdf7   :  { %v3525_v37 = vmul.f32 %v3418_v57, %v3418_v57 }
 0xe15   :  { %v3519_v54 = vpop.f32.mrb[58].mxu0 }
 0xe16   :  { %v3526_v45 = vsub.f32 %v3519_v54, %v3524_v50  ;;  %v3521_v42 = vpop.f32.mrb[59].mxu0 }
 0xe17   :  { %v3527_v8 = vsub.f32 %v3521_v42, %v3525_v37 }
 0xe18   :  { %v3528_v39 = vadd.f32 1e-05, %v3526_v45 }
 0xe19   :  { %v3529_v38 = vadd.f32 1e-05, %v3527_v8 }
 0xe1a   :  { %5630 = vrsqrt.f32 %v3528_v39 }
 0xe1b   :  { %5632 = vrsqrt.f32 %v3529_v38 }
 0xe24   :  { %v5631_v52 = vpop.eup %5630 }
 0xe25   :  { %v5633_v41 = vpop.eup %5632  ;;  %v3543_v30 = vmul.f32 %v5631_v52, %v3536_v61 }
 0xe26   :  { %v3544_v63 = vmul.f32 %v5633_v41, %v3540_v60 }
 0xe27   :  { %v3545_v4 = vmul.f32 %v3543_v30, %v3416_v19  ;;  %v3569_v55 = vrot.slane %v3543_v30, %v8429_v49 }
 0xe28   :  { %v3546_v28 = vmul.f32 %v3544_v63, %v3418_v57  ;;  %v3573_v59 = vrot.slane %v3544_v63, %v8429_v49 }
 0xe29   :  { %v3574_v13 = vmul.f32 %v3569_v55, %v7770_v20  ;;  %v3576_v15 = vmul.f32 %v3569_v55, %v7774_v46  ;;  %v3578_v18 = vmul.f32 %v3569_v55, %v7802_v21  ;;  %v3580_v31 = vmul.f32 %v3569_v55, %v7806_v32 }
 0xe2a   :  { %v3549_v44 = vcombine.low %v3545_v4, %v3546_v28  ;;  %v3575_v58 = vmul.f32 %v3573_v59, %v7772_v7  ;;  %v3577_v53 = vmul.f32 %v3573_v59, %v7786_v2  ;;  %v3579_v19 = vmul.f32 %v3573_v59, %v7804_v10  ;;  %v4427_v7 = vld [vmem:[%s8308_s3 + $0x14] ss:$8 sm:$0x3] }
 0xe2b   :  { %v3581_v57 = vmul.f32 %v3573_v59, %v7818_v51  ;;  %v3583_v50 = vmul.f32 %v3573_v59, %v7836_v3  ;;  %v3585_v37 = vmul.f32 %v3573_v59, %v7850_v22  ;;  %v3582_v20 = vmul.f32 %v3569_v55, %v7834_v35 }
 0xe2c   :  { %v3556_v46 = vrot.slane %v3549_v44, %v3555_v0  ;;  %v3584_v21 = vmul.f32 %v3569_v55, %v7838_v40  ;;  %v3587_v32 = vmul.f32 %v3573_v59, %v7868_v9  ;;  %v3589_v54 = vmul.f32 %v3573_v59, %v7882_v43 }
 0xe2d   :  { %v3586_v2 = vmul.f32 %v3569_v55, %v7866_v25  ;;  %v3588_v10 = vmul.f32 %v3569_v55, %v7870_v33  ;;  %v3591_v51 = vmul.f32 %v3573_v59, %v7900_v12  ;;  %v3593_v3 = vmul.f32 %v3573_v59, %v7914_v29 }
 0xe2e   :  { %v3563_v35 = vrot.slane %v3556_v46, %v3555_v0  ;;  %v3590_v22 = vmul.f32 %v3569_v55, %v7898_v62  ;;  %v3592_v40 = vmul.f32 %v3569_v55, %v7902_v14  ;;  %v8045_v9 = vmul.f32 %v3573_v59, %v7926_v26  ;;  %v8469_v14 = vld [vmem:[#allocation8_spill] sm:$0xff]  ;;  %v8470_v26 = vld [vmem:[#allocation5_spill] sm:$0xff] }
 0xe2f   :  { %v8048_v43 = vmul.f32 %v3573_v59, %v7936_v11  ;;  %v8051_v45 = vmul.f32 %v3569_v55, %v7924_v36  ;;  %v8054_v25 = vmul.f32 %v3569_v55, %v7928_v1  ;;  %v8057_v33 = vmul.f32 %v3573_v59, %v7946_v17  ;;  %v8471_v36 = vld [vmem:[#allocation9_spill] sm:$0xff]  ;;  %v8472_v1 = vld [vmem:[#allocation6_spill] sm:$0xff]  ;;  %v8473_v17 = vld [vmem:[#allocation7_spill] sm:$0xff] }
 0xe30   :  { %v3565_v12 = vsub.f32 %v4427_v7, %v3563_v35  ;;  %v8060_v62 = vmul.f32 %v3573_v59, %v7956_v48  ;;  %v8063_v29 = vmul.f32 %v3569_v55, %v8469_v14  ;;  %v8066_v42 = vmul.f32 %v3569_v55, %v8470_v26 }
 0xe31   :  { %v8069_v11 = vmul.f32 %v3573_v59, %v7966_v47  ;;  %v8072_v8 = vmul.f32 %v3573_v59, %v8471_v36  ;;  %v8075_v39 = vmul.f32 %v3569_v55, %v8472_v1  ;;  %v8078_v38 = vmul.f32 %v3569_v55, %v8473_v17 }
 0xe32   :  { %v8081_v48 = vrot.slane %v3565_v12, %v8429_v49  ;;  %v8084_v27 = vrot.slane %v3565_v12, %v8430_v24 }
 0xe34   :  { %v3618_v34 = vadd.f32 %v8084_v27, %v3575_v58  ;;  %v3620_v47 = vadd.f32 %v8084_v27, %v3577_v53  ;;  %v3617_v6 = vadd.f32 %v8081_v48, %v3574_v13  ;;  %v3619_v61 = vadd.f32 %v8081_v48, %v3576_v15 }
 0xe35   :  { %v3622_v60 = vadd.f32 %v8084_v27, %v3579_v19  ;;  %v3624_v52 = vadd.f32 %v8084_v27, %v3581_v57  ;;  %v3621_v16 = vadd.f32 %v8081_v48, %v3578_v18  ;;  %v3623_v41 = vadd.f32 %v8081_v48, %v3580_v31 }
 0xe36   :  { %v3650_v30 = vmax.f32 %v3618_v34, 0.0  ;;  %v3652_v63 = vmax.f32 %v3620_v47, 0.0  ;;  %v3649_v24 = vmax.f32 %v3617_v6, 0.0  ;;  %v3651_v4 = vmax.f32 %v3619_v61, 0.0 }
 0xe37   :  { %v3654_v55 = vmax.f32 %v3622_v60, 0.0  ;;  %v3656_v28 = vmax.f32 %v3624_v52, 0.0  ;;  %v3653_v56 = vmax.f32 %v3621_v16, 0.0  ;;  %v3655_v0 = vmax.f32 %v3623_v41, 0.0 }
 0xe38   :  { %v3714_v59 = vpack.c.bf16 %v3652_v63, %v3650_v30  ;;  %v3713_v13 = vpack.c.bf16 %v3651_v4, %v3649_v24  ;;  %v3626_v15 = vadd.f32 %v8084_v27, %v3583_v50  ;;  %v3628_v44 = vadd.f32 %v8084_v27, %v3585_v37 }
 0xe39   :  { %v3716_v58 = vpack.c.bf16 %v3656_v28, %v3654_v55  ;;  %v3715_v53 = vpack.c.bf16 %v3655_v0, %v3653_v56  ;;  %v3625_v18 = vadd.f32 %v8081_v48, %v3582_v20  ;;  %v3627_v31 = vadd.f32 %v8081_v48, %v3584_v21 }
 0xe3a   :  { %3857 = vmatprep.mubr.bf16.mxu1 %v3714_v59  ;;  %v3658_v19 = vmax.f32 %v3626_v15, 0.0  ;;  %v3660_v57 = vmax.f32 %v3628_v44, 0.0  ;;  %v3630_v46 = vadd.f32 %v8084_v27, %v3587_v32  ;;  %v3632_v7 = vadd.f32 %v8084_v27, %v3589_v54 }
 0xe3b   :  { %3858 = vmatmul.mubr.bf16.vlgmr.msra.gmra.mrb[132].mxu1 %v3713_v13  ;;  %v3657_v35 = vmax.f32 %v3625_v18, 0.0  ;;  %v3659_v12 = vmax.f32 %v3627_v31, 0.0  ;;  %v3629_v50 = vadd.f32 %v8081_v48, %v3586_v2  ;;  %v3631_v37 = vadd.f32 %v8081_v48, %v3588_v10 }
 0xe3c   :  { %3865 = vmatprep.mubr.bf16.mxu1 %v3716_v58  ;;  %v3718_v14 = vpack.c.bf16 %v3660_v57, %v3658_v19  ;;  %v3662_v26 = vmax.f32 %v3630_v46, 0.0  ;;  %v3664_v20 = vmax.f32 %v3632_v7, 0.0  ;;  %v3634_v21 = vadd.f32 %v8084_v27, %v3591_v51 }
 0xe3d   :  { %v3717_v36 = vpack.c.bf16 %v3659_v12, %v3657_v35  ;;  %v3661_v1 = vmax.f32 %v3629_v50, 0.0  ;;  %v3663_v17 = vmax.f32 %v3631_v37, 0.0  ;;  %v3636_v32 = vadd.f32 %v8084_v27, %v3593_v3 }
 0xe3e   :  { %v3720_v34 = vpack.c.bf16 %v3664_v20, %v3662_v26  ;;  %v3666_v54 = vmax.f32 %v3634_v21, 0.0  ;;  %v3633_v47 = vadd.f32 %v8081_v48, %v3590_v22  ;;  %v3635_v6 = vadd.f32 %v8081_v48, %v3592_v40 }
 0xe3f   :  { %v3719_v2 = vpack.c.bf16 %v3663_v17, %v3661_v1  ;;  %v3668_v61 = vmax.f32 %v3636_v32, 0.0  ;;  %v3638_v10 = vadd.f32 %v8084_v27, %v8045_v9  ;;  %v3640_v60 = vadd.f32 %v8084_v27, %v8048_v43 }
 0xe40   :  { %v3665_v51 = vmax.f32 %v3633_v47, 0.0  ;;  %v3667_v52 = vmax.f32 %v3635_v6, 0.0  ;;  %v3637_v16 = vadd.f32 %v8081_v48, %v8051_v45  ;;  %v3639_v3 = vadd.f32 %v8081_v48, %v8054_v25 }
 0xe41   :  { %v3722_v41 = vpack.c.bf16 %v3668_v61, %v3666_v54  ;;  %v3670_v22 = vmax.f32 %v3638_v10, 0.0  ;;  %v3672_v30 = vmax.f32 %v3640_v60, 0.0  ;;  %v3642_v40 = vadd.f32 %v8084_v27, %v8057_v33 }
 0xe42   :  { %v3721_v63 = vpack.c.bf16 %v3667_v52, %v3665_v51  ;;  %v3669_v24 = vmax.f32 %v3637_v16, 0.0  ;;  %v3671_v9 = vmax.f32 %v3639_v3, 0.0  ;;  %v3644_v43 = vadd.f32 %v8084_v27, %v8060_v62 }
 0xe43   :  { %3866 = vmatmul.mubr.bf16.gmra.mrb[136].mxu1 %v3715_v53  ;;  %v3724_v4 = vpack.c.bf16 %v3672_v30, %v3670_v22  ;;  %v3674_v55 = vmax.f32 %v3642_v40, 0.0  ;;  %v3641_v45 = vadd.f32 %v8081_v48, %v8063_v29  ;;  %v3643_v25 = vadd.f32 %v8081_v48, %v8066_v42 }
 0xe44   :  { %3873 = vmatprep.mubr.bf16.mxu1 %v3718_v14  ;;  %v3723_v28 = vpack.c.bf16 %v3671_v9, %v3669_v24  ;;  %v3676_v56 = vmax.f32 %v3644_v43, 0.0  ;;  %v3646_v33 = vadd.f32 %v8084_v27, %v8069_v11  ;;  %v3648_v0 = vadd.f32 %v8084_v27, %v8072_v8  ;;  %v5614_v8 = vld [vmem:[#allocation2 + $0x140] ss:$8 sps:$4 sm:$0xff]  }
 0xe45   :  { %v3673_v59 = vmax.f32 %v3641_v45, 0.0  ;;  %v3675_v62 = vmax.f32 %v3643_v25, 0.0  ;;  %v3645_v13 = vadd.f32 %v8081_v48, %v8075_v39  ;;  %v3647_v29 = vadd.f32 %v8081_v48, %v8078_v38  ;;  %5156 = vmatprep.subr.bf16.mxu1 %v5614_v8 }
 0xe46   :  { %v3726_v15 = vpack.c.bf16 %v3676_v56, %v3674_v55  ;;  %v3678_v44 = vmax.f32 %v3646_v33, 0.0  ;;  %v3680_v42 = vmax.f32 %v3648_v0, 0.0  ;;  %v5703_v11 = vmov 0.0|0.0   ;;  %5157 = vmatpush3.bf16.msra.mxu1 %v5614_v8 }
 0xe47   :  { %v3725_v58 = vpack.c.bf16 %v3675_v62, %v3673_v59  ;;  %v3677_v53 = vmax.f32 %v3645_v13, 0.0  ;;  %v3679_v18 = vmax.f32 %v3647_v29, 0.0  ;;  %5508 = vmatprep.subr.bf16.mxu0 %v5703_v11 }
 0xe48   :  { %v3728_v31 = vpack.c.bf16 %v3680_v42, %v3678_v44 }
 0xe49   :  { %v3727_v19 = vpack.c.bf16 %v3679_v18, %v3677_v53 }
 0xe4b   :  { %3874 = vmatmul.mubr.bf16.gmra.mrb[140].mxu1 %v3717_v36 }
 0xe4c   :  { %3881 = vmatprep.mubr.bf16.mxu1 %v3720_v34 }
 0xe53   :  { %3882 = vmatmul.mubr.bf16.gmra.mrb[144].mxu1 %v3719_v2 }
 0xe54   :  { %3889 = vmatprep.mubr.bf16.mxu1 %v3722_v41 }
 0xe5b   :  { %3890 = vmatmul.mubr.bf16.gmra.mrb[148].mxu1 %v3721_v63 }
 0xe5c   :  { %3897 = vmatprep.mubr.bf16.mxu1 %v3724_v4 }
 0xe63   :  { %3898 = vmatmul.mubr.bf16.gmra.mrb[152].mxu1 %v3723_v28 }
 0xe64   :  { %3905 = vmatprep.mubr.bf16.mxu1 %v3726_v15 }
 0xe6b   :  { %3906 = vmatmul.mubr.bf16.gmra.mrb[156].mxu1 %v3725_v58 }
 0xe6c   :  { %3913 = vmatprep.mubr.bf16.mxu1 %v3728_v31 }
 0xe73   :  { %3914 = vmatmul.mubr.bf16.gmra.mrb[160].mxu1 %v3727_v19 }
 0xf0e   :  { %v4826_v39 = vpop.f32.mrb[132].mxu1 }
 0xf0f   :  { %v4827_v38 = vpop.f32.mrb[133].mxu1 }
 0xf10   :  { %v8131_v48 = vadd.f32 %v4827_v38, %v4826_v39  ;;  %v4829_v27 = vpop.f32.mrb[134].mxu1 }
 0xf11   :  { %v4830_v57 = vpop.f32.mrb[135].mxu1 }
 0xf12   :  { %v8133_v46 = vadd.f32 %v4830_v57, %v4829_v27  ;;  %v3994_v31 = vmul.f32 %v8131_v48, %v8131_v48 }
 0xf14   :  { %v5509_v7 = vpack.c.bf16 %v8133_v46, %v8131_v48  ;;  %v3995_v53 = vmul.f32 %v8133_v46, %v8133_v46 }
 0xf16   :  { %v4832_v35 = vpop.f32.mrb[136].mxu1  ;;  %5510 = vmatpush3.bf16.msra.mxu0 %v5509_v7  ;;  %v5533_v19 = vpack.c.bf16 %v3995_v53, %v3994_v31 }
 0xf17   :  { %v4833_v12 = vpop.f32.mrb[137].mxu1  ;;  %5511 = vmatprep.subr.bf16.mxu0 %v5703_v11 }
 0xf18   :  { %v8138_v50 = vadd.f32 %v4833_v12, %v4832_v35  ;;  %v4835_v37 = vpop.f32.mrb[138].mxu1 }
 0xf19   :  { %v4836_v14 = vpop.f32.mrb[139].mxu1 }
 0xf1a   :  { %v8140_v26 = vadd.f32 %v4836_v14, %v4835_v37  ;;  %v3996_v39 = vmul.f32 %v8138_v50, %v8138_v50 }
 0xf1c   :  { %v5512_v20 = vpack.c.bf16 %v8140_v26, %v8138_v50  ;;  %v3997_v8 = vmul.f32 %v8140_v26, %v8140_v26 }
 0xf1e   :  { %v4838_v21 = vpop.f32.mrb[140].mxu1  ;;  %5513 = vmatpush3.bf16.msra.mxu0 %v5512_v20  ;;  %v5536_v38 = vpack.c.bf16 %v3997_v8, %v3996_v39 }
 0xf1f   :  { %v4839_v36 = vpop.f32.mrb[141].mxu1  ;;  %5514 = vmatprep.subr.bf16.mxu0 %v5703_v11 }
 0xf20   :  { %v8145_v1 = vadd.f32 %v4839_v36, %v4838_v21  ;;  %v4841_v17 = vpop.f32.mrb[142].mxu1 }
 0xf21   :  { %v4842_v32 = vpop.f32.mrb[143].mxu1 }
 0xf22   :  { %v8147_v34 = vadd.f32 %v4842_v32, %v4841_v17  ;;  %v3998_v57 = vmul.f32 %v8145_v1, %v8145_v1 }
 0xf24   :  { %v5515_v54 = vpack.c.bf16 %v8147_v34, %v8145_v1  ;;  %v3999_v27 = vmul.f32 %v8147_v34, %v8147_v34 }
 0xf26   :  { %v4844_v47 = vpop.f32.mrb[144].mxu1  ;;  %5516 = vmatpush3.bf16.msra.mxu0 %v5515_v54  ;;  %v5539_v7 = vpack.c.bf16 %v3999_v27, %v3998_v57 }
 0xf27   :  { %v4845_v6 = vpop.f32.mrb[145].mxu1  ;;  %5517 = vmatprep.subr.bf16.mxu0 %v5703_v11 }
 0xf28   :  { %v8152_v2 = vadd.f32 %v4845_v6, %v4844_v47  ;;  %v4847_v61 = vpop.f32.mrb[146].mxu1 }
 0xf29   :  { %v4848_v10 = vpop.f32.mrb[147].mxu1 }
 0xf2a   :  { %v8154_v60 = vadd.f32 %v4848_v10, %v4847_v61  ;;  %v4000_v12 = vmul.f32 %v8152_v2, %v8152_v2 }
 0xf2c   :  { %v5518_v51 = vpack.c.bf16 %v8154_v60, %v8152_v2  ;;  %v4001_v35 = vmul.f32 %v8154_v60, %v8154_v60 }
 0xf2e   :  { %v4850_v52 = vpop.f32.mrb[148].mxu1  ;;  %5519 = vmatpush3.bf16.msra.mxu0 %v5518_v51  ;;  %v5615_v51 = vld [vmem:[#allocation2 + $0x150] ss:$8 sps:$4 sm:$0xff]  }
 0xf2f   :  { %v4851_v16 = vpop.f32.mrb[149].mxu1  ;;  %5520 = vmatprep.subr.bf16.mxu0 %v5703_v11  ;;  %5158 = vmatprep.subr.bf16.mxu1 %v5615_v51 }
 0xf30   :  { %v8159_v3 = vadd.f32 %v4851_v16, %v4850_v52  ;;  %v4853_v41 = vpop.f32.mrb[150].mxu1  ;;  %v5616_v52 = vld [vmem:[#allocation2 + $0x160] ss:$8 sps:$4 sm:$0xff]   ;;  %5159 = vmatpush3.bf16.msra.mxu1 %v5615_v51  ;;  %v5617_v16 = vld [vmem:[#allocation2 + $0x170] ss:$8 sps:$4 sm:$0xff]  }
 0xf31   :  { %v4854_v22 = vpop.f32.mrb[151].mxu1  ;;  %5160 = vmatprep.subr.bf16.mxu1 %v5616_v52 }
 0xf32   :  { %v8161_v30 = vadd.f32 %v4854_v22, %v4853_v41  ;;  %v4002_v14 = vmul.f32 %v8159_v3, %v8159_v3  ;;  %v5618_v41 = vld [vmem:[#allocation2 + $0x180] ss:$8 sps:$4 sm:$0xff]   ;;  %v5619_v22 = vld [vmem:[#allocation2 + $0x190] ss:$8 sps:$4 sm:$0xff]  }
 0xf34   :  { %v5521_v40 = vpack.c.bf16 %v8161_v30, %v8159_v3  ;;  %v4003_v37 = vmul.f32 %v8161_v30, %v8161_v30  ;;  %5161 = vmatpush3.bf16.msra.mxu1 %v5616_v52 }
 0xf35   :  { %5162 = vmatprep.subr.bf16.mxu1 %v5617_v16 }
 0xf36   :  { %v4856_v63 = vpop.f32.mrb[152].mxu1  ;;  %5522 = vmatpush3.bf16.msra.mxu0 %v5521_v40  ;;  %v5545_v20 = vpack.c.bf16 %v4003_v37, %v4002_v14  ;;  %v5620_v40 = vld [vmem:[#allocation2 + $0x1a0] ss:$8 sps:$4 sm:$0xff]  }
 0xf37   :  { %v4857_v24 = vpop.f32.mrb[153].mxu1  ;;  %5523 = vmatprep.subr.bf16.mxu0 %v5703_v11 }
 0xf38   :  { %v8166_v9 = vadd.f32 %v4857_v24, %v4856_v63  ;;  %v4859_v43 = vpop.f32.mrb[154].mxu1  ;;  %5163 = vmatpush3.bf16.msra.mxu1 %v5617_v16 }
 0xf39   :  { %v4860_v4 = vpop.f32.mrb[155].mxu1  ;;  %5164 = vmatprep.subr.bf16.mxu1 %v5618_v41 }
 0xf3a   :  { %v8168_v55 = vadd.f32 %v4860_v4, %v4859_v43  ;;  %v4004_v36 = vmul.f32 %v8166_v9, %v8166_v9 }
 0xf3c   :  { %v5524_v45 = vpack.c.bf16 %v8168_v55, %v8166_v9  ;;  %v4005_v21 = vmul.f32 %v8168_v55, %v8168_v55  ;;  %5165 = vmatpush3.bf16.msra.mxu1 %v5618_v41 }
 0xf3d   :  { %5166 = vmatprep.subr.bf16.mxu1 %v5619_v22 }
 0xf3e   :  { %v4862_v25 = vpop.f32.mrb[156].mxu1  ;;  %5525 = vmatpush3.bf16.msra.mxu0 %v5524_v45  ;;  %v5548_v17 = vpack.c.bf16 %v4005_v21, %v4004_v36 }
 0xf3f   :  { %v4863_v28 = vpop.f32.mrb[157].mxu1  ;;  %5526 = vmatprep.subr.bf16.mxu0 %v5703_v11 }
 0xf40   :  { %v8173_v56 = vadd.f32 %v4863_v28, %v4862_v25  ;;  %v4865_v33 = vpop.f32.mrb[158].mxu1  ;;  %5167 = vmatpush3.bf16.msra.mxu1 %v5619_v22  ;;  %v3922_v28 = vld [vmem:[%s8308_s3 + $0x15] ss:$0 sm:$0xff] }
 0xf41   :  { %v4866_v0 = vpop.f32.mrb[159].mxu1  ;;  %5168 = vmatprep.subr.bf16.mxu1 %v5620_v40 }
 0xf42   :  { %v8175_v59 = vadd.f32 %v4866_v0, %v4865_v33  ;;  %v4006_v54 = vmul.f32 %v8173_v56, %v8173_v56 }
 0xf44   :  { %v5527_v62 = vpack.c.bf16 %v8175_v59, %v8173_v56  ;;  %v4007_v32 = vmul.f32 %v8175_v59, %v8175_v59  ;;  %5169 = vmatpush3.bf16.msra.mxu1 %v5620_v40 }
 0xf46   :  { %v4868_v13 = vpop.f32.mrb[160].mxu1  ;;  %5528 = vmatpush3.bf16.msra.mxu0 %v5527_v62  ;;  %v5551_v47 = vpack.c.bf16 %v4007_v32, %v4006_v54  ;;  %v3923_v62 = vld [vmem:[%s8308_s3 + $0x16] ss:$0 sm:$0xff] }
 0xf47   :  { %v4869_v29 = vpop.f32.mrb[161].mxu1  ;;  %5529 = vmatprep.subr.bf16.mxu0 %v5703_v11 }
 0xf48   :  { %v8180_v15 = vadd.f32 %v4869_v29, %v4868_v13  ;;  %v4871_v44 = vpop.f32.mrb[162].mxu1 }
 0xf49   :  { %v4872_v42 = vpop.f32.mrb[163].mxu1 }
 0xf4a   :  { %v8182_v58 = vadd.f32 %v4872_v42, %v4871_v44  ;;  %v4008_v61 = vmul.f32 %v8180_v15, %v8180_v15 }
 0xf4c   :  { %v5530_v18 = vpack.c.bf16 %v8182_v58, %v8180_v15  ;;  %v4009_v6 = vmul.f32 %v8182_v58, %v8182_v58 }
 0xf4e   :  { %5531 = vmatpush3.bf16.msra.mxu0 %v5530_v18  ;;  %v5554_v10 = vpack.c.bf16 %v4009_v6, %v4008_v61 }
 0xf4f   :  { %5532 = vmatprep.subr.bf16.mxu0 %v5703_v11 }
 0xf51   :  { %5119 = vmatmul.mubr.f32.vlgmr.msra.gmra.mrb[60].mxu0 %v5701_v23 }
 0xf52   :  { %5534 = vmatpush3.bf16.msra.mxu0 %v5533_v19  ;;  %5153 = vmatprep.mubr.msk.f32.mxu0 %vm5697_vm3, %v8454_v5  ;;  %v5542_v5 = vpack.c.bf16 %v4001_v35, %v4000_v12 }
 0xf53   :  { %5535 = vmatprep.subr.bf16.mxu0 %v5703_v11 }
 0xf56   :  { %5537 = vmatpush3.bf16.msra.mxu0 %v5536_v38 }
 0xf57   :  { %5538 = vmatprep.subr.bf16.mxu0 %v5703_v11 }
 0xf5a   :  { %5540 = vmatpush3.bf16.msra.mxu0 %v5539_v7 }
 0xf5b   :  { %5541 = vmatprep.subr.bf16.mxu0 %v5703_v11 }
 0xf5e   :  { %5543 = vmatpush3.bf16.msra.mxu0 %v5542_v5 }
 0xf5f   :  { %5544 = vmatprep.subr.bf16.mxu0 %v5703_v11 }
 0xf62   :  { %5546 = vmatpush3.bf16.msra.mxu0 %v5545_v20 }
 0xf63   :  { %5547 = vmatprep.subr.bf16.mxu0 %v5703_v11 }
 0xf66   :  { %5549 = vmatpush3.bf16.msra.mxu0 %v5548_v17 }
 0xf67   :  { %5550 = vmatprep.subr.bf16.mxu0 %v5703_v11 }
 0xf6a   :  { %5552 = vmatpush3.bf16.msra.mxu0 %v5551_v47 }
 0xf6b   :  { %5553 = vmatprep.subr.bf16.mxu0 %v5703_v11  ;;  %v5621_v11 = vld [vmem:[#allocation2 + $0x1b0] ss:$8 sps:$4 sm:$0xff]  }
 0xf6c   :  { %5170 = vmatprep.subr.bf16.mxu1 %v5621_v11 }
 0xf6d   :  { %5171 = vmatpush3.bf16.msra.mxu1 %v5621_v11 }
 0xf6e   :  { %5555 = vmatpush3.bf16.msra.mxu0 %v5554_v10 }
 0xf71   :  { %5154 = vmatmul.mubr.f32.vlgmr.msra.gmra.mrb[62].mxu0 %v5701_v23 }
0x1024   :  { %v3990_v23 = vpop.f32.mrb[60].mxu0 }
0x1025   :  { %v5120_v63 = vpop.f32.mrb[61].mxu0  ;;  %v4080_v24 = vmul.f32 %v3990_v23, %v3990_v23 }
0x1044   :  { %v4076_v43 = vpop.f32.mrb[62].mxu0 }
0x1045   :  { %v4081_v4 = vsub.f32 %v4076_v43, %v4080_v24  ;;  %v5155_v45 = vpop.f32.mrb[63].mxu0 }
0x1047   :  { %v4082_v25 = vadd.f32 1e-05, %v4081_v4 }
0x1049   :  { %5634 = vrsqrt.f32 %v4082_v25 }
0x1053   :  { %v5635_v33 = vpop.eup %5634 }
0x1054   :  { %v4084_v0 = vmul.f32 %v5635_v33, %v3922_v28 }
0x1056   :  { %v4085_v13 = vmul.f32 %v4084_v0, %v3990_v23  ;;  %v4090_v29 = vrot.slane %v4084_v0, %v8429_v49 }
0x1058   :  { %v4086_v44 = vsub.f32 %v3923_v62, %v4085_v13  ;;  %v4091_v42 = vmul.f32 %v8131_v48, %v4090_v29  ;;  %v4092_v53 = vmul.f32 %v8133_v46, %v4090_v29  ;;  %v4093_v18 = vmul.f32 %v8138_v50, %v4090_v29 }
0x1059   :  { %v4094_v31 = vmul.f32 %v8140_v26, %v4090_v29  ;;  %v4095_v19 = vmul.f32 %v8145_v1, %v4090_v29  ;;  %v4096_v8 = vmul.f32 %v8147_v34, %v4090_v29  ;;  %v4097_v39 = vmul.f32 %v8152_v2, %v4090_v29 }
0x105a   :  { %v4110_v38 = vrot.slane %v4086_v44, %v8429_v49  ;;  %v4098_v27 = vmul.f32 %v8154_v60, %v4090_v29  ;;  %v4099_v57 = vmul.f32 %v8159_v3, %v4090_v29  ;;  %v4100_v48 = vmul.f32 %v8161_v30, %v4090_v29 }
0x105b   :  { %v4101_v46 = vmul.f32 %v8166_v9, %v4090_v29  ;;  %v4102_v50 = vmul.f32 %v8168_v55, %v4090_v29  ;;  %v4103_v26 = vmul.f32 %v8173_v56, %v4090_v29  ;;  %v4104_v1 = vmul.f32 %v8175_v59, %v4090_v29 }
0x105c   :  { %v4111_v7 = vadd.f32 %v4110_v38, %v4091_v42  ;;  %v4112_v34 = vadd.f32 %v4110_v38, %v4092_v53  ;;  %v4113_v35 = vadd.f32 %v4110_v38, %v4093_v18  ;;  %v4114_v2 = vadd.f32 %v4110_v38, %v4094_v31 }
0x105d   :  { %v4115_v12 = vadd.f32 %v4110_v38, %v4095_v19  ;;  %v4116_v49 = vadd.f32 %v4110_v38, %v4096_v8  ;;  %v4117_v5 = vadd.f32 %v4110_v38, %v4097_v39  ;;  %v4118_v60 = vadd.f32 %v4110_v38, %v4098_v27 }
0x105e   :  { %v4127_v37 = vmax.f32 %v4111_v7, 0.0  ;;  %v4128_v3 = vmax.f32 %v4112_v34, 0.0  ;;  %v4129_v14 = vmax.f32 %v4113_v35, 0.0  ;;  %v4130_v30 = vmax.f32 %v4114_v2, 0.0 }
0x105f   :  { %v4131_v20 = vmax.f32 %v4115_v12, 0.0  ;;  %v4132_v9 = vmax.f32 %v4116_v49, 0.0  ;;  %v4133_v21 = vmax.f32 %v4117_v5, 0.0  ;;  %v4134_v55 = vmax.f32 %v4118_v60, 0.0 }
0x1060   :  { %v4159_v36 = vpack.c.bf16 %v4128_v3, %v4127_v37  ;;  %v4160_v56 = vpack.c.bf16 %v4130_v30, %v4129_v14  ;;  %v4119_v17 = vadd.f32 %v4110_v38, %v4099_v57  ;;  %v4120_v59 = vadd.f32 %v4110_v38, %v4100_v48 }
0x1061   :  { %v4161_v32 = vpack.c.bf16 %v4132_v9, %v4131_v20  ;;  %v4162_v54 = vpack.c.bf16 %v4134_v55, %v4133_v21  ;;  %v4121_v47 = vadd.f32 %v4110_v38, %v4101_v46  ;;  %v4122_v6 = vadd.f32 %v4110_v38, %v4102_v50 }
0x1062   :  { %5172 = vmatprep.mubr.bf16.mxu1 %v4159_v36  ;;  %v4135_v61 = vmax.f32 %v4119_v17, 0.0  ;;  %v4136_v10 = vmax.f32 %v4120_v59, 0.0  ;;  %v4123_v51 = vadd.f32 %v4110_v38, %v4103_v26  ;;  %v4124_v52 = vadd.f32 %v4110_v38, %v4104_v1 }
0x1063   :  { %5173 = vmatmul.mubr.bf16.vlgmr.msra.gmra.mrb[164].mxu1 %v4160_v56  ;;  %v4137_v16 = vmax.f32 %v4121_v47, 0.0  ;;  %v4138_v41 = vmax.f32 %v4122_v6, 0.0  ;;  %v4105_v22 = vmul.f32 %v8180_v15, %v4090_v29  ;;  %v4106_v40 = vmul.f32 %v8182_v58, %v4090_v29  ;;  %v4167_v15 = vld [vmem:[%s8308_s3 + $0x17] ss:$0 sm:$0xff] }
0x1064   :  { %5176 = vmatprep.mubr.bf16.mxu1 %v4161_v32  ;;  %v4163_v11 = vpack.c.bf16 %v4136_v10, %v4135_v61  ;;  %v4139_v23 = vmax.f32 %v4123_v51, 0.0  ;;  %v4140_v63 = vmax.f32 %v4124_v52, 0.0 }
0x1065   :  { %v4164_v24 = vpack.c.bf16 %v4138_v41, %v4137_v16  ;;  %v4125_v43 = vadd.f32 %v4110_v38, %v4105_v22  ;;  %v4126_v4 = vadd.f32 %v4110_v38, %v4106_v40 }
0x1066   :  { %v4165_v45 = vpack.c.bf16 %v4140_v63, %v4139_v23 }
0x1067   :  { %v4141_v25 = vmax.f32 %v4125_v43, 0.0  ;;  %v4142_v28 = vmax.f32 %v4126_v4, 0.0 }
0x1069   :  { %v4166_v33 = vpack.c.bf16 %v4142_v28, %v4141_v25 }
0x106b   :  { %5177 = vmatmul.mubr.bf16.gmra.mrb[168].mxu1 %v4162_v54 }
0x106c   :  { %5180 = vmatprep.mubr.bf16.mxu1 %v4163_v11 }
0x1073   :  { %5181 = vmatmul.mubr.bf16.gmra.mrb[172].mxu1 %v4164_v24 }
0x1074   :  { %5184 = vmatprep.mubr.bf16.mxu1 %v4165_v45 }
0x107b   :  { %5185 = vmatmul.mubr.bf16.gmra.mrb[176].mxu1 %v4166_v33 }
0x1136   :  { %v5174_v58 = vpop.f32.mrb[164].mxu1 }
0x1137   :  { %v4259_v0 = vadd.f32 %v5174_v58, %v4167_v15  ;;  %v4250_v62 = vpop.f32.mrb[165].mxu1 }
0x1138   :  { %v4251_v13 = vadd.f32 %v4250_v62, %v4167_v15  ;;  %v5175_v29 = vpop.f32.mrb[166].mxu1 }
0x1139   :  { %4315 = vst [vmem:[%s8309_s4 + $0x10] sm:$0xff] %v4259_v0  ;;  %v4262_v44 = vadd.f32 %v5175_v29, %v4167_v15  ;;  %v4253_v42 = vpop.f32.mrb[167].mxu1 }
0x113a   :  { %4313 = vst [vmem:[%s8309_s4] sm:$0xff] %v4251_v13  ;;  %v4254_v53 = vadd.f32 %v4253_v42, %v4167_v15 }
0x113b   :  { %4316 = vst [vmem:[%s8309_s4 + $0x18] sm:$0xff] %v4262_v44 }
0x113c   :  { %4314 = vst [vmem:[%s8309_s4 + $0x8] sm:$0xff] %v4254_v53 }
0x113e   :  { %v5178_v18 = vpop.f32.mrb[168].mxu1 }
0x113f   :  { %v4275_v31 = vadd.f32 %v5178_v18, %v4167_v15  ;;  %v4266_v19 = vpop.f32.mrb[169].mxu1 }
0x1140   :  { %v4267_v8 = vadd.f32 %v4266_v19, %v4167_v15  ;;  %v5179_v39 = vpop.f32.mrb[170].mxu1 }
0x1141   :  { %4319 = vst [vmem:[%s8309_s4 + $0x30] sm:$0xff] %v4275_v31  ;;  %v4278_v38 = vadd.f32 %v5179_v39, %v4167_v15  ;;  %v4269_v27 = vpop.f32.mrb[171].mxu1 }
0x1142   :  { %4317 = vst [vmem:[%s8309_s4 + $0x20] sm:$0xff] %v4267_v8  ;;  %v4270_v57 = vadd.f32 %v4269_v27, %v4167_v15 }
0x1143   :  { %4320 = vst [vmem:[%s8309_s4 + $0x38] sm:$0xff] %v4278_v38 }
0x1144   :  { %4318 = vst [vmem:[%s8309_s4 + $0x28] sm:$0xff] %v4270_v57 }
0x1146   :  { %v5182_v48 = vpop.f32.mrb[172].mxu1 }
0x1147   :  { %v4291_v46 = vadd.f32 %v5182_v48, %v4167_v15  ;;  %v4282_v50 = vpop.f32.mrb[173].mxu1 }
0x1148   :  { %v4283_v26 = vadd.f32 %v4282_v50, %v4167_v15  ;;  %v5183_v1 = vpop.f32.mrb[174].mxu1 }
0x1149   :  { %4323 = vst [vmem:[%s8309_s4 + $0x50] sm:$0xff] %v4291_v46  ;;  %v4294_v7 = vadd.f32 %v5183_v1, %v4167_v15  ;;  %v4285_v34 = vpop.f32.mrb[175].mxu1 }
0x114a   :  { %4321 = vst [vmem:[%s8309_s4 + $0x40] sm:$0xff] %v4283_v26  ;;  %v4286_v35 = vadd.f32 %v4285_v34, %v4167_v15 }
0x114b   :  { %4324 = vst [vmem:[%s8309_s4 + $0x58] sm:$0xff] %v4294_v7 }
0x114c   :  { %4322 = vst [vmem:[%s8309_s4 + $0x48] sm:$0xff] %v4286_v35 }
0x114e   :  { %v5186_v2 = vpop.f32.mrb[176].mxu1 }
0x114f   :  { %v4307_v12 = vadd.f32 %v5186_v2, %v4167_v15  ;;  %v4298_v49 = vpop.f32.mrb[177].mxu1 }
0x1150   :  { %v4299_v5 = vadd.f32 %v4298_v49, %v4167_v15  ;;  %v5187_v60 = vpop.f32.mrb[178].mxu1 }
0x1151   :  { %4327 = vst [vmem:[%s8309_s4 + $0x70] sm:$0xff] %v4307_v12  ;;  %v4310_v37 = vadd.f32 %v5187_v60, %v4167_v15  ;;  %v4301_v3 = vpop.f32.mrb[179].mxu1 }
0x1152   :  { %4325 = vst [vmem:[%s8309_s4 + $0x60] sm:$0xff] %v4299_v5  ;;  %v4302_v14 = vadd.f32 %v4301_v3, %v4167_v15 }
0x1153   :  { %4328 = vst [vmem:[%s8309_s4 + $0x78] sm:$0xff] %v4310_v37 }
0x1154   :  { %4326 = vst [vmem:[%s8309_s4 + $0x68] sm:$0xff] %v4302_v14 }
0x1155   :  { %4333 = vsyncpa [#allocation3], 1 }

</bundles_post_ra>
